<compile_context>
chip_gen: v5e
topology: v5e:2x2
jax: 0.10.0
libtpu: 0.0.40
codegen_flags: <defaults>
</compile_context>

<pallas_src>
import functools

import jax
import jax.numpy as jnp
from jax.experimental import pallas as pl
from jax.experimental.pallas import tpu as pltpu


def _fused_kernel(x_ref, wm_ref, bconv_ref, wfc_ref, bfc_ref, o_ref, *, W):
    # x_ref    : (TB, C, H*W)  VMEM  batch tile; channels on sublanes, flat HxW on lanes
    # wm_ref   : (C*9, H*W)    VMEM  conv_weight[c, tap] * 'same'-padding boundary mask[tap]
    # bconv_ref: (1,)          SMEM  conv bias (scalar)
    # wfc_ref  : (H*W, H*W)    VMEM  block-diag(fc_w^T): applies Linear(W, W) per row h
    # bfc_ref  : (1, H*W)      VMEM  fc bias tiled over the H rows
    # o_ref    : (TB, H*W)     lane-dense output block
    TB, C, HW = x_ref.shape

    # ---- 3x3 'same' conv, single output channel (squeeze(1) implicit) -------
    # out[b, h*W + w] = bias + sum_c sum_{dh,dw} Wc[c,dh,dw] * x[b, c, (h+dh)*W + (w+dw)]
    # Each tap (dh, dw) is a static lane roll of the flattened plane by
    # dh*W + dw; the precomputed wm row is zero wherever (h+dh, w+dw) falls
    # outside the image, which also kills every lane that wraps around.
    acc = jnp.zeros((TB, HW), dtype=jnp.float32)
    for c in range(C):
        xc = x_ref[:, c, :]                                # (TB, H*W)
        for t in range(9):                                 # tap index = kh*3 + kw
            dh, dw = t // 3 - 1, t % 3 - 1
            shift = (-(dh * W + dw)) % HW                  # static roll amount
            rolled = xc if shift == 0 else pltpu.roll(xc, shift=shift, axis=1)
            acc = acc + rolled * wm_ref[c * 9 + t, :]      # weight + zero-pad mask (VPU)

    acc = jnp.maximum(acc + bconv_ref[0], 0.0)             # conv bias + ReLU

    # ---- Linear(W, W) on the last spatial dim + Sigmoid ----------------------
    # One MXU matmul for all TB*H rows via the block-diagonal weight; keeps the
    # activation and the output store lane-dense (TB, H*W).
    z = jnp.dot(acc, wfc_ref[...], preferred_element_type=jnp.float32)
    z = z + bfc_ref[0, :]
    o_ref[...] = jax.nn.sigmoid(z).astype(o_ref.dtype)


def rna_cnn_raw_forward(x_nchw, conv_w, conv_b, fc_w, fc_b, *, block_b=64):
    """x_nchw: (B, 8, H, W) f32, W == n (Linear in-features). Returns (B, H, W) f32.

    block_b: images per grid step. 64 is safe on all generations (v7x's 32 MiB
    scoped VMEM included); can be raised to 128-256 on v5e/v6e (128 MiB VMEM).
    """
    B, C, H, W = x_nchw.shape
    n_out, n_in = fc_w.shape
    assert W == n_in == n_out, "RNA_CNN_raw applies Linear(n, n) on the last dim; needs W == n"
    assert conv_w.shape == (1, C, 3, 3) and conv_b.shape == (1,)
    HW = H * W

    TB = min(block_b, B)
    Bp = ((B + TB - 1) // TB) * TB                         # pad batch to a multiple of TB

    x = x_nchw.astype(jnp.float32)
    if Bp != B:
        x = jnp.pad(x, ((0, Bp - B), (0, 0), (0, 0), (0, 0)))
    x_flat = x.reshape(Bp, C, HW)                          # contiguous reshape: no HBM copy

    # --- conv weights folded with the 'same' zero-padding boundary masks -----
    j = jnp.arange(HW)
    hh, ww = j // W, j % W
    dh = (jnp.arange(9) // 3 - 1)[:, None]                 # tap order kh*3 + kw
    dw = (jnp.arange(9) % 3 - 1)[:, None]
    valid = ((hh[None, :] + dh >= 0) & (hh[None, :] + dh < H)
             & (ww[None, :] + dw >= 0) & (ww[None, :] + dw < W))        # (9, HW)
    wm = (conv_w.reshape(C, 9).astype(jnp.float32)[:, :, None]
          * valid.astype(jnp.float32)[None, :, :]).reshape(C * 9, HW)

    bconv = conv_b.reshape(1).astype(jnp.float32)

    # --- Linear(W, W) as a block-diagonal (H*W, H*W) operator -----------------
    wfc_big = jnp.kron(jnp.eye(H, dtype=jnp.float32),
                       jnp.transpose(fc_w).astype(jnp.float32))         # (HW, HW)
    bfc_big = jnp.tile(fc_b.astype(jnp.float32), H).reshape(1, HW)

    out_flat = pl.pallas_call(
        functools.partial(_fused_kernel, W=W),
        out_shape=jax.ShapeDtypeStruct((Bp, HW), jnp.float32),
        grid_spec=pltpu.PrefetchScalarGridSpec(
            num_scalar_prefetch=0,
            grid=(Bp // TB,),
            in_specs=[
                pl.BlockSpec((TB, C, HW), lambda b: (b, 0, 0)),          # x batch tile
                pl.BlockSpec((C * 9, HW), lambda b: (0, 0)),             # conv wgt*mask (resident)
                pl.BlockSpec(memory_space=pltpu.MemorySpace.SMEM),       # conv bias scalar
                pl.BlockSpec((HW, HW), lambda b: (0, 0)),                # block-diag fc weight
                pl.BlockSpec((1, HW), lambda b: (0, 0)),                 # fc bias
            ],
            out_specs=pl.BlockSpec((TB, HW), lambda b: (b, 0)),
        ),
        compiler_params=pltpu.CompilerParams(
            dimension_semantics=("parallel",),
            vmem_limit_bytes=32 * 1024 * 1024,
        ),
    )(x_flat, wm, bconv, wfc_big, bfc_big)

    return out_flat[:B].reshape(B, H, W)


def _reference_forward(x_nchw, conv_w, conv_b, fc_w, fc_b):
    # Pure-JAX reference mirroring the PyTorch module semantics.
    y = jax.lax.conv_general_dilated(
        x_nchw, conv_w, window_strides=(1, 1), padding="SAME",
        dimension_numbers=("NCHW", "OIHW", "NCHW"))
    y = y + conv_b.reshape(1, -1, 1, 1)
    y = jnp.squeeze(y, axis=1)
    y = jnp.maximum(y, 0.0)
    y = jnp.einsum("bhw,nw->bhn", y, fc_w) + fc_b
    return jax.nn.sigmoid(y)


if __name__ == "__main__":
    # Small shapes consistent with the module: batch=2, one_hot_dim=8, n=16.
    B, C, n = 2, 8, 16

    key = jax.random.PRNGKey(0)
    kx, kcw, kcb, kfw, kfb = jax.random.split(key, 5)

    x = jax.random.normal(kx, (B, C, n, n), dtype=jnp.float32)
    conv_w = jax.random.normal(kcw, (1, C, 3, 3), dtype=jnp.float32) * 0.1
    conv_b = jax.random.normal(kcb, (1,), dtype=jnp.float32) * 0.1
    fc_w = jax.random.normal(kfw, (n, n), dtype=jnp.float32) * 0.1
    fc_b = jax.random.normal(kfb, (n,), dtype=jnp.float32) * 0.1

    out = rna_cnn_raw_forward(x, conv_w, conv_b, fc_w, fc_b, block_b=64)
    out = jax.block_until_ready(out)

    ref = _reference_forward(x, conv_w, conv_b, fc_w, fc_b)
    assert out.shape == (B, n, n)
    max_err = float(jnp.max(jnp.abs(out - ref)))
    assert jnp.allclose(out, ref, atol=2e-3, rtol=2e-3), f"max abs err {max_err}"

    print("KERNEL_OK")
</pallas_src>

<mosaic_0001>
module attributes {stable_mosaic.version = 11 : i64} {
  func.func @_fused_kernel(%arg0: i32, %arg1: memref<2x8x256xf32, #tpu.memory_space<vmem>>, %arg2: memref<72x256xf32, #tpu.memory_space<vmem>>, %arg3: memref<1xf32, #tpu.memory_space<smem>>, %arg4: memref<256x256xf32, #tpu.memory_space<vmem>>, %arg5: memref<1x256xf32, #tpu.memory_space<vmem>>, %arg6: memref<2x256xf32, #tpu.memory_space<vmem>>) attributes {dimension_semantics = [#tpu.dimension_semantics<parallel>], iteration_bounds = array<i64: 1>, scalar_prefetch = 0 : i64, scratch_operands = 0 : i64, tpu.core_type = #tpu.core_type<tc>, window_params = [{transform_indices = @transform_0, window_bounds = array<i64: 2, 8, 256>}, {pipeline_mode = #tpu.pipeline_mode<synchronous>, transform_indices = @transform_1, window_bounds = array<i64: 72, 256>}, {transform_indices = @transform_2, window_bounds = array<i64: 1>}, {pipeline_mode = #tpu.pipeline_mode<synchronous>, transform_indices = @transform_3, window_bounds = array<i64: 256, 256>}, {pipeline_mode = #tpu.pipeline_mode<synchronous>, transform_indices = @transform_4, window_bounds = array<i64: 1, 256>}, {transform_indices = @transform_5, window_bounds = array<i64: 2, 256>}]} {
    %cst = arith.constant 0.000000e+00 : f32
    %0 = vector.broadcast %cst : f32 to vector<2x256xf32>
    %c0 = arith.constant 0 : index
    %c0_0 = arith.constant 0 : index
    %c0_1 = arith.constant 0 : index
    %1 = vector.load %arg1[%c0, %c0_0, %c0_1] : memref<2x8x256xf32, #tpu.memory_space<vmem>>, vector<2x1x256xf32>
    %2 = vector.shape_cast %1 : vector<2x1x256xf32> to vector<2x256xf32>
    %c17_i32 = arith.constant 17 : i32
    %3 = tpu.dynamic_rotate %2 by %c17_i32 dim 1 : vector<2x256xf32>, i32 -> vector<2x256xf32>
    %c0_2 = arith.constant 0 : index
    %c0_3 = arith.constant 0 : index
    %4 = vector.load %arg2[%c0_2, %c0_3] : memref<72x256xf32, #tpu.memory_space<vmem>>, vector<1x256xf32>
    %5 = vector.shape_cast %4 : vector<1x256xf32> to vector<256xf32>
    %6 = vector.shape_cast %5 : vector<256xf32> to vector<1x256xf32>
    %7 = vector.broadcast %6 : vector<1x256xf32> to vector<2x256xf32>
    %8 = arith.mulf %3, %7 : vector<2x256xf32>
    %9 = arith.addf %0, %8 : vector<2x256xf32>
    %c16_i32 = arith.constant 16 : i32
    %10 = tpu.dynamic_rotate %2 by %c16_i32 dim 1 : vector<2x256xf32>, i32 -> vector<2x256xf32>
    %c1 = arith.constant 1 : index
    %c0_4 = arith.constant 0 : index
    %11 = vector.load %arg2[%c1, %c0_4] : memref<72x256xf32, #tpu.memory_space<vmem>>, vector<1x256xf32>
    %12 = vector.shape_cast %11 : vector<1x256xf32> to vector<256xf32>
    %13 = vector.shape_cast %12 : vector<256xf32> to vector<1x256xf32>
    %14 = vector.broadcast %13 : vector<1x256xf32> to vector<2x256xf32>
    %15 = arith.mulf %10, %14 : vector<2x256xf32>
    %16 = arith.addf %9, %15 : vector<2x256xf32>
    %c15_i32 = arith.constant 15 : i32
    %17 = tpu.dynamic_rotate %2 by %c15_i32 dim 1 : vector<2x256xf32>, i32 -> vector<2x256xf32>
    %c2 = arith.constant 2 : index
    %c0_5 = arith.constant 0 : index
    %18 = vector.load %arg2[%c2, %c0_5] : memref<72x256xf32, #tpu.memory_space<vmem>>, vector<1x256xf32>
    %19 = vector.shape_cast %18 : vector<1x256xf32> to vector<256xf32>
    %20 = vector.shape_cast %19 : vector<256xf32> to vector<1x256xf32>
    %21 = vector.broadcast %20 : vector<1x256xf32> to vector<2x256xf32>
    %22 = arith.mulf %17, %21 : vector<2x256xf32>
    %23 = arith.addf %16, %22 : vector<2x256xf32>
    %c1_i32 = arith.constant 1 : i32
    %24 = tpu.dynamic_rotate %2 by %c1_i32 dim 1 : vector<2x256xf32>, i32 -> vector<2x256xf32>
    %c3 = arith.constant 3 : index
    %c0_6 = arith.constant 0 : index
    %25 = vector.load %arg2[%c3, %c0_6] : memref<72x256xf32, #tpu.memory_space<vmem>>, vector<1x256xf32>
    %26 = vector.shape_cast %25 : vector<1x256xf32> to vector<256xf32>
    %27 = vector.shape_cast %26 : vector<256xf32> to vector<1x256xf32>
    %28 = vector.broadcast %27 : vector<1x256xf32> to vector<2x256xf32>
    %29 = arith.mulf %24, %28 : vector<2x256xf32>
    %30 = arith.addf %23, %29 : vector<2x256xf32>
    %c4 = arith.constant 4 : index
    %c0_7 = arith.constant 0 : index
    %31 = vector.load %arg2[%c4, %c0_7] : memref<72x256xf32, #tpu.memory_space<vmem>>, vector<1x256xf32>
    %32 = vector.shape_cast %31 : vector<1x256xf32> to vector<256xf32>
    %33 = vector.shape_cast %32 : vector<256xf32> to vector<1x256xf32>
    %34 = vector.broadcast %33 : vector<1x256xf32> to vector<2x256xf32>
    %35 = arith.mulf %2, %34 : vector<2x256xf32>
    %36 = arith.addf %30, %35 : vector<2x256xf32>
    %c255_i32 = arith.constant 255 : i32
    %37 = tpu.dynamic_rotate %2 by %c255_i32 dim 1 : vector<2x256xf32>, i32 -> vector<2x256xf32>
    %c5 = arith.constant 5 : index
    %c0_8 = arith.constant 0 : index
    %38 = vector.load %arg2[%c5, %c0_8] : memref<72x256xf32, #tpu.memory_space<vmem>>, vector<1x256xf32>
    %39 = vector.shape_cast %38 : vector<1x256xf32> to vector<256xf32>
    %40 = vector.shape_cast %39 : vector<256xf32> to vector<1x256xf32>
    %41 = vector.broadcast %40 : vector<1x256xf32> to vector<2x256xf32>
    %42 = arith.mulf %37, %41 : vector<2x256xf32>
    %43 = arith.addf %36, %42 : vector<2x256xf32>
    %c241_i32 = arith.constant 241 : i32
    %44 = tpu.dynamic_rotate %2 by %c241_i32 dim 1 : vector<2x256xf32>, i32 -> vector<2x256xf32>
    %c6 = arith.constant 6 : index
    %c0_9 = arith.constant 0 : index
    %45 = vector.load %arg2[%c6, %c0_9] : memref<72x256xf32, #tpu.memory_space<vmem>>, vector<1x256xf32>
    %46 = vector.shape_cast %45 : vector<1x256xf32> to vector<256xf32>
    %47 = vector.shape_cast %46 : vector<256xf32> to vector<1x256xf32>
    %48 = vector.broadcast %47 : vector<1x256xf32> to vector<2x256xf32>
    %49 = arith.mulf %44, %48 : vector<2x256xf32>
    %50 = arith.addf %43, %49 : vector<2x256xf32>
    %c240_i32 = arith.constant 240 : i32
    %51 = tpu.dynamic_rotate %2 by %c240_i32 dim 1 : vector<2x256xf32>, i32 -> vector<2x256xf32>
    %c7 = arith.constant 7 : index
    %c0_10 = arith.constant 0 : index
    %52 = vector.load %arg2[%c7, %c0_10] : memref<72x256xf32, #tpu.memory_space<vmem>>, vector<1x256xf32>
    %53 = vector.shape_cast %52 : vector<1x256xf32> to vector<256xf32>
    %54 = vector.shape_cast %53 : vector<256xf32> to vector<1x256xf32>
    %55 = vector.broadcast %54 : vector<1x256xf32> to vector<2x256xf32>
    %56 = arith.mulf %51, %55 : vector<2x256xf32>
    %57 = arith.addf %50, %56 : vector<2x256xf32>
    %c239_i32 = arith.constant 239 : i32
    %58 = tpu.dynamic_rotate %2 by %c239_i32 dim 1 : vector<2x256xf32>, i32 -> vector<2x256xf32>
    %c8 = arith.constant 8 : index
    %c0_11 = arith.constant 0 : index
    %59 = vector.load %arg2[%c8, %c0_11] : memref<72x256xf32, #tpu.memory_space<vmem>>, vector<1x256xf32>
    %60 = vector.shape_cast %59 : vector<1x256xf32> to vector<256xf32>
    %61 = vector.shape_cast %60 : vector<256xf32> to vector<1x256xf32>
    %62 = vector.broadcast %61 : vector<1x256xf32> to vector<2x256xf32>
    %63 = arith.mulf %58, %62 : vector<2x256xf32>
    %64 = arith.addf %57, %63 : vector<2x256xf32>
    %c0_12 = arith.constant 0 : index
    %c1_13 = arith.constant 1 : index
    %c0_14 = arith.constant 0 : index
    %65 = vector.load %arg1[%c0_12, %c1_13, %c0_14] : memref<2x8x256xf32, #tpu.memory_space<vmem>>, vector<2x1x256xf32>
    %66 = vector.shape_cast %65 : vector<2x1x256xf32> to vector<2x256xf32>
    %c17_i32_15 = arith.constant 17 : i32
    %67 = tpu.dynamic_rotate %66 by %c17_i32_15 dim 1 : vector<2x256xf32>, i32 -> vector<2x256xf32>
    %c9 = arith.constant 9 : index
    %c0_16 = arith.constant 0 : index
    %68 = vector.load %arg2[%c9, %c0_16] : memref<72x256xf32, #tpu.memory_space<vmem>>, vector<1x256xf32>
    %69 = vector.shape_cast %68 : vector<1x256xf32> to vector<256xf32>
    %70 = vector.shape_cast %69 : vector<256xf32> to vector<1x256xf32>
    %71 = vector.broadcast %70 : vector<1x256xf32> to vector<2x256xf32>
    %72 = arith.mulf %67, %71 : vector<2x256xf32>
    %73 = arith.addf %64, %72 : vector<2x256xf32>
    %c16_i32_17 = arith.constant 16 : i32
    %74 = tpu.dynamic_rotate %66 by %c16_i32_17 dim 1 : vector<2x256xf32>, i32 -> vector<2x256xf32>
    %c10 = arith.constant 10 : index
    %c0_18 = arith.constant 0 : index
    %75 = vector.load %arg2[%c10, %c0_18] : memref<72x256xf32, #tpu.memory_space<vmem>>, vector<1x256xf32>
    %76 = vector.shape_cast %75 : vector<1x256xf32> to vector<256xf32>
    %77 = vector.shape_cast %76 : vector<256xf32> to vector<1x256xf32>
    %78 = vector.broadcast %77 : vector<1x256xf32> to vector<2x256xf32>
    %79 = arith.mulf %74, %78 : vector<2x256xf32>
    %80 = arith.addf %73, %79 : vector<2x256xf32>
    %c15_i32_19 = arith.constant 15 : i32
    %81 = tpu.dynamic_rotate %66 by %c15_i32_19 dim 1 : vector<2x256xf32>, i32 -> vector<2x256xf32>
    %c11 = arith.constant 11 : index
    %c0_20 = arith.constant 0 : index
    %82 = vector.load %arg2[%c11, %c0_20] : memref<72x256xf32, #tpu.memory_space<vmem>>, vector<1x256xf32>
    %83 = vector.shape_cast %82 : vector<1x256xf32> to vector<256xf32>
    %84 = vector.shape_cast %83 : vector<256xf32> to vector<1x256xf32>
    %85 = vector.broadcast %84 : vector<1x256xf32> to vector<2x256xf32>
    %86 = arith.mulf %81, %85 : vector<2x256xf32>
    %87 = arith.addf %80, %86 : vector<2x256xf32>
    %c1_i32_21 = arith.constant 1 : i32
    %88 = tpu.dynamic_rotate %66 by %c1_i32_21 dim 1 : vector<2x256xf32>, i32 -> vector<2x256xf32>
    %c12 = arith.constant 12 : index
    %c0_22 = arith.constant 0 : index
    %89 = vector.load %arg2[%c12, %c0_22] : memref<72x256xf32, #tpu.memory_space<vmem>>, vector<1x256xf32>
    %90 = vector.shape_cast %89 : vector<1x256xf32> to vector<256xf32>
    %91 = vector.shape_cast %90 : vector<256xf32> to vector<1x256xf32>
    %92 = vector.broadcast %91 : vector<1x256xf32> to vector<2x256xf32>
    %93 = arith.mulf %88, %92 : vector<2x256xf32>
    %94 = arith.addf %87, %93 : vector<2x256xf32>
    %c13 = arith.constant 13 : index
    %c0_23 = arith.constant 0 : index
    %95 = vector.load %arg2[%c13, %c0_23] : memref<72x256xf32, #tpu.memory_space<vmem>>, vector<1x256xf32>
    %96 = vector.shape_cast %95 : vector<1x256xf32> to vector<256xf32>
    %97 = vector.shape_cast %96 : vector<256xf32> to vector<1x256xf32>
    %98 = vector.broadcast %97 : vector<1x256xf32> to vector<2x256xf32>
    %99 = arith.mulf %66, %98 : vector<2x256xf32>
    %100 = arith.addf %94, %99 : vector<2x256xf32>
    %c255_i32_24 = arith.constant 255 : i32
    %101 = tpu.dynamic_rotate %66 by %c255_i32_24 dim 1 : vector<2x256xf32>, i32 -> vector<2x256xf32>
    %c14 = arith.constant 14 : index
    %c0_25 = arith.constant 0 : index
    %102 = vector.load %arg2[%c14, %c0_25] : memref<72x256xf32, #tpu.memory_space<vmem>>, vector<1x256xf32>
    %103 = vector.shape_cast %102 : vector<1x256xf32> to vector<256xf32>
    %104 = vector.shape_cast %103 : vector<256xf32> to vector<1x256xf32>
    %105 = vector.broadcast %104 : vector<1x256xf32> to vector<2x256xf32>
    %106 = arith.mulf %101, %105 : vector<2x256xf32>
    %107 = arith.addf %100, %106 : vector<2x256xf32>
    %c241_i32_26 = arith.constant 241 : i32
    %108 = tpu.dynamic_rotate %66 by %c241_i32_26 dim 1 : vector<2x256xf32>, i32 -> vector<2x256xf32>
    %c15 = arith.constant 15 : index
    %c0_27 = arith.constant 0 : index
    %109 = vector.load %arg2[%c15, %c0_27] : memref<72x256xf32, #tpu.memory_space<vmem>>, vector<1x256xf32>
    %110 = vector.shape_cast %109 : vector<1x256xf32> to vector<256xf32>
    %111 = vector.shape_cast %110 : vector<256xf32> to vector<1x256xf32>
    %112 = vector.broadcast %111 : vector<1x256xf32> to vector<2x256xf32>
    %113 = arith.mulf %108, %112 : vector<2x256xf32>
    %114 = arith.addf %107, %113 : vector<2x256xf32>
    %c240_i32_28 = arith.constant 240 : i32
    %115 = tpu.dynamic_rotate %66 by %c240_i32_28 dim 1 : vector<2x256xf32>, i32 -> vector<2x256xf32>
    %c16 = arith.constant 16 : index
    %c0_29 = arith.constant 0 : index
    %116 = vector.load %arg2[%c16, %c0_29] : memref<72x256xf32, #tpu.memory_space<vmem>>, vector<1x256xf32>
    %117 = vector.shape_cast %116 : vector<1x256xf32> to vector<256xf32>
    %118 = vector.shape_cast %117 : vector<256xf32> to vector<1x256xf32>
    %119 = vector.broadcast %118 : vector<1x256xf32> to vector<2x256xf32>
    %120 = arith.mulf %115, %119 : vector<2x256xf32>
    %121 = arith.addf %114, %120 : vector<2x256xf32>
    %c239_i32_30 = arith.constant 239 : i32
    %122 = tpu.dynamic_rotate %66 by %c239_i32_30 dim 1 : vector<2x256xf32>, i32 -> vector<2x256xf32>
    %c17 = arith.constant 17 : index
    %c0_31 = arith.constant 0 : index
    %123 = vector.load %arg2[%c17, %c0_31] : memref<72x256xf32, #tpu.memory_space<vmem>>, vector<1x256xf32>
    %124 = vector.shape_cast %123 : vector<1x256xf32> to vector<256xf32>
    %125 = vector.shape_cast %124 : vector<256xf32> to vector<1x256xf32>
    %126 = vector.broadcast %125 : vector<1x256xf32> to vector<2x256xf32>
    %127 = arith.mulf %122, %126 : vector<2x256xf32>
    %128 = arith.addf %121, %127 : vector<2x256xf32>
    %c0_32 = arith.constant 0 : index
    %c2_33 = arith.constant 2 : index
    %c0_34 = arith.constant 0 : index
    %129 = vector.load %arg1[%c0_32, %c2_33, %c0_34] : memref<2x8x256xf32, #tpu.memory_space<vmem>>, vector<2x1x256xf32>
    %130 = vector.shape_cast %129 : vector<2x1x256xf32> to vector<2x256xf32>
    %c17_i32_35 = arith.constant 17 : i32
    %131 = tpu.dynamic_rotate %130 by %c17_i32_35 dim 1 : vector<2x256xf32>, i32 -> vector<2x256xf32>
    %c18 = arith.constant 18 : index
    %c0_36 = arith.constant 0 : index
    %132 = vector.load %arg2[%c18, %c0_36] : memref<72x256xf32, #tpu.memory_space<vmem>>, vector<1x256xf32>
    %133 = vector.shape_cast %132 : vector<1x256xf32> to vector<256xf32>
    %134 = vector.shape_cast %133 : vector<256xf32> to vector<1x256xf32>
    %135 = vector.broadcast %134 : vector<1x256xf32> to vector<2x256xf32>
    %136 = arith.mulf %131, %135 : vector<2x256xf32>
    %137 = arith.addf %128, %136 : vector<2x256xf32>
    %c16_i32_37 = arith.constant 16 : i32
    %138 = tpu.dynamic_rotate %130 by %c16_i32_37 dim 1 : vector<2x256xf32>, i32 -> vector<2x256xf32>
    %c19 = arith.constant 19 : index
    %c0_38 = arith.constant 0 : index
    %139 = vector.load %arg2[%c19, %c0_38] : memref<72x256xf32, #tpu.memory_space<vmem>>, vector<1x256xf32>
    %140 = vector.shape_cast %139 : vector<1x256xf32> to vector<256xf32>
    %141 = vector.shape_cast %140 : vector<256xf32> to vector<1x256xf32>
    %142 = vector.broadcast %141 : vector<1x256xf32> to vector<2x256xf32>
    %143 = arith.mulf %138, %142 : vector<2x256xf32>
    %144 = arith.addf %137, %143 : vector<2x256xf32>
    %c15_i32_39 = arith.constant 15 : i32
    %145 = tpu.dynamic_rotate %130 by %c15_i32_39 dim 1 : vector<2x256xf32>, i32 -> vector<2x256xf32>
    %c20 = arith.constant 20 : index
    %c0_40 = arith.constant 0 : index
    %146 = vector.load %arg2[%c20, %c0_40] : memref<72x256xf32, #tpu.memory_space<vmem>>, vector<1x256xf32>
    %147 = vector.shape_cast %146 : vector<1x256xf32> to vector<256xf32>
    %148 = vector.shape_cast %147 : vector<256xf32> to vector<1x256xf32>
    %149 = vector.broadcast %148 : vector<1x256xf32> to vector<2x256xf32>
    %150 = arith.mulf %145, %149 : vector<2x256xf32>
    %151 = arith.addf %144, %150 : vector<2x256xf32>
    %c1_i32_41 = arith.constant 1 : i32
    %152 = tpu.dynamic_rotate %130 by %c1_i32_41 dim 1 : vector<2x256xf32>, i32 -> vector<2x256xf32>
    %c21 = arith.constant 21 : index
    %c0_42 = arith.constant 0 : index
    %153 = vector.load %arg2[%c21, %c0_42] : memref<72x256xf32, #tpu.memory_space<vmem>>, vector<1x256xf32>
    %154 = vector.shape_cast %153 : vector<1x256xf32> to vector<256xf32>
    %155 = vector.shape_cast %154 : vector<256xf32> to vector<1x256xf32>
    %156 = vector.broadcast %155 : vector<1x256xf32> to vector<2x256xf32>
    %157 = arith.mulf %152, %156 : vector<2x256xf32>
    %158 = arith.addf %151, %157 : vector<2x256xf32>
    %c22 = arith.constant 22 : index
    %c0_43 = arith.constant 0 : index
    %159 = vector.load %arg2[%c22, %c0_43] : memref<72x256xf32, #tpu.memory_space<vmem>>, vector<1x256xf32>
    %160 = vector.shape_cast %159 : vector<1x256xf32> to vector<256xf32>
    %161 = vector.shape_cast %160 : vector<256xf32> to vector<1x256xf32>
    %162 = vector.broadcast %161 : vector<1x256xf32> to vector<2x256xf32>
    %163 = arith.mulf %130, %162 : vector<2x256xf32>
    %164 = arith.addf %158, %163 : vector<2x256xf32>
    %c255_i32_44 = arith.constant 255 : i32
    %165 = tpu.dynamic_rotate %130 by %c255_i32_44 dim 1 : vector<2x256xf32>, i32 -> vector<2x256xf32>
    %c23 = arith.constant 23 : index
    %c0_45 = arith.constant 0 : index
    %166 = vector.load %arg2[%c23, %c0_45] : memref<72x256xf32, #tpu.memory_space<vmem>>, vector<1x256xf32>
    %167 = vector.shape_cast %166 : vector<1x256xf32> to vector<256xf32>
    %168 = vector.shape_cast %167 : vector<256xf32> to vector<1x256xf32>
    %169 = vector.broadcast %168 : vector<1x256xf32> to vector<2x256xf32>
    %170 = arith.mulf %165, %169 : vector<2x256xf32>
    %171 = arith.addf %164, %170 : vector<2x256xf32>
    %c241_i32_46 = arith.constant 241 : i32
    %172 = tpu.dynamic_rotate %130 by %c241_i32_46 dim 1 : vector<2x256xf32>, i32 -> vector<2x256xf32>
    %c24 = arith.constant 24 : index
    %c0_47 = arith.constant 0 : index
    %173 = vector.load %arg2[%c24, %c0_47] : memref<72x256xf32, #tpu.memory_space<vmem>>, vector<1x256xf32>
    %174 = vector.shape_cast %173 : vector<1x256xf32> to vector<256xf32>
    %175 = vector.shape_cast %174 : vector<256xf32> to vector<1x256xf32>
    %176 = vector.broadcast %175 : vector<1x256xf32> to vector<2x256xf32>
    %177 = arith.mulf %172, %176 : vector<2x256xf32>
    %178 = arith.addf %171, %177 : vector<2x256xf32>
    %c240_i32_48 = arith.constant 240 : i32
    %179 = tpu.dynamic_rotate %130 by %c240_i32_48 dim 1 : vector<2x256xf32>, i32 -> vector<2x256xf32>
    %c25 = arith.constant 25 : index
    %c0_49 = arith.constant 0 : index
    %180 = vector.load %arg2[%c25, %c0_49] : memref<72x256xf32, #tpu.memory_space<vmem>>, vector<1x256xf32>
    %181 = vector.shape_cast %180 : vector<1x256xf32> to vector<256xf32>
    %182 = vector.shape_cast %181 : vector<256xf32> to vector<1x256xf32>
    %183 = vector.broadcast %182 : vector<1x256xf32> to vector<2x256xf32>
    %184 = arith.mulf %179, %183 : vector<2x256xf32>
    %185 = arith.addf %178, %184 : vector<2x256xf32>
    %c239_i32_50 = arith.constant 239 : i32
    %186 = tpu.dynamic_rotate %130 by %c239_i32_50 dim 1 : vector<2x256xf32>, i32 -> vector<2x256xf32>
    %c26 = arith.constant 26 : index
    %c0_51 = arith.constant 0 : index
    %187 = vector.load %arg2[%c26, %c0_51] : memref<72x256xf32, #tpu.memory_space<vmem>>, vector<1x256xf32>
    %188 = vector.shape_cast %187 : vector<1x256xf32> to vector<256xf32>
    %189 = vector.shape_cast %188 : vector<256xf32> to vector<1x256xf32>
    %190 = vector.broadcast %189 : vector<1x256xf32> to vector<2x256xf32>
    %191 = arith.mulf %186, %190 : vector<2x256xf32>
    %192 = arith.addf %185, %191 : vector<2x256xf32>
    %c0_52 = arith.constant 0 : index
    %c3_53 = arith.constant 3 : index
    %c0_54 = arith.constant 0 : index
    %193 = vector.load %arg1[%c0_52, %c3_53, %c0_54] : memref<2x8x256xf32, #tpu.memory_space<vmem>>, vector<2x1x256xf32>
    %194 = vector.shape_cast %193 : vector<2x1x256xf32> to vector<2x256xf32>
    %c17_i32_55 = arith.constant 17 : i32
    %195 = tpu.dynamic_rotate %194 by %c17_i32_55 dim 1 : vector<2x256xf32>, i32 -> vector<2x256xf32>
    %c27 = arith.constant 27 : index
    %c0_56 = arith.constant 0 : index
    %196 = vector.load %arg2[%c27, %c0_56] : memref<72x256xf32, #tpu.memory_space<vmem>>, vector<1x256xf32>
    %197 = vector.shape_cast %196 : vector<1x256xf32> to vector<256xf32>
    %198 = vector.shape_cast %197 : vector<256xf32> to vector<1x256xf32>
    %199 = vector.broadcast %198 : vector<1x256xf32> to vector<2x256xf32>
    %200 = arith.mulf %195, %199 : vector<2x256xf32>
    %201 = arith.addf %192, %200 : vector<2x256xf32>
    %c16_i32_57 = arith.constant 16 : i32
    %202 = tpu.dynamic_rotate %194 by %c16_i32_57 dim 1 : vector<2x256xf32>, i32 -> vector<2x256xf32>
    %c28 = arith.constant 28 : index
    %c0_58 = arith.constant 0 : index
    %203 = vector.load %arg2[%c28, %c0_58] : memref<72x256xf32, #tpu.memory_space<vmem>>, vector<1x256xf32>
    %204 = vector.shape_cast %203 : vector<1x256xf32> to vector<256xf32>
    %205 = vector.shape_cast %204 : vector<256xf32> to vector<1x256xf32>
    %206 = vector.broadcast %205 : vector<1x256xf32> to vector<2x256xf32>
    %207 = arith.mulf %202, %206 : vector<2x256xf32>
    %208 = arith.addf %201, %207 : vector<2x256xf32>
    %c15_i32_59 = arith.constant 15 : i32
    %209 = tpu.dynamic_rotate %194 by %c15_i32_59 dim 1 : vector<2x256xf32>, i32 -> vector<2x256xf32>
    %c29 = arith.constant 29 : index
    %c0_60 = arith.constant 0 : index
    %210 = vector.load %arg2[%c29, %c0_60] : memref<72x256xf32, #tpu.memory_space<vmem>>, vector<1x256xf32>
    %211 = vector.shape_cast %210 : vector<1x256xf32> to vector<256xf32>
    %212 = vector.shape_cast %211 : vector<256xf32> to vector<1x256xf32>
    %213 = vector.broadcast %212 : vector<1x256xf32> to vector<2x256xf32>
    %214 = arith.mulf %209, %213 : vector<2x256xf32>
    %215 = arith.addf %208, %214 : vector<2x256xf32>
    %c1_i32_61 = arith.constant 1 : i32
    %216 = tpu.dynamic_rotate %194 by %c1_i32_61 dim 1 : vector<2x256xf32>, i32 -> vector<2x256xf32>
    %c30 = arith.constant 30 : index
    %c0_62 = arith.constant 0 : index
    %217 = vector.load %arg2[%c30, %c0_62] : memref<72x256xf32, #tpu.memory_space<vmem>>, vector<1x256xf32>
    %218 = vector.shape_cast %217 : vector<1x256xf32> to vector<256xf32>
    %219 = vector.shape_cast %218 : vector<256xf32> to vector<1x256xf32>
    %220 = vector.broadcast %219 : vector<1x256xf32> to vector<2x256xf32>
    %221 = arith.mulf %216, %220 : vector<2x256xf32>
    %222 = arith.addf %215, %221 : vector<2x256xf32>
    %c31 = arith.constant 31 : index
    %c0_63 = arith.constant 0 : index
    %223 = vector.load %arg2[%c31, %c0_63] : memref<72x256xf32, #tpu.memory_space<vmem>>, vector<1x256xf32>
    %224 = vector.shape_cast %223 : vector<1x256xf32> to vector<256xf32>
    %225 = vector.shape_cast %224 : vector<256xf32> to vector<1x256xf32>
    %226 = vector.broadcast %225 : vector<1x256xf32> to vector<2x256xf32>
    %227 = arith.mulf %194, %226 : vector<2x256xf32>
    %228 = arith.addf %222, %227 : vector<2x256xf32>
    %c255_i32_64 = arith.constant 255 : i32
    %229 = tpu.dynamic_rotate %194 by %c255_i32_64 dim 1 : vector<2x256xf32>, i32 -> vector<2x256xf32>
    %c32 = arith.constant 32 : index
    %c0_65 = arith.constant 0 : index
    %230 = vector.load %arg2[%c32, %c0_65] : memref<72x256xf32, #tpu.memory_space<vmem>>, vector<1x256xf32>
    %231 = vector.shape_cast %230 : vector<1x256xf32> to vector<256xf32>
    %232 = vector.shape_cast %231 : vector<256xf32> to vector<1x256xf32>
    %233 = vector.broadcast %232 : vector<1x256xf32> to vector<2x256xf32>
    %234 = arith.mulf %229, %233 : vector<2x256xf32>
    %235 = arith.addf %228, %234 : vector<2x256xf32>
    %c241_i32_66 = arith.constant 241 : i32
    %236 = tpu.dynamic_rotate %194 by %c241_i32_66 dim 1 : vector<2x256xf32>, i32 -> vector<2x256xf32>
    %c33 = arith.constant 33 : index
    %c0_67 = arith.constant 0 : index
    %237 = vector.load %arg2[%c33, %c0_67] : memref<72x256xf32, #tpu.memory_space<vmem>>, vector<1x256xf32>
    %238 = vector.shape_cast %237 : vector<1x256xf32> to vector<256xf32>
    %239 = vector.shape_cast %238 : vector<256xf32> to vector<1x256xf32>
    %240 = vector.broadcast %239 : vector<1x256xf32> to vector<2x256xf32>
    %241 = arith.mulf %236, %240 : vector<2x256xf32>
    %242 = arith.addf %235, %241 : vector<2x256xf32>
    %c240_i32_68 = arith.constant 240 : i32
    %243 = tpu.dynamic_rotate %194 by %c240_i32_68 dim 1 : vector<2x256xf32>, i32 -> vector<2x256xf32>
    %c34 = arith.constant 34 : index
    %c0_69 = arith.constant 0 : index
    %244 = vector.load %arg2[%c34, %c0_69] : memref<72x256xf32, #tpu.memory_space<vmem>>, vector<1x256xf32>
    %245 = vector.shape_cast %244 : vector<1x256xf32> to vector<256xf32>
    %246 = vector.shape_cast %245 : vector<256xf32> to vector<1x256xf32>
    %247 = vector.broadcast %246 : vector<1x256xf32> to vector<2x256xf32>
    %248 = arith.mulf %243, %247 : vector<2x256xf32>
    %249 = arith.addf %242, %248 : vector<2x256xf32>
    %c239_i32_70 = arith.constant 239 : i32
    %250 = tpu.dynamic_rotate %194 by %c239_i32_70 dim 1 : vector<2x256xf32>, i32 -> vector<2x256xf32>
    %c35 = arith.constant 35 : index
    %c0_71 = arith.constant 0 : index
    %251 = vector.load %arg2[%c35, %c0_71] : memref<72x256xf32, #tpu.memory_space<vmem>>, vector<1x256xf32>
    %252 = vector.shape_cast %251 : vector<1x256xf32> to vector<256xf32>
    %253 = vector.shape_cast %252 : vector<256xf32> to vector<1x256xf32>
    %254 = vector.broadcast %253 : vector<1x256xf32> to vector<2x256xf32>
    %255 = arith.mulf %250, %254 : vector<2x256xf32>
    %256 = arith.addf %249, %255 : vector<2x256xf32>
    %c0_72 = arith.constant 0 : index
    %c4_73 = arith.constant 4 : index
    %c0_74 = arith.constant 0 : index
    %257 = vector.load %arg1[%c0_72, %c4_73, %c0_74] : memref<2x8x256xf32, #tpu.memory_space<vmem>>, vector<2x1x256xf32>
    %258 = vector.shape_cast %257 : vector<2x1x256xf32> to vector<2x256xf32>
    %c17_i32_75 = arith.constant 17 : i32
    %259 = tpu.dynamic_rotate %258 by %c17_i32_75 dim 1 : vector<2x256xf32>, i32 -> vector<2x256xf32>
    %c36 = arith.constant 36 : index
    %c0_76 = arith.constant 0 : index
    %260 = vector.load %arg2[%c36, %c0_76] : memref<72x256xf32, #tpu.memory_space<vmem>>, vector<1x256xf32>
    %261 = vector.shape_cast %260 : vector<1x256xf32> to vector<256xf32>
    %262 = vector.shape_cast %261 : vector<256xf32> to vector<1x256xf32>
    %263 = vector.broadcast %262 : vector<1x256xf32> to vector<2x256xf32>
    %264 = arith.mulf %259, %263 : vector<2x256xf32>
    %265 = arith.addf %256, %264 : vector<2x256xf32>
    %c16_i32_77 = arith.constant 16 : i32
    %266 = tpu.dynamic_rotate %258 by %c16_i32_77 dim 1 : vector<2x256xf32>, i32 -> vector<2x256xf32>
    %c37 = arith.constant 37 : index
    %c0_78 = arith.constant 0 : index
    %267 = vector.load %arg2[%c37, %c0_78] : memref<72x256xf32, #tpu.memory_space<vmem>>, vector<1x256xf32>
    %268 = vector.shape_cast %267 : vector<1x256xf32> to vector<256xf32>
    %269 = vector.shape_cast %268 : vector<256xf32> to vector<1x256xf32>
    %270 = vector.broadcast %269 : vector<1x256xf32> to vector<2x256xf32>
    %271 = arith.mulf %266, %270 : vector<2x256xf32>
    %272 = arith.addf %265, %271 : vector<2x256xf32>
    %c15_i32_79 = arith.constant 15 : i32
    %273 = tpu.dynamic_rotate %258 by %c15_i32_79 dim 1 : vector<2x256xf32>, i32 -> vector<2x256xf32>
    %c38 = arith.constant 38 : index
    %c0_80 = arith.constant 0 : index
    %274 = vector.load %arg2[%c38, %c0_80] : memref<72x256xf32, #tpu.memory_space<vmem>>, vector<1x256xf32>
    %275 = vector.shape_cast %274 : vector<1x256xf32> to vector<256xf32>
    %276 = vector.shape_cast %275 : vector<256xf32> to vector<1x256xf32>
    %277 = vector.broadcast %276 : vector<1x256xf32> to vector<2x256xf32>
    %278 = arith.mulf %273, %277 : vector<2x256xf32>
    %279 = arith.addf %272, %278 : vector<2x256xf32>
    %c1_i32_81 = arith.constant 1 : i32
    %280 = tpu.dynamic_rotate %258 by %c1_i32_81 dim 1 : vector<2x256xf32>, i32 -> vector<2x256xf32>
    %c39 = arith.constant 39 : index
    %c0_82 = arith.constant 0 : index
    %281 = vector.load %arg2[%c39, %c0_82] : memref<72x256xf32, #tpu.memory_space<vmem>>, vector<1x256xf32>
    %282 = vector.shape_cast %281 : vector<1x256xf32> to vector<256xf32>
    %283 = vector.shape_cast %282 : vector<256xf32> to vector<1x256xf32>
    %284 = vector.broadcast %283 : vector<1x256xf32> to vector<2x256xf32>
    %285 = arith.mulf %280, %284 : vector<2x256xf32>
    %286 = arith.addf %279, %285 : vector<2x256xf32>
    %c40 = arith.constant 40 : index
    %c0_83 = arith.constant 0 : index
    %287 = vector.load %arg2[%c40, %c0_83] : memref<72x256xf32, #tpu.memory_space<vmem>>, vector<1x256xf32>
    %288 = vector.shape_cast %287 : vector<1x256xf32> to vector<256xf32>
    %289 = vector.shape_cast %288 : vector<256xf32> to vector<1x256xf32>
    %290 = vector.broadcast %289 : vector<1x256xf32> to vector<2x256xf32>
    %291 = arith.mulf %258, %290 : vector<2x256xf32>
    %292 = arith.addf %286, %291 : vector<2x256xf32>
    %c255_i32_84 = arith.constant 255 : i32
    %293 = tpu.dynamic_rotate %258 by %c255_i32_84 dim 1 : vector<2x256xf32>, i32 -> vector<2x256xf32>
    %c41 = arith.constant 41 : index
    %c0_85 = arith.constant 0 : index
    %294 = vector.load %arg2[%c41, %c0_85] : memref<72x256xf32, #tpu.memory_space<vmem>>, vector<1x256xf32>
    %295 = vector.shape_cast %294 : vector<1x256xf32> to vector<256xf32>
    %296 = vector.shape_cast %295 : vector<256xf32> to vector<1x256xf32>
    %297 = vector.broadcast %296 : vector<1x256xf32> to vector<2x256xf32>
    %298 = arith.mulf %293, %297 : vector<2x256xf32>
    %299 = arith.addf %292, %298 : vector<2x256xf32>
    %c241_i32_86 = arith.constant 241 : i32
    %300 = tpu.dynamic_rotate %258 by %c241_i32_86 dim 1 : vector<2x256xf32>, i32 -> vector<2x256xf32>
    %c42 = arith.constant 42 : index
    %c0_87 = arith.constant 0 : index
    %301 = vector.load %arg2[%c42, %c0_87] : memref<72x256xf32, #tpu.memory_space<vmem>>, vector<1x256xf32>
    %302 = vector.shape_cast %301 : vector<1x256xf32> to vector<256xf32>
    %303 = vector.shape_cast %302 : vector<256xf32> to vector<1x256xf32>
    %304 = vector.broadcast %303 : vector<1x256xf32> to vector<2x256xf32>
    %305 = arith.mulf %300, %304 : vector<2x256xf32>
    %306 = arith.addf %299, %305 : vector<2x256xf32>
    %c240_i32_88 = arith.constant 240 : i32
    %307 = tpu.dynamic_rotate %258 by %c240_i32_88 dim 1 : vector<2x256xf32>, i32 -> vector<2x256xf32>
    %c43 = arith.constant 43 : index
    %c0_89 = arith.constant 0 : index
    %308 = vector.load %arg2[%c43, %c0_89] : memref<72x256xf32, #tpu.memory_space<vmem>>, vector<1x256xf32>
    %309 = vector.shape_cast %308 : vector<1x256xf32> to vector<256xf32>
    %310 = vector.shape_cast %309 : vector<256xf32> to vector<1x256xf32>
    %311 = vector.broadcast %310 : vector<1x256xf32> to vector<2x256xf32>
    %312 = arith.mulf %307, %311 : vector<2x256xf32>
    %313 = arith.addf %306, %312 : vector<2x256xf32>
    %c239_i32_90 = arith.constant 239 : i32
    %314 = tpu.dynamic_rotate %258 by %c239_i32_90 dim 1 : vector<2x256xf32>, i32 -> vector<2x256xf32>
    %c44 = arith.constant 44 : index
    %c0_91 = arith.constant 0 : index
    %315 = vector.load %arg2[%c44, %c0_91] : memref<72x256xf32, #tpu.memory_space<vmem>>, vector<1x256xf32>
    %316 = vector.shape_cast %315 : vector<1x256xf32> to vector<256xf32>
    %317 = vector.shape_cast %316 : vector<256xf32> to vector<1x256xf32>
    %318 = vector.broadcast %317 : vector<1x256xf32> to vector<2x256xf32>
    %319 = arith.mulf %314, %318 : vector<2x256xf32>
    %320 = arith.addf %313, %319 : vector<2x256xf32>
    %c0_92 = arith.constant 0 : index
    %c5_93 = arith.constant 5 : index
    %c0_94 = arith.constant 0 : index
    %321 = vector.load %arg1[%c0_92, %c5_93, %c0_94] : memref<2x8x256xf32, #tpu.memory_space<vmem>>, vector<2x1x256xf32>
    %322 = vector.shape_cast %321 : vector<2x1x256xf32> to vector<2x256xf32>
    %c17_i32_95 = arith.constant 17 : i32
    %323 = tpu.dynamic_rotate %322 by %c17_i32_95 dim 1 : vector<2x256xf32>, i32 -> vector<2x256xf32>
    %c45 = arith.constant 45 : index
    %c0_96 = arith.constant 0 : index
    %324 = vector.load %arg2[%c45, %c0_96] : memref<72x256xf32, #tpu.memory_space<vmem>>, vector<1x256xf32>
    %325 = vector.shape_cast %324 : vector<1x256xf32> to vector<256xf32>
    %326 = vector.shape_cast %325 : vector<256xf32> to vector<1x256xf32>
    %327 = vector.broadcast %326 : vector<1x256xf32> to vector<2x256xf32>
    %328 = arith.mulf %323, %327 : vector<2x256xf32>
    %329 = arith.addf %320, %328 : vector<2x256xf32>
    %c16_i32_97 = arith.constant 16 : i32
    %330 = tpu.dynamic_rotate %322 by %c16_i32_97 dim 1 : vector<2x256xf32>, i32 -> vector<2x256xf32>
    %c46 = arith.constant 46 : index
    %c0_98 = arith.constant 0 : index
    %331 = vector.load %arg2[%c46, %c0_98] : memref<72x256xf32, #tpu.memory_space<vmem>>, vector<1x256xf32>
    %332 = vector.shape_cast %331 : vector<1x256xf32> to vector<256xf32>
    %333 = vector.shape_cast %332 : vector<256xf32> to vector<1x256xf32>
    %334 = vector.broadcast %333 : vector<1x256xf32> to vector<2x256xf32>
    %335 = arith.mulf %330, %334 : vector<2x256xf32>
    %336 = arith.addf %329, %335 : vector<2x256xf32>
    %c15_i32_99 = arith.constant 15 : i32
    %337 = tpu.dynamic_rotate %322 by %c15_i32_99 dim 1 : vector<2x256xf32>, i32 -> vector<2x256xf32>
    %c47 = arith.constant 47 : index
    %c0_100 = arith.constant 0 : index
    %338 = vector.load %arg2[%c47, %c0_100] : memref<72x256xf32, #tpu.memory_space<vmem>>, vector<1x256xf32>
    %339 = vector.shape_cast %338 : vector<1x256xf32> to vector<256xf32>
    %340 = vector.shape_cast %339 : vector<256xf32> to vector<1x256xf32>
    %341 = vector.broadcast %340 : vector<1x256xf32> to vector<2x256xf32>
    %342 = arith.mulf %337, %341 : vector<2x256xf32>
    %343 = arith.addf %336, %342 : vector<2x256xf32>
    %c1_i32_101 = arith.constant 1 : i32
    %344 = tpu.dynamic_rotate %322 by %c1_i32_101 dim 1 : vector<2x256xf32>, i32 -> vector<2x256xf32>
    %c48 = arith.constant 48 : index
    %c0_102 = arith.constant 0 : index
    %345 = vector.load %arg2[%c48, %c0_102] : memref<72x256xf32, #tpu.memory_space<vmem>>, vector<1x256xf32>
    %346 = vector.shape_cast %345 : vector<1x256xf32> to vector<256xf32>
    %347 = vector.shape_cast %346 : vector<256xf32> to vector<1x256xf32>
    %348 = vector.broadcast %347 : vector<1x256xf32> to vector<2x256xf32>
    %349 = arith.mulf %344, %348 : vector<2x256xf32>
    %350 = arith.addf %343, %349 : vector<2x256xf32>
    %c49 = arith.constant 49 : index
    %c0_103 = arith.constant 0 : index
    %351 = vector.load %arg2[%c49, %c0_103] : memref<72x256xf32, #tpu.memory_space<vmem>>, vector<1x256xf32>
    %352 = vector.shape_cast %351 : vector<1x256xf32> to vector<256xf32>
    %353 = vector.shape_cast %352 : vector<256xf32> to vector<1x256xf32>
    %354 = vector.broadcast %353 : vector<1x256xf32> to vector<2x256xf32>
    %355 = arith.mulf %322, %354 : vector<2x256xf32>
    %356 = arith.addf %350, %355 : vector<2x256xf32>
    %c255_i32_104 = arith.constant 255 : i32
    %357 = tpu.dynamic_rotate %322 by %c255_i32_104 dim 1 : vector<2x256xf32>, i32 -> vector<2x256xf32>
    %c50 = arith.constant 50 : index
    %c0_105 = arith.constant 0 : index
    %358 = vector.load %arg2[%c50, %c0_105] : memref<72x256xf32, #tpu.memory_space<vmem>>, vector<1x256xf32>
    %359 = vector.shape_cast %358 : vector<1x256xf32> to vector<256xf32>
    %360 = vector.shape_cast %359 : vector<256xf32> to vector<1x256xf32>
    %361 = vector.broadcast %360 : vector<1x256xf32> to vector<2x256xf32>
    %362 = arith.mulf %357, %361 : vector<2x256xf32>
    %363 = arith.addf %356, %362 : vector<2x256xf32>
    %c241_i32_106 = arith.constant 241 : i32
    %364 = tpu.dynamic_rotate %322 by %c241_i32_106 dim 1 : vector<2x256xf32>, i32 -> vector<2x256xf32>
    %c51 = arith.constant 51 : index
    %c0_107 = arith.constant 0 : index
    %365 = vector.load %arg2[%c51, %c0_107] : memref<72x256xf32, #tpu.memory_space<vmem>>, vector<1x256xf32>
    %366 = vector.shape_cast %365 : vector<1x256xf32> to vector<256xf32>
    %367 = vector.shape_cast %366 : vector<256xf32> to vector<1x256xf32>
    %368 = vector.broadcast %367 : vector<1x256xf32> to vector<2x256xf32>
    %369 = arith.mulf %364, %368 : vector<2x256xf32>
    %370 = arith.addf %363, %369 : vector<2x256xf32>
    %c240_i32_108 = arith.constant 240 : i32
    %371 = tpu.dynamic_rotate %322 by %c240_i32_108 dim 1 : vector<2x256xf32>, i32 -> vector<2x256xf32>
    %c52 = arith.constant 52 : index
    %c0_109 = arith.constant 0 : index
    %372 = vector.load %arg2[%c52, %c0_109] : memref<72x256xf32, #tpu.memory_space<vmem>>, vector<1x256xf32>
    %373 = vector.shape_cast %372 : vector<1x256xf32> to vector<256xf32>
    %374 = vector.shape_cast %373 : vector<256xf32> to vector<1x256xf32>
    %375 = vector.broadcast %374 : vector<1x256xf32> to vector<2x256xf32>
    %376 = arith.mulf %371, %375 : vector<2x256xf32>
    %377 = arith.addf %370, %376 : vector<2x256xf32>
    %c239_i32_110 = arith.constant 239 : i32
    %378 = tpu.dynamic_rotate %322 by %c239_i32_110 dim 1 : vector<2x256xf32>, i32 -> vector<2x256xf32>
    %c53 = arith.constant 53 : index
    %c0_111 = arith.constant 0 : index
    %379 = vector.load %arg2[%c53, %c0_111] : memref<72x256xf32, #tpu.memory_space<vmem>>, vector<1x256xf32>
    %380 = vector.shape_cast %379 : vector<1x256xf32> to vector<256xf32>
    %381 = vector.shape_cast %380 : vector<256xf32> to vector<1x256xf32>
    %382 = vector.broadcast %381 : vector<1x256xf32> to vector<2x256xf32>
    %383 = arith.mulf %378, %382 : vector<2x256xf32>
    %384 = arith.addf %377, %383 : vector<2x256xf32>
    %c0_112 = arith.constant 0 : index
    %c6_113 = arith.constant 6 : index
    %c0_114 = arith.constant 0 : index
    %385 = vector.load %arg1[%c0_112, %c6_113, %c0_114] : memref<2x8x256xf32, #tpu.memory_space<vmem>>, vector<2x1x256xf32>
    %386 = vector.shape_cast %385 : vector<2x1x256xf32> to vector<2x256xf32>
    %c17_i32_115 = arith.constant 17 : i32
    %387 = tpu.dynamic_rotate %386 by %c17_i32_115 dim 1 : vector<2x256xf32>, i32 -> vector<2x256xf32>
    %c54 = arith.constant 54 : index
    %c0_116 = arith.constant 0 : index
    %388 = vector.load %arg2[%c54, %c0_116] : memref<72x256xf32, #tpu.memory_space<vmem>>, vector<1x256xf32>
    %389 = vector.shape_cast %388 : vector<1x256xf32> to vector<256xf32>
    %390 = vector.shape_cast %389 : vector<256xf32> to vector<1x256xf32>
    %391 = vector.broadcast %390 : vector<1x256xf32> to vector<2x256xf32>
    %392 = arith.mulf %387, %391 : vector<2x256xf32>
    %393 = arith.addf %384, %392 : vector<2x256xf32>
    %c16_i32_117 = arith.constant 16 : i32
    %394 = tpu.dynamic_rotate %386 by %c16_i32_117 dim 1 : vector<2x256xf32>, i32 -> vector<2x256xf32>
    %c55 = arith.constant 55 : index
    %c0_118 = arith.constant 0 : index
    %395 = vector.load %arg2[%c55, %c0_118] : memref<72x256xf32, #tpu.memory_space<vmem>>, vector<1x256xf32>
    %396 = vector.shape_cast %395 : vector<1x256xf32> to vector<256xf32>
    %397 = vector.shape_cast %396 : vector<256xf32> to vector<1x256xf32>
    %398 = vector.broadcast %397 : vector<1x256xf32> to vector<2x256xf32>
    %399 = arith.mulf %394, %398 : vector<2x256xf32>
    %400 = arith.addf %393, %399 : vector<2x256xf32>
    %c15_i32_119 = arith.constant 15 : i32
    %401 = tpu.dynamic_rotate %386 by %c15_i32_119 dim 1 : vector<2x256xf32>, i32 -> vector<2x256xf32>
    %c56 = arith.constant 56 : index
    %c0_120 = arith.constant 0 : index
    %402 = vector.load %arg2[%c56, %c0_120] : memref<72x256xf32, #tpu.memory_space<vmem>>, vector<1x256xf32>
    %403 = vector.shape_cast %402 : vector<1x256xf32> to vector<256xf32>
    %404 = vector.shape_cast %403 : vector<256xf32> to vector<1x256xf32>
    %405 = vector.broadcast %404 : vector<1x256xf32> to vector<2x256xf32>
    %406 = arith.mulf %401, %405 : vector<2x256xf32>
    %407 = arith.addf %400, %406 : vector<2x256xf32>
    %c1_i32_121 = arith.constant 1 : i32
    %408 = tpu.dynamic_rotate %386 by %c1_i32_121 dim 1 : vector<2x256xf32>, i32 -> vector<2x256xf32>
    %c57 = arith.constant 57 : index
    %c0_122 = arith.constant 0 : index
    %409 = vector.load %arg2[%c57, %c0_122] : memref<72x256xf32, #tpu.memory_space<vmem>>, vector<1x256xf32>
    %410 = vector.shape_cast %409 : vector<1x256xf32> to vector<256xf32>
    %411 = vector.shape_cast %410 : vector<256xf32> to vector<1x256xf32>
    %412 = vector.broadcast %411 : vector<1x256xf32> to vector<2x256xf32>
    %413 = arith.mulf %408, %412 : vector<2x256xf32>
    %414 = arith.addf %407, %413 : vector<2x256xf32>
    %c58 = arith.constant 58 : index
    %c0_123 = arith.constant 0 : index
    %415 = vector.load %arg2[%c58, %c0_123] : memref<72x256xf32, #tpu.memory_space<vmem>>, vector<1x256xf32>
    %416 = vector.shape_cast %415 : vector<1x256xf32> to vector<256xf32>
    %417 = vector.shape_cast %416 : vector<256xf32> to vector<1x256xf32>
    %418 = vector.broadcast %417 : vector<1x256xf32> to vector<2x256xf32>
    %419 = arith.mulf %386, %418 : vector<2x256xf32>
    %420 = arith.addf %414, %419 : vector<2x256xf32>
    %c255_i32_124 = arith.constant 255 : i32
    %421 = tpu.dynamic_rotate %386 by %c255_i32_124 dim 1 : vector<2x256xf32>, i32 -> vector<2x256xf32>
    %c59 = arith.constant 59 : index
    %c0_125 = arith.constant 0 : index
    %422 = vector.load %arg2[%c59, %c0_125] : memref<72x256xf32, #tpu.memory_space<vmem>>, vector<1x256xf32>
    %423 = vector.shape_cast %422 : vector<1x256xf32> to vector<256xf32>
    %424 = vector.shape_cast %423 : vector<256xf32> to vector<1x256xf32>
    %425 = vector.broadcast %424 : vector<1x256xf32> to vector<2x256xf32>
    %426 = arith.mulf %421, %425 : vector<2x256xf32>
    %427 = arith.addf %420, %426 : vector<2x256xf32>
    %c241_i32_126 = arith.constant 241 : i32
    %428 = tpu.dynamic_rotate %386 by %c241_i32_126 dim 1 : vector<2x256xf32>, i32 -> vector<2x256xf32>
    %c60 = arith.constant 60 : index
    %c0_127 = arith.constant 0 : index
    %429 = vector.load %arg2[%c60, %c0_127] : memref<72x256xf32, #tpu.memory_space<vmem>>, vector<1x256xf32>
    %430 = vector.shape_cast %429 : vector<1x256xf32> to vector<256xf32>
    %431 = vector.shape_cast %430 : vector<256xf32> to vector<1x256xf32>
    %432 = vector.broadcast %431 : vector<1x256xf32> to vector<2x256xf32>
    %433 = arith.mulf %428, %432 : vector<2x256xf32>
    %434 = arith.addf %427, %433 : vector<2x256xf32>
    %c240_i32_128 = arith.constant 240 : i32
    %435 = tpu.dynamic_rotate %386 by %c240_i32_128 dim 1 : vector<2x256xf32>, i32 -> vector<2x256xf32>
    %c61 = arith.constant 61 : index
    %c0_129 = arith.constant 0 : index
    %436 = vector.load %arg2[%c61, %c0_129] : memref<72x256xf32, #tpu.memory_space<vmem>>, vector<1x256xf32>
    %437 = vector.shape_cast %436 : vector<1x256xf32> to vector<256xf32>
    %438 = vector.shape_cast %437 : vector<256xf32> to vector<1x256xf32>
    %439 = vector.broadcast %438 : vector<1x256xf32> to vector<2x256xf32>
    %440 = arith.mulf %435, %439 : vector<2x256xf32>
    %441 = arith.addf %434, %440 : vector<2x256xf32>
    %c239_i32_130 = arith.constant 239 : i32
    %442 = tpu.dynamic_rotate %386 by %c239_i32_130 dim 1 : vector<2x256xf32>, i32 -> vector<2x256xf32>
    %c62 = arith.constant 62 : index
    %c0_131 = arith.constant 0 : index
    %443 = vector.load %arg2[%c62, %c0_131] : memref<72x256xf32, #tpu.memory_space<vmem>>, vector<1x256xf32>
    %444 = vector.shape_cast %443 : vector<1x256xf32> to vector<256xf32>
    %445 = vector.shape_cast %444 : vector<256xf32> to vector<1x256xf32>
    %446 = vector.broadcast %445 : vector<1x256xf32> to vector<2x256xf32>
    %447 = arith.mulf %442, %446 : vector<2x256xf32>
    %448 = arith.addf %441, %447 : vector<2x256xf32>
    %c0_132 = arith.constant 0 : index
    %c7_133 = arith.constant 7 : index
    %c0_134 = arith.constant 0 : index
    %449 = vector.load %arg1[%c0_132, %c7_133, %c0_134] : memref<2x8x256xf32, #tpu.memory_space<vmem>>, vector<2x1x256xf32>
    %450 = vector.shape_cast %449 : vector<2x1x256xf32> to vector<2x256xf32>
    %c17_i32_135 = arith.constant 17 : i32
    %451 = tpu.dynamic_rotate %450 by %c17_i32_135 dim 1 : vector<2x256xf32>, i32 -> vector<2x256xf32>
    %c63 = arith.constant 63 : index
    %c0_136 = arith.constant 0 : index
    %452 = vector.load %arg2[%c63, %c0_136] : memref<72x256xf32, #tpu.memory_space<vmem>>, vector<1x256xf32>
    %453 = vector.shape_cast %452 : vector<1x256xf32> to vector<256xf32>
    %454 = vector.shape_cast %453 : vector<256xf32> to vector<1x256xf32>
    %455 = vector.broadcast %454 : vector<1x256xf32> to vector<2x256xf32>
    %456 = arith.mulf %451, %455 : vector<2x256xf32>
    %457 = arith.addf %448, %456 : vector<2x256xf32>
    %c16_i32_137 = arith.constant 16 : i32
    %458 = tpu.dynamic_rotate %450 by %c16_i32_137 dim 1 : vector<2x256xf32>, i32 -> vector<2x256xf32>
    %c64 = arith.constant 64 : index
    %c0_138 = arith.constant 0 : index
    %459 = vector.load %arg2[%c64, %c0_138] : memref<72x256xf32, #tpu.memory_space<vmem>>, vector<1x256xf32>
    %460 = vector.shape_cast %459 : vector<1x256xf32> to vector<256xf32>
    %461 = vector.shape_cast %460 : vector<256xf32> to vector<1x256xf32>
    %462 = vector.broadcast %461 : vector<1x256xf32> to vector<2x256xf32>
    %463 = arith.mulf %458, %462 : vector<2x256xf32>
    %464 = arith.addf %457, %463 : vector<2x256xf32>
    %c15_i32_139 = arith.constant 15 : i32
    %465 = tpu.dynamic_rotate %450 by %c15_i32_139 dim 1 : vector<2x256xf32>, i32 -> vector<2x256xf32>
    %c65 = arith.constant 65 : index
    %c0_140 = arith.constant 0 : index
    %466 = vector.load %arg2[%c65, %c0_140] : memref<72x256xf32, #tpu.memory_space<vmem>>, vector<1x256xf32>
    %467 = vector.shape_cast %466 : vector<1x256xf32> to vector<256xf32>
    %468 = vector.shape_cast %467 : vector<256xf32> to vector<1x256xf32>
    %469 = vector.broadcast %468 : vector<1x256xf32> to vector<2x256xf32>
    %470 = arith.mulf %465, %469 : vector<2x256xf32>
    %471 = arith.addf %464, %470 : vector<2x256xf32>
    %c1_i32_141 = arith.constant 1 : i32
    %472 = tpu.dynamic_rotate %450 by %c1_i32_141 dim 1 : vector<2x256xf32>, i32 -> vector<2x256xf32>
    %c66 = arith.constant 66 : index
    %c0_142 = arith.constant 0 : index
    %473 = vector.load %arg2[%c66, %c0_142] : memref<72x256xf32, #tpu.memory_space<vmem>>, vector<1x256xf32>
    %474 = vector.shape_cast %473 : vector<1x256xf32> to vector<256xf32>
    %475 = vector.shape_cast %474 : vector<256xf32> to vector<1x256xf32>
    %476 = vector.broadcast %475 : vector<1x256xf32> to vector<2x256xf32>
    %477 = arith.mulf %472, %476 : vector<2x256xf32>
    %478 = arith.addf %471, %477 : vector<2x256xf32>
    %c67 = arith.constant 67 : index
    %c0_143 = arith.constant 0 : index
    %479 = vector.load %arg2[%c67, %c0_143] : memref<72x256xf32, #tpu.memory_space<vmem>>, vector<1x256xf32>
    %480 = vector.shape_cast %479 : vector<1x256xf32> to vector<256xf32>
    %481 = vector.shape_cast %480 : vector<256xf32> to vector<1x256xf32>
    %482 = vector.broadcast %481 : vector<1x256xf32> to vector<2x256xf32>
    %483 = arith.mulf %450, %482 : vector<2x256xf32>
    %484 = arith.addf %478, %483 : vector<2x256xf32>
    %c255_i32_144 = arith.constant 255 : i32
    %485 = tpu.dynamic_rotate %450 by %c255_i32_144 dim 1 : vector<2x256xf32>, i32 -> vector<2x256xf32>
    %c68 = arith.constant 68 : index
    %c0_145 = arith.constant 0 : index
    %486 = vector.load %arg2[%c68, %c0_145] : memref<72x256xf32, #tpu.memory_space<vmem>>, vector<1x256xf32>
    %487 = vector.shape_cast %486 : vector<1x256xf32> to vector<256xf32>
    %488 = vector.shape_cast %487 : vector<256xf32> to vector<1x256xf32>
    %489 = vector.broadcast %488 : vector<1x256xf32> to vector<2x256xf32>
    %490 = arith.mulf %485, %489 : vector<2x256xf32>
    %491 = arith.addf %484, %490 : vector<2x256xf32>
    %c241_i32_146 = arith.constant 241 : i32
    %492 = tpu.dynamic_rotate %450 by %c241_i32_146 dim 1 : vector<2x256xf32>, i32 -> vector<2x256xf32>
    %c69 = arith.constant 69 : index
    %c0_147 = arith.constant 0 : index
    %493 = vector.load %arg2[%c69, %c0_147] : memref<72x256xf32, #tpu.memory_space<vmem>>, vector<1x256xf32>
    %494 = vector.shape_cast %493 : vector<1x256xf32> to vector<256xf32>
    %495 = vector.shape_cast %494 : vector<256xf32> to vector<1x256xf32>
    %496 = vector.broadcast %495 : vector<1x256xf32> to vector<2x256xf32>
    %497 = arith.mulf %492, %496 : vector<2x256xf32>
    %498 = arith.addf %491, %497 : vector<2x256xf32>
    %c240_i32_148 = arith.constant 240 : i32
    %499 = tpu.dynamic_rotate %450 by %c240_i32_148 dim 1 : vector<2x256xf32>, i32 -> vector<2x256xf32>
    %c70 = arith.constant 70 : index
    %c0_149 = arith.constant 0 : index
    %500 = vector.load %arg2[%c70, %c0_149] : memref<72x256xf32, #tpu.memory_space<vmem>>, vector<1x256xf32>
    %501 = vector.shape_cast %500 : vector<1x256xf32> to vector<256xf32>
    %502 = vector.shape_cast %501 : vector<256xf32> to vector<1x256xf32>
    %503 = vector.broadcast %502 : vector<1x256xf32> to vector<2x256xf32>
    %504 = arith.mulf %499, %503 : vector<2x256xf32>
    %505 = arith.addf %498, %504 : vector<2x256xf32>
    %c239_i32_150 = arith.constant 239 : i32
    %506 = tpu.dynamic_rotate %450 by %c239_i32_150 dim 1 : vector<2x256xf32>, i32 -> vector<2x256xf32>
    %c71 = arith.constant 71 : index
    %c0_151 = arith.constant 0 : index
    %507 = vector.load %arg2[%c71, %c0_151] : memref<72x256xf32, #tpu.memory_space<vmem>>, vector<1x256xf32>
    %508 = vector.shape_cast %507 : vector<1x256xf32> to vector<256xf32>
    %509 = vector.shape_cast %508 : vector<256xf32> to vector<1x256xf32>
    %510 = vector.broadcast %509 : vector<1x256xf32> to vector<2x256xf32>
    %511 = arith.mulf %506, %510 : vector<2x256xf32>
    %512 = arith.addf %505, %511 : vector<2x256xf32>
    %c0_152 = arith.constant 0 : index
    %513 = memref.load %arg3[%c0_152] : memref<1xf32, #tpu.memory_space<smem>>
    %514 = vector.broadcast %513 : f32 to vector<2x256xf32>
    %515 = arith.addf %512, %514 : vector<2x256xf32>
    %cst_153 = arith.constant 0.000000e+00 : f32
    %516 = vector.broadcast %cst_153 : f32 to vector<2x256xf32>
    %517 = arith.maximumf %515, %516 : vector<2x256xf32>
    %c0_154 = arith.constant 0 : index
    %c0_155 = arith.constant 0 : index
    %518 = vector.load %arg4[%c0_154, %c0_155] : memref<256x256xf32, #tpu.memory_space<vmem>>, vector<256x256xf32>
    %cst_156 = arith.constant dense<0.000000e+00> : vector<2x256xf32>
    %519 = tpu.matmul %517, %518, %cst_156 {dimension_numbers = #tpu.dot_dimension_numbers<[1], [0], [0], [1], [0, 0, 1, 1], [], []>} : vector<2x256xf32>, vector<256x256xf32>, vector<2x256xf32> -> vector<2x256xf32>
    %c0_157 = arith.constant 0 : index
    %c0_158 = arith.constant 0 : index
    %520 = vector.load %arg5[%c0_157, %c0_158] : memref<1x256xf32, #tpu.memory_space<vmem>>, vector<1x256xf32>
    %521 = vector.shape_cast %520 : vector<1x256xf32> to vector<256xf32>
    %522 = vector.shape_cast %521 : vector<256xf32> to vector<1x256xf32>
    %523 = vector.broadcast %522 : vector<1x256xf32> to vector<2x256xf32>
    %524 = arith.addf %519, %523 : vector<2x256xf32>
    %525 = arith.negf %524 : vector<2x256xf32>
    %526 = math.exp %525 : vector<2x256xf32>
    %cst_159 = arith.constant 1.000000e+00 : f32
    %527 = vector.broadcast %cst_159 : f32 to vector<2x256xf32>
    %528 = arith.addf %527, %526 : vector<2x256xf32>
    %529 = arith.divf %527, %528 : vector<2x256xf32>
    %c0_160 = arith.constant 0 : index
    %c0_161 = arith.constant 0 : index
    %530 = vector.load %arg6[%c0_160, %c0_161] : memref<2x256xf32, #tpu.memory_space<vmem>>, vector<2x256xf32>
    tpu.vector_store %arg6[%c0_160, %c0_161], %529 {strides = array<i32>} : memref<2x256xf32, #tpu.memory_space<vmem>>, vector<2x256xf32>,
    return
  }
  func.func @transform_0(%arg0: i32) -> (i32, i32, i32) {
    %c0_i32 = arith.constant 0 : i32
    %c0_i32_0 = arith.constant 0 : i32
    %c0_i32_1 = arith.constant 0 : i32
    return %arg0, %c0_i32, %c0_i32_0 : i32, i32, i32
  }
  func.func @transform_1(%arg0: i32) -> (i32, i32) {
    %c0_i32 = arith.constant 0 : i32
    %c0_i32_0 = arith.constant 0 : i32
    %c0_i32_1 = arith.constant 0 : i32
    return %c0_i32, %c0_i32_0 : i32, i32
  }
  func.func @transform_2(%arg0: i32) -> i32 {
    %c0_i32 = arith.constant 0 : i32
    %c0_i32_0 = arith.constant 0 : i32
    return %c0_i32 : i32
  }
  func.func @transform_3(%arg0: i32) -> (i32, i32) {
    %c0_i32 = arith.constant 0 : i32
    %c0_i32_0 = arith.constant 0 : i32
    %c0_i32_1 = arith.constant 0 : i32
    return %c0_i32, %c0_i32_0 : i32, i32
  }
  func.func @transform_4(%arg0: i32) -> (i32, i32) {
    %c0_i32 = arith.constant 0 : i32
    %c0_i32_0 = arith.constant 0 : i32
    %c0_i32_1 = arith.constant 0 : i32
    return %c0_i32, %c0_i32_0 : i32, i32
  }
  func.func @transform_5(%arg0: i32) -> (i32, i32) {
    %c0_i32 = arith.constant 0 : i32
    %c0_i32_0 = arith.constant 0 : i32
    return %arg0, %c0_i32 : i32, i32
  }
}

</mosaic_0001>

<bundles_post_ra>
// kernel: tpu_custom_call.1
= control target key start
LH: loop header
LB: loop body
LE: loop exit
PB: predicated region body
PF: predicated region fallthrough
CT: control target
= control target key end

     0   :  { %11 = vsyncpa [#allocation4], 0  ;;  %s3001_s0 = inlined_call_operand.hbm [shape: f32[2,8,256], index: 0, kind: input, shape index: {}]   ;;  %s3002_s1 = inlined_call_operand.hbm [shape: f32[72,256], index: 1, kind: input, shape index: {}]   ;;  %s3003_s2 = inlined_call_operand.<no memory space> [shape: f32[1], index: 2, kind: input, shape index: {}]   ;;  %s3004_s3 = inlined_call_operand.hbm [shape: f32[256,256], index: 3, kind: input, shape index: {}]   ;;  %s3005_s4 = inlined_call_operand.vmem [shape: f32[1,256], index: 4, kind: input, shape index: {}]   ;;  %s3006_s5 = inlined_call_operand.hbm [shape: f32[2,256], index: 5, kind: output, shape index: {}]  }
   0x1   :  { %12 = vsyncpa [#allocation7], 0 }
   0x2   :  { %13 = vsyncpa [#allocation5], 0  ;;  %s31_s20 = sshll.u32 %s3002_s1, 4  ;;  %s2199_s21 = smov [#allocation6]   ;;  %s32_s20 = int_to_ptr.hbm [resolvable:$true] %s31_s20 }
   0x3   :  { %s33_s22 = sshll.u32 %s2199_s21, 4  ;;  %s18_s25 = sshll.u32 %s3001_s0, 4  ;;  %s34_s22 = int_to_ptr.vmem [resolvable:$true] %s33_s22  ;;  %s19_s25 = int_to_ptr.hbm [resolvable:$true] %s18_s25 }
   0x4   :  { %s2200_s26 = smov 256   ;;  %s2201_s27 = smov 16  }
   0x5   :  { %39 = dma.hbm_to_vmem [thread:$0]  %s32_s20, 2304, %s34_s22, [#allocation7], %s2200_s26, %s2200_s26, %s2201_s27  }
   0x6   :  { %s2202_s28 = smov [#allocation3]   ;;  %s46_s7 = sshll.u32 %s3004_s3, 4  ;;  %s47_s7 = int_to_ptr.hbm [resolvable:$true] %s46_s7 }
   0x7   :  { %s20_s29 = sshll.u32 %s2202_s28, 4  ;;  %s2203_s1 = smov [#allocation8]   ;;  %s21_s29 = int_to_ptr.vmem [resolvable:$true] %s20_s29 }
   0x8   :  { %26 = dma.hbm_to_vmem [thread:$0]  %s19_s25, 512, %s21_s29, [#allocation4], %s2200_s26, %s2200_s26, %s2201_s27  }
   0x9   :  { %s48_s8 = sshll.u32 %s2203_s1, 4  ;;  %s49_s8 = int_to_ptr.vmem [resolvable:$true] %s48_s8 }
   0xa   :  { %54 = dma.hbm_to_vmem [thread:$0]  %s47_s7, 8192, %s49_s8, [#allocation7], %s2200_s26, %s2200_s26, %s2201_s27  }
   0xb   :  { %2193 = dma.done.wait [#allocation4], 512  }
   0xc   :  { %2194 = vsyncadd [#allocation4], 4294966784 }
   0xd   :  { %2195 = dma.done.wait [#allocation7], 10496  }
   0xe   :  { %2196 = vsyncadd [#allocation7], 4294956800  ;;  %v2254_v0 = vld [vmem:[#allocation3] ss:$8 sm:$0x3]  ;;  %s2204_s0 = smov 17  }
   0xf   :  { %v2256_v1 = vld [vmem:[#allocation3 + $0x10] ss:$8 sm:$0x3]  ;;  %74 = vst [vmem:[#allocation1] ss:$9 sm:$0xff] %v2254_v0  ;;  %vm183_vm0 = vcmask 1041409  }
  0x10   :  { %76 = vst [vmem:[#allocation1 + $0x1] ss:$9 sm:$0xff] %v2256_v1  ;;  %v176_v4 = vld [vmem:[#allocation6 + $0x4] ss:$8 sm:$0x3]  ;;  %vm181_vm1 = vcmask 1040384  }
  0x11   :  { %v179_v7 = vperm.slane %v176_v4, 1  ;;  %v178_v8 = vperm.slane %v176_v4, 0  ;;  %s2205_s3 = smov 15   ;;  %s2206_s9 = smov 1  }
  0x12   :  { %s2207_s10 = smov 127   ;;  %s2208_s11 = smov 113   ;;  %v302_v27 = vld [vmem:[#allocation3 + $0x1] ss:$8 sm:$0x3] }
  0x13   :  { %v180_v9 = vrot.slane %v179_v7, 7  ;;  %s2209_s12 = smov 112   ;;  %v304_v28 = vld [vmem:[#allocation3 + $0x11] ss:$8 sm:$0x3]  ;;  %s2210_s13 = smov 111  }
  0x14   :  { %v404_v33 = vld [vmem:[#allocation6 + $0x15] ss:$8 sm:$0x3]  ;;  %v2318_v56 = vld [vmem:[#allocation3 + $0x2] ss:$8 sm:$0x3] }
  0x15   :  { %v184_v12 = vsel %vm183_vm0, %v178_v8, %v180_v9  ;;  %v182_v13 = vsel %vm181_vm1, %v178_v8, %v180_v9  ;;  %v407_v36 = vperm.slane %v404_v33, 1  ;;  %v406_v37 = vperm.slane %v404_v33, 0  ;;  %v2320_v57 = vld [vmem:[#allocation3 + $0x12] ss:$8 sm:$0x3]  ;;  %s2063_s20 = sshll.u32 %s3006_s5, 4  ;;  %s2064_s20 = int_to_ptr.hbm [resolvable:$true] %s2063_s20 }
  0x16   :  { %v185_v14 = vrot.slane %v184_v12, 1  ;;  %v188_v15 = vmul.f32 %v182_v13, %v2254_v0  ;;  %v626_v62 = vld [vmem:[#allocation6 + $0x26] ss:$8 sm:$0x3] }
  0x17   :  { %v77_v2 = vld [vmem:[#allocation1] sm:$0xff]  ;;  %v78_v3 = vld [vmem:[#allocation1 + $0x9] sm:$0xff]  ;;  %v408_v38 = vrot.slane %v407_v36, 7 }
  0x18   :  { %81 = vrot.lane.b32.xlu0 %v77_v2, %s2204_s0  ;;  %100 = vst [vmem:[#allocation1] ss:$9 sm:$0xff] %v2254_v0  ;;  %v189_v16 = vmul.f32 %v185_v14, %v2256_v1  ;;  %v628_v2 = vperm.slane %v626_v62, 0  ;;  %v140_v36 = vld [vmem:[#allocation6 + $0x2] ss:$8 sm:$0x3] }
  0x19   :  { %102 = vst [vmem:[#allocation1 + $0x1] ss:$9 sm:$0xff] %v2256_v1  ;;  %v410_v41 = vsel %vm183_vm0, %v406_v37, %v408_v38  ;;  %v409_v42 = vsel %vm181_vm1, %v406_v37, %v408_v38  ;;  %v142_v38 = vperm.slane %v140_v36, 0 }
  0x1a   :  { %v411_v43 = vrot.slane %v410_v41, 1  ;;  %v414_v44 = vmul.f32 %v409_v42, %v302_v27 }
  0x1c   :  { %v415_v45 = vmul.f32 %v411_v43, %v304_v28 }
  0x20   :  { %v103_v5 = vld [vmem:[#allocation1] sm:$0xff]  ;;  %83 = vrot.lane.b32.xlu0 %v78_v3, %s2204_s0  ;;  %v104_v6 = vld [vmem:[#allocation1 + $0x9] sm:$0xff] }
  0x21   :  { %107 = vrot.lane.b32.xlu1 %v103_v5, %s2201_s27  ;;  %125 = vst [vmem:[#allocation1] ss:$9 sm:$0xff] %v2254_v0 }
  0x22   :  { %127 = vst [vmem:[#allocation1 + $0x1] ss:$9 sm:$0xff] %v2256_v1 }
  0x29   :  { %109 = vrot.lane.b32.xlu1 %v104_v6, %s2201_s27  ;;  %v128_v10 = vld [vmem:[#allocation1] sm:$0xff]  ;;  %v129_v11 = vld [vmem:[#allocation1 + $0x9] sm:$0xff] }
  0x2a   :  { %150 = vst [vmem:[#allocation1] ss:$9 sm:$0xff] %v2254_v0  ;;  %132 = vrot.lane.b32.xlu2 %v128_v10, %s2205_s3 }
  0x2b   :  { %152 = vst [vmem:[#allocation1 + $0x1] ss:$9 sm:$0xff] %v2256_v1 }
  0x32   :  { %v153_v17 = vld [vmem:[#allocation1] sm:$0xff]  ;;  %v154_v18 = vld [vmem:[#allocation1 + $0x9] sm:$0xff]  ;;  %134 = vrot.lane.b32.xlu2 %v129_v11, %s2205_s3 }
  0x33   :  { %157 = vrot.lane.b32.xlu0 %v153_v17, %s2206_s9  ;;  %159 = vrot.lane.b32.xlu1 %v154_v18, %s2206_s9  ;;  %192 = vst [vmem:[#allocation1] ss:$9 sm:$0xff] %v188_v15  ;;  %v90_v17 = vld [vmem:[#allocation6] ss:$8 sm:$0x3] }
  0x34   :  { %194 = vst [vmem:[#allocation1 + $0x1] ss:$9 sm:$0xff] %v189_v16  ;;  %v85_v16 = vlaneseq }
  0x36   :  { %v2344_v18 = vand.u32 127, %v85_v16 }
  0x38   :  { %vm87_vm2 = vcmp.lt.s32.totalorder %v2344_v18, 17  ;;  %vm111_vm3 = vcmp.lt.s32.totalorder %v2344_v18, 16  ;;  %vm136_vm4 = vcmp.lt.s32.totalorder %v2344_v18, 15  ;;  %vm161_vm5 = vcmp.lt.s32.totalorder %v2344_v18, 1 }
  0x39   :  { %vm212_vm6 = vcmp.lt.s32.totalorder %v2344_v18, 127  ;;  %vm237_vm7 = vcmp.lt.s32.totalorder %v2344_v18, 113  ;;  %vm262_vm8 = vcmp.lt.s32.totalorder %v2344_v18, 112  ;;  %vm287_vm9 = vcmp.lt.s32.totalorder %v2344_v18, 111  ;;  %v1925_v18 = vld [vmem:[%s3005_s4] sm:$0x3] }
  0x3b   :  { %v2278_v19 = vld [vmem:[#allocation1] sm:$0xff]  ;;  %v2280_v20 = vld [vmem:[#allocation1 + $0x9] sm:$0xff] }
  0x3c   :  { %201 = vst [vmem:[#allocation1] ss:$9 sm:$0xff] %v2254_v0 }
  0x3d   :  { %203 = vst [vmem:[#allocation1 + $0x1] ss:$9 sm:$0xff] %v2256_v1 }
  0x44   :  { %v205_v21 = vld [vmem:[#allocation1 + $0x9] sm:$0xff]  ;;  %v204_v22 = vld [vmem:[#allocation1] sm:$0xff] }
  0x45   :  { %210 = vrot.lane.b32.xlu0 %v205_v21, %s2207_s10  ;;  %226 = vst [vmem:[#allocation1] ss:$9 sm:$0xff] %v2254_v0  ;;  %208 = vrot.lane.b32.xlu2 %v204_v22, %s2207_s10 }
  0x46   :  { %228 = vst [vmem:[#allocation1 + $0x1] ss:$9 sm:$0xff] %v2256_v1 }
  0x4d   :  { %v229_v23 = vld [vmem:[#allocation1] sm:$0xff]  ;;  %v230_v24 = vld [vmem:[#allocation1 + $0x9] sm:$0xff] }
  0x4e   :  { %233 = vrot.lane.b32.xlu1 %v229_v23, %s2208_s11  ;;  %251 = vst [vmem:[#allocation1] ss:$9 sm:$0xff] %v2254_v0  ;;  %235 = vrot.lane.b32.xlu2 %v230_v24, %s2208_s11  ;;  %v92_v23 = vperm.slane %v90_v17, 0  ;;  %v93_v24 = vperm.slane %v90_v17, 1 }
  0x4f   :  { %253 = vst [vmem:[#allocation1 + $0x1] ss:$9 sm:$0xff] %v2256_v1 }
  0x56   :  { %v254_v25 = vld [vmem:[#allocation1] sm:$0xff]  ;;  %v255_v26 = vld [vmem:[#allocation1 + $0x9] sm:$0xff] }
  0x57   :  { %258 = vrot.lane.b32.xlu0 %v254_v25, %s2209_s12  ;;  %260 = vrot.lane.b32.xlu1 %v255_v26, %s2209_s12  ;;  %276 = vst [vmem:[#allocation1] ss:$9 sm:$0xff] %v2254_v0 }
  0x58   :  { %278 = vst [vmem:[#allocation1 + $0x1] ss:$9 sm:$0xff] %v2256_v1  ;;  %v629_v1 = vperm.slane %v626_v62, 1 }
  0x5a   :  { %v630_v3 = vrot.slane %v629_v1, 7 }
  0x5c   :  { %v632_v4 = vsel %vm183_vm0, %v628_v2, %v630_v3  ;;  %v631_v7 = vsel %vm181_vm1, %v628_v2, %v630_v3 }
  0x5d   :  { %v633_v8 = vrot.slane %v632_v4, 1  ;;  %v636_v9 = vmul.f32 %v631_v7, %v2318_v56 }
  0x5f   :  { %v280_v29 = vld [vmem:[#allocation1 + $0x9] sm:$0xff]  ;;  %v279_v30 = vld [vmem:[#allocation1] sm:$0xff]  ;;  %v637_v10 = vmul.f32 %v633_v8, %v2320_v57 }
  0x60   :  { %285 = vrot.lane.b32.xlu0 %v280_v29, %s2210_s13  ;;  %307 = vst [vmem:[#allocation1] ss:$9 sm:$0xff] %v302_v27  ;;  %283 = vrot.lane.b32.xlu2 %v279_v30, %s2210_s13  ;;  %v115_v30 = vld [vmem:[#allocation6 + $0x1] ss:$8 sm:$0x3] }
  0x61   :  { %309 = vst [vmem:[#allocation1 + $0x1] ss:$9 sm:$0xff] %v304_v28  ;;  %v118_v33 = vperm.slane %v115_v30, 1  ;;  %v216_v8 = vld [vmem:[#allocation6 + $0x5] ss:$8 sm:$0x3] }
  0x68   :  { %v310_v31 = vld [vmem:[#allocation1] sm:$0xff]  ;;  %v311_v32 = vld [vmem:[#allocation1 + $0x9] sm:$0xff] }
  0x69   :  { %314 = vrot.lane.b32.xlu1 %v310_v31, %s2204_s0  ;;  %331 = vst [vmem:[#allocation1] ss:$9 sm:$0xff] %v302_v27  ;;  %316 = vrot.lane.b32.xlu2 %v311_v32, %s2204_s0  ;;  %v117_v32 = vperm.slane %v115_v30, 0  ;;  %v2398_v30 = vld [vmem:[#allocation3 + $0x13] ss:$8 sm:$0x3] }
  0x6a   :  { %333 = vst [vmem:[#allocation1 + $0x1] ss:$9 sm:$0xff] %v304_v28 }
  0x71   :  { %v334_v34 = vld [vmem:[#allocation1] sm:$0xff]  ;;  %v335_v35 = vld [vmem:[#allocation1 + $0x9] sm:$0xff] }
  0x72   :  { %338 = vrot.lane.b32.xlu0 %v334_v34, %s2201_s27  ;;  %340 = vrot.lane.b32.xlu1 %v335_v35, %s2201_s27  ;;  %355 = vst [vmem:[#allocation1] ss:$9 sm:$0xff] %v302_v27 }
  0x73   :  { %357 = vst [vmem:[#allocation1 + $0x1] ss:$9 sm:$0xff] %v304_v28 }
  0x7a   :  { %v359_v39 = vld [vmem:[#allocation1 + $0x9] sm:$0xff]  ;;  %v358_v40 = vld [vmem:[#allocation1] sm:$0xff] }
  0x7b   :  { %364 = vrot.lane.b32.xlu0 %v359_v39, %s2205_s3  ;;  %379 = vst [vmem:[#allocation1] ss:$9 sm:$0xff] %v302_v27  ;;  %362 = vrot.lane.b32.xlu2 %v358_v40, %s2205_s3  ;;  %v143_v39 = vperm.slane %v140_v36, 1 }
  0x7c   :  { %381 = vst [vmem:[#allocation1 + $0x1] ss:$9 sm:$0xff] %v304_v28 }
  0x83   :  { %v382_v46 = vld [vmem:[#allocation1] sm:$0xff]  ;;  %v383_v47 = vld [vmem:[#allocation1 + $0x9] sm:$0xff] }
  0x84   :  { %386 = vrot.lane.b32.xlu1 %v382_v46, %s2206_s9  ;;  %418 = vst [vmem:[#allocation1] ss:$9 sm:$0xff] %v414_v44  ;;  %388 = vrot.lane.b32.xlu2 %v383_v47, %s2206_s9  ;;  %v133_v15 = vpop.permute.xlu2 %132 }
  0x85   :  { %420 = vst [vmem:[#allocation1 + $0x1] ss:$9 sm:$0xff] %v415_v45 }
  0x8a   :  { %v82_v13 = vpop.permute.xlu0 %81 }
  0x8c   :  { %v2308_v48 = vld [vmem:[#allocation1] sm:$0xff]  ;;  %v2310_v49 = vld [vmem:[#allocation1 + $0x9] sm:$0xff]  ;;  %v135_v37 = vpop.permute.xlu2 %134 }
  0x8d   :  { %427 = vst [vmem:[#allocation1] ss:$9 sm:$0xff] %v302_v27  ;;  %v137_v40 = vsel %vm136_vm4, %v133_v15, %v135_v37  ;;  %v138_v41 = vsel %vm136_vm4, %v135_v37, %v133_v15  ;;  %v266_v37 = vld [vmem:[#allocation6 + $0x7] ss:$8 sm:$0x3] }
  0x8e   :  { %429 = vst [vmem:[#allocation1 + $0x1] ss:$9 sm:$0xff] %v304_v28  ;;  %v146_v46 = vmul.f32 %v142_v38, %v138_v41  ;;  %v147_v47 = vmul.f32 %v143_v39, %v137_v40  ;;  %v268_v39 = vperm.slane %v266_v37, 0  ;;  %v269_v40 = vperm.slane %v266_v37, 1 }
  0x92   :  { %v84_v25 = vpop.permute.xlu0 %83 }
  0x93   :  { %v108_v14 = vpop.permute.xlu1 %107  ;;  %v88_v26 = vsel %vm87_vm2, %v82_v13, %v84_v25 }
  0x94   :  { %v97_v29 = vmul.f32 %v93_v24, %v88_v26  ;;  %v241_v24 = vld [vmem:[#allocation6 + $0x6] ss:$8 sm:$0x3]  ;;  %v2392_v26 = vld [vmem:[#allocation3 + $0x3] ss:$8 sm:$0x3] }
  0x95   :  { %v430_v50 = vld [vmem:[#allocation1] sm:$0xff]  ;;  %v431_v51 = vld [vmem:[#allocation1 + $0x9] sm:$0xff] }
  0x96   :  { %434 = vrot.lane.b32.xlu0 %v430_v50, %s2207_s10  ;;  %436 = vrot.lane.b32.xlu1 %v431_v51, %s2207_s10  ;;  %451 = vst [vmem:[#allocation1] ss:$9 sm:$0xff] %v302_v27 }
  0x97   :  { %453 = vst [vmem:[#allocation1 + $0x1] ss:$9 sm:$0xff] %v304_v28 }
  0x9b   :  { %v110_v31 = vpop.permute.xlu1 %109 }
  0x9c   :  { %v112_v34 = vsel %vm111_vm3, %v108_v14, %v110_v31  ;;  %v113_v35 = vsel %vm111_vm3, %v110_v31, %v108_v14 }
  0x9d   :  { %v121_v42 = vmul.f32 %v117_v32, %v113_v35  ;;  %v122_v43 = vmul.f32 %v118_v33, %v112_v34 }
  0x9e   :  { %v455_v52 = vld [vmem:[#allocation1 + $0x9] sm:$0xff]  ;;  %v454_v53 = vld [vmem:[#allocation1] sm:$0xff] }
  0x9f   :  { %460 = vrot.lane.b32.xlu0 %v455_v52, %s2208_s11  ;;  %475 = vst [vmem:[#allocation1] ss:$9 sm:$0xff] %v302_v27  ;;  %458 = vrot.lane.b32.xlu2 %v454_v53, %s2208_s11  ;;  %v124_v51 = vadd.f32 %v122_v43, %v97_v29 }
  0xa0   :  { %477 = vst [vmem:[#allocation1 + $0x1] ss:$9 sm:$0xff] %v304_v28 }
  0xa1   :  { %v149_v53 = vadd.f32 %v147_v47, %v124_v51  ;;  %v848_v51 = vld [vmem:[#allocation6 + $0x37] ss:$8 sm:$0x3] }
  0xa7   :  { %v478_v54 = vld [vmem:[#allocation1] sm:$0xff]  ;;  %v479_v55 = vld [vmem:[#allocation1 + $0x9] sm:$0xff] }
  0xa8   :  { %482 = vrot.lane.b32.xlu1 %v478_v54, %s2209_s12  ;;  %499 = vst [vmem:[#allocation1] ss:$9 sm:$0xff] %v302_v27  ;;  %484 = vrot.lane.b32.xlu2 %v479_v55, %s2209_s12  ;;  %v89_v27 = vsel %vm87_vm2, %v84_v25, %v82_v13  ;;  %v158_v54 = vpop.permute.xlu0 %157  ;;  %v165_v55 = vld [vmem:[#allocation6 + $0x3] ss:$8 sm:$0x3] }
  0xa9   :  { %501 = vst [vmem:[#allocation1 + $0x1] ss:$9 sm:$0xff] %v304_v28  ;;  %v96_v28 = vmul.f32 %v92_v23, %v89_v27  ;;  %v243_v27 = vperm.slane %v241_v24, 0 }
  0xab   :  { %v123_v50 = vadd.f32 %v121_v42, %v96_v28  ;;  %v244_v28 = vperm.slane %v241_v24, 1 }
  0xad   :  { %v148_v52 = vadd.f32 %v146_v46, %v123_v50 }
  0xb0   :  { %v502_v58 = vld [vmem:[#allocation1] sm:$0xff]  ;;  %v503_v59 = vld [vmem:[#allocation1 + $0x9] sm:$0xff] }
  0xb1   :  { %506 = vrot.lane.b32.xlu0 %v502_v58, %s2210_s13  ;;  %508 = vrot.lane.b32.xlu1 %v503_v59, %s2210_s13  ;;  %529 = vst [vmem:[#allocation1] ss:$9 sm:$0xff] %v2318_v56  ;;  %v160_v58 = vpop.permute.xlu1 %159  ;;  %v167_v59 = vperm.slane %v165_v55, 0 }
  0xb2   :  { %531 = vst [vmem:[#allocation1 + $0x1] ss:$9 sm:$0xff] %v2320_v57  ;;  %v163_v62 = vsel %vm161_vm5, %v160_v58, %v158_v54 }
  0xb3   :  { %v171_v1 = vmul.f32 %v167_v59, %v163_v62 }
  0xb5   :  { %v173_v3 = vadd.f32 %v171_v1, %v148_v52  ;;  %v851_v52 = vperm.slane %v848_v51, 1 }
  0xb9   :  { %v533_v60 = vld [vmem:[#allocation1 + $0x9] sm:$0xff]  ;;  %v532_v61 = vld [vmem:[#allocation1] sm:$0xff] }
  0xba   :  { %538 = vrot.lane.b32.xlu0 %v533_v60, %s2204_s0  ;;  %553 = vst [vmem:[#allocation1] ss:$9 sm:$0xff] %v2318_v56  ;;  %536 = vrot.lane.b32.xlu2 %v532_v61, %s2204_s0  ;;  %v168_v60 = vperm.slane %v165_v55, 1  ;;  %v162_v61 = vsel %vm161_vm5, %v158_v54, %v160_v58  ;;  %v850_v55 = vperm.slane %v848_v51, 0  ;;  %v852_v58 = vrot.slane %v851_v52, 7 }
  0xbb   :  { %555 = vst [vmem:[#allocation1 + $0x1] ss:$9 sm:$0xff] %v2320_v57 }
  0xbc   :  { %v172_v2 = vmul.f32 %v168_v60, %v162_v61  ;;  %v291_v60 = vld [vmem:[#allocation6 + $0x10] ss:$8 sm:$0x3] }
  0xbd   :  { %v293_v62 = vperm.slane %v291_v60, 0 }
  0xbe   :  { %v174_v4 = vadd.f32 %v172_v2, %v149_v53  ;;  %v854_v2 = vsel %vm183_vm0, %v850_v55, %v852_v58 }
  0xc0   :  { %v200_v7 = vadd.f32 %v2280_v20, %v174_v4  ;;  %v234_v25 = vpop.permute.xlu1 %233 }
  0xc2   :  { %v556_v63 = vld [vmem:[#allocation1] sm:$0xff]  ;;  %v557_v0 = vld [vmem:[#allocation1 + $0x9] sm:$0xff] }
  0xc3   :  { %560 = vrot.lane.b32.xlu1 %v556_v63, %s2201_s27  ;;  %577 = vst [vmem:[#allocation1] ss:$9 sm:$0xff] %v2318_v56  ;;  %562 = vrot.lane.b32.xlu2 %v557_v0, %s2201_s27 }
  0xc4   :  { %579 = vst [vmem:[#allocation1 + $0x1] ss:$9 sm:$0xff] %v2320_v57 }
  0xc9   :  { %v261_v38 = vpop.permute.xlu1 %260 }
  0xcb   :  { %v580_v5 = vld [vmem:[#allocation1] sm:$0xff]  ;;  %v581_v6 = vld [vmem:[#allocation1 + $0x9] sm:$0xff] }
  0xcc   :  { %584 = vrot.lane.b32.xlu0 %v580_v5, %s2205_s3  ;;  %586 = vrot.lane.b32.xlu1 %v581_v6, %s2205_s3  ;;  %601 = vst [vmem:[#allocation1] ss:$9 sm:$0xff] %v2318_v56  ;;  %v209_v5 = vpop.permute.xlu2 %208  ;;  %v199_v6 = vadd.f32 %v2278_v19, %v173_v3 }
  0xcd   :  { %603 = vst [vmem:[#allocation1 + $0x1] ss:$9 sm:$0xff] %v2320_v57 }
  0xd4   :  { %v605_v11 = vld [vmem:[#allocation1 + $0x9] sm:$0xff]  ;;  %v604_v12 = vld [vmem:[#allocation1] sm:$0xff]  ;;  %v236_v23 = vpop.permute.xlu2 %235 }
  0xd5   :  { %610 = vrot.lane.b32.xlu0 %v605_v11, %s2206_s9  ;;  %640 = vst [vmem:[#allocation1] ss:$9 sm:$0xff] %v636_v9  ;;  %608 = vrot.lane.b32.xlu2 %v604_v12, %s2206_s9  ;;  %v211_v9 = vpop.permute.xlu0 %210  ;;  %v219_v11 = vperm.slane %v216_v8, 1  ;;  %v238_v29 = vsel %vm237_vm7, %v234_v25, %v236_v23 }
  0xd6   :  { %642 = vst [vmem:[#allocation1 + $0x1] ss:$9 sm:$0xff] %v637_v10  ;;  %v218_v10 = vperm.slane %v216_v8, 0  ;;  %v213_v12 = vsel %vm212_vm6, %v209_v5, %v211_v9  ;;  %v214_v13 = vsel %vm212_vm6, %v211_v9, %v209_v5  ;;  %v247_v32 = vmul.f32 %v243_v27, %v238_v29 }
  0xd7   :  { %v223_v17 = vmul.f32 %v219_v11, %v214_v13 }
  0xd8   :  { %v222_v16 = vmul.f32 %v218_v10, %v213_v12  ;;  %v853_v10 = vsel %vm181_vm1, %v850_v55, %v852_v58 }
  0xd9   :  { %v225_v20 = vadd.f32 %v223_v17, %v200_v7  ;;  %v855_v7 = vrot.slane %v854_v2, 1  ;;  %v858_v11 = vmul.f32 %v853_v10, %v2392_v26 }
  0xda   :  { %v224_v19 = vadd.f32 %v222_v16, %v199_v6 }
  0xdb   :  { %v859_v12 = vmul.f32 %v855_v7, %v2398_v30 }
  0xdc   :  { %v249_v34 = vadd.f32 %v247_v32, %v224_v19  ;;  %v284_v59 = vpop.permute.xlu2 %283 }
  0xdd   :  { %v2346_v21 = vld [vmem:[#allocation1] sm:$0xff]  ;;  %v2348_v22 = vld [vmem:[#allocation1 + $0x9] sm:$0xff]  ;;  %v259_v36 = vpop.permute.xlu0 %258 }
  0xde   :  { %649 = vst [vmem:[#allocation1] ss:$9 sm:$0xff] %v2318_v56  ;;  %v263_v41 = vsel %vm262_vm8, %v259_v36, %v261_v38  ;;  %v264_v42 = vsel %vm262_vm8, %v261_v38, %v259_v36 }
  0xdf   :  { %651 = vst [vmem:[#allocation1 + $0x1] ss:$9 sm:$0xff] %v2320_v57  ;;  %v273_v46 = vmul.f32 %v269_v40, %v264_v42 }
  0xe4   :  { %v317_v13 = vpop.permute.xlu2 %316 }
  0xe5   :  { %v286_v61 = vpop.permute.xlu0 %285 }
  0xe6   :  { %v652_v44 = vld [vmem:[#allocation1] sm:$0xff]  ;;  %v653_v45 = vld [vmem:[#allocation1 + $0x9] sm:$0xff]  ;;  %v289_v1 = vsel %vm287_vm9, %v286_v61, %v284_v59 }
  0xe7   :  { %656 = vrot.lane.b32.xlu1 %v652_v44, %s2207_s10  ;;  %673 = vst [vmem:[#allocation1] ss:$9 sm:$0xff] %v2318_v56  ;;  %658 = vrot.lane.b32.xlu2 %v653_v45, %s2207_s10  ;;  %v272_v45 = vmul.f32 %v268_v39, %v263_v41 }
  0xe8   :  { %675 = vst [vmem:[#allocation1 + $0x1] ss:$9 sm:$0xff] %v2320_v57 }
  0xe9   :  { %v274_v47 = vadd.f32 %v272_v45, %v249_v34 }
  0xec   :  { %v363_v42 = vpop.permute.xlu2 %362 }
  0xef   :  { %v676_v63 = vld [vmem:[#allocation1] sm:$0xff]  ;;  %v677_v0 = vld [vmem:[#allocation1 + $0x9] sm:$0xff] }
  0xf0   :  { %680 = vrot.lane.b32.xlu0 %v676_v63, %s2208_s11  ;;  %682 = vrot.lane.b32.xlu1 %v677_v0, %s2208_s11  ;;  %697 = vst [vmem:[#allocation1] ss:$9 sm:$0xff] %v2318_v56  ;;  %v294_v63 = vperm.slane %v291_v60, 1  ;;  %v288_v0 = vsel %vm287_vm9, %v284_v59, %v286_v61  ;;  %v393_v60 = vld [vmem:[#allocation6 + $0x14] ss:$8 sm:$0x3] }
  0xf1   :  { %699 = vst [vmem:[#allocation1 + $0x1] ss:$9 sm:$0xff] %v2320_v57  ;;  %v297_v5 = vmul.f32 %v293_v62, %v288_v0  ;;  %v395_v62 = vperm.slane %v393_v60, 0 }
  0xf2   :  { %v298_v6 = vmul.f32 %v294_v63, %v289_v1  ;;  %v396_v63 = vperm.slane %v393_v60, 1 }
  0xf3   :  { %v299_v8 = vadd.f32 %v297_v5, %v274_v47 }
  0xf4   :  { %v389_v59 = vpop.permute.xlu2 %388 }
  0xf8   :  { %v701_v14 = vld [vmem:[#allocation1 + $0x9] sm:$0xff]  ;;  %v700_v15 = vld [vmem:[#allocation1] sm:$0xff] }
  0xf9   :  { %706 = vrot.lane.b32.xlu0 %v701_v14, %s2209_s12  ;;  %721 = vst [vmem:[#allocation1] ss:$9 sm:$0xff] %v2318_v56  ;;  %704 = vrot.lane.b32.xlu2 %v700_v15, %s2209_s12  ;;  %v239_v56 = vsel %vm237_vm7, %v236_v23, %v234_v25  ;;  %v321_v14 = vld [vmem:[#allocation6 + $0x11] ss:$8 sm:$0x3]  ;;  %v315_v15 = vpop.permute.xlu1 %314 }
  0xfa   :  { %723 = vst [vmem:[#allocation1 + $0x1] ss:$9 sm:$0xff] %v2320_v57  ;;  %v248_v33 = vmul.f32 %v244_v28, %v239_v56  ;;  %v323_v16 = vperm.slane %v321_v14, 0  ;;  %v324_v17 = vperm.slane %v321_v14, 1  ;;  %v318_v19 = vsel %vm87_vm2, %v315_v15, %v317_v13  ;;  %v339_v56 = vpop.permute.xlu0 %338 }
  0xfc   :  { %v250_v35 = vadd.f32 %v248_v33, %v225_v20  ;;  %v319_v20 = vsel %vm87_vm2, %v317_v13, %v315_v15  ;;  %v328_v27 = vmul.f32 %v324_v17, %v318_v19 }
  0xfd   :  { %v327_v25 = vmul.f32 %v323_v16, %v319_v20 }
  0xfe   :  { %v275_v50 = vadd.f32 %v273_v46, %v250_v35 }
  0xff   :  { %v329_v28 = vadd.f32 %v327_v25, %v299_v8  ;;  %v465_v25 = vld [vmem:[#allocation6 + $0x17] ss:$8 sm:$0x3] }
 0x100   :  { %v300_v9 = vadd.f32 %v298_v6, %v275_v50 }
 0x101   :  { %v724_v57 = vld [vmem:[#allocation1] sm:$0xff]  ;;  %v725_v31 = vld [vmem:[#allocation1 + $0x9] sm:$0xff] }
 0x102   :  { %728 = vrot.lane.b32.xlu1 %v724_v57, %s2210_s13  ;;  %751 = vst [vmem:[#allocation1] ss:$9 sm:$0xff] %v2392_v26  ;;  %730 = vrot.lane.b32.xlu2 %v725_v31, %s2210_s13  ;;  %v330_v29 = vadd.f32 %v328_v27, %v300_v9  ;;  %v345_v57 = vld [vmem:[#allocation6 + $0x12] ss:$8 sm:$0x3]  ;;  %v341_v31 = vpop.permute.xlu1 %340 }
 0x103   :  { %753 = vst [vmem:[#allocation1 + $0x1] ss:$9 sm:$0xff] %v2398_v30  ;;  %v347_v32 = vperm.slane %v345_v57, 0  ;;  %v348_v33 = vperm.slane %v345_v57, 1  ;;  %v342_v34 = vsel %vm111_vm3, %v339_v56, %v341_v31  ;;  %v343_v35 = vsel %vm111_vm3, %v341_v31, %v339_v56 }
 0x104   :  { %v468_v56 = vperm.slane %v465_v25, 1 }
 0x105   :  { %v351_v38 = vmul.f32 %v347_v32, %v343_v35  ;;  %v352_v39 = vmul.f32 %v348_v33, %v342_v34  ;;  %v2478_v32 = vld [vmem:[#allocation3 + $0x14] ss:$8 sm:$0x3] }
 0x107   :  { %v353_v40 = vadd.f32 %v351_v38, %v329_v28  ;;  %v354_v41 = vadd.f32 %v352_v39, %v330_v29  ;;  %v2472_v28 = vld [vmem:[#allocation3 + $0x4] ss:$8 sm:$0x3]  ;;  %v467_v29 = vperm.slane %v465_v25, 0 }
 0x10a   :  { %v754_v43 = vld [vmem:[#allocation1] sm:$0xff]  ;;  %v755_v44 = vld [vmem:[#allocation1 + $0x9] sm:$0xff]  ;;  %v387_v61 = vpop.permute.xlu1 %386 }
 0x10b   :  { %758 = vrot.lane.b32.xlu0 %v754_v43, %s2204_s0  ;;  %760 = vrot.lane.b32.xlu1 %v755_v44, %s2204_s0  ;;  %775 = vst [vmem:[#allocation1] ss:$9 sm:$0xff] %v2392_v26  ;;  %v369_v43 = vld [vmem:[#allocation6 + $0x13] ss:$8 sm:$0x3]  ;;  %v365_v44 = vpop.permute.xlu0 %364  ;;  %v390_v0 = vsel %vm161_vm5, %v387_v61, %v389_v59  ;;  %v391_v1 = vsel %vm161_vm5, %v389_v59, %v387_v61 }
 0x10c   :  { %777 = vst [vmem:[#allocation1 + $0x1] ss:$9 sm:$0xff] %v2398_v30  ;;  %v371_v45 = vperm.slane %v369_v43, 0  ;;  %v372_v46 = vperm.slane %v369_v43, 1  ;;  %v366_v47 = vsel %vm136_vm4, %v363_v42, %v365_v44  ;;  %v367_v50 = vsel %vm136_vm4, %v365_v44, %v363_v42 }
 0x10d   :  { %v400_v5 = vmul.f32 %v396_v63, %v390_v0 }
 0x10e   :  { %v375_v51 = vmul.f32 %v371_v45, %v367_v50  ;;  %v376_v52 = vmul.f32 %v372_v46, %v366_v47 }
 0x110   :  { %v377_v55 = vadd.f32 %v375_v51, %v353_v40  ;;  %v378_v58 = vadd.f32 %v376_v52, %v354_v41  ;;  %v489_v40 = vld [vmem:[#allocation6 + $0x20] ss:$8 sm:$0x3] }
 0x111   :  { %v491_v42 = vperm.slane %v489_v40, 0  ;;  %v492_v43 = vperm.slane %v489_v40, 1 }
 0x112   :  { %v402_v7 = vadd.f32 %v400_v5, %v378_v58 }
 0x113   :  { %v779_v53 = vld [vmem:[#allocation1 + $0x9] sm:$0xff]  ;;  %v778_v54 = vld [vmem:[#allocation1] sm:$0xff]  ;;  %v435_v8 = vpop.permute.xlu0 %434 }
 0x114   :  { %784 = vrot.lane.b32.xlu0 %v779_v53, %s2201_s27  ;;  %799 = vst [vmem:[#allocation1] ss:$9 sm:$0xff] %v2392_v26  ;;  %782 = vrot.lane.b32.xlu2 %v778_v54, %s2201_s27  ;;  %v426_v10 = vadd.f32 %v2310_v49, %v402_v7 }
 0x115   :  { %801 = vst [vmem:[#allocation1 + $0x1] ss:$9 sm:$0xff] %v2398_v30 }
 0x11b   :  { %v461_v27 = vpop.permute.xlu0 %460 }
 0x11c   :  { %v802_v3 = vld [vmem:[#allocation1] sm:$0xff]  ;;  %v803_v4 = vld [vmem:[#allocation1 + $0x9] sm:$0xff] }
 0x11d   :  { %806 = vrot.lane.b32.xlu1 %v802_v3, %s2205_s3  ;;  %823 = vst [vmem:[#allocation1] ss:$9 sm:$0xff] %v2392_v26  ;;  %808 = vrot.lane.b32.xlu2 %v803_v4, %s2205_s3  ;;  %v399_v4 = vmul.f32 %v395_v62, %v391_v1  ;;  %v1070_v1 = vld [vmem:[#allocation6 + $0x50] ss:$8 sm:$0x3] }
 0x11e   :  { %825 = vst [vmem:[#allocation1 + $0x1] ss:$9 sm:$0xff] %v2398_v30 }
 0x11f   :  { %v401_v6 = vadd.f32 %v399_v4, %v377_v55 }
 0x121   :  { %v425_v9 = vadd.f32 %v2308_v48, %v401_v6 }
 0x123   :  { %v507_v46 = vpop.permute.xlu0 %506 }
 0x125   :  { %v826_v23 = vld [vmem:[#allocation1] sm:$0xff]  ;;  %v827_v24 = vld [vmem:[#allocation1 + $0x9] sm:$0xff] }
 0x126   :  { %830 = vrot.lane.b32.xlu0 %v826_v23, %s2206_s9  ;;  %832 = vrot.lane.b32.xlu1 %v827_v24, %s2206_s9  ;;  %862 = vst [vmem:[#allocation1] ss:$9 sm:$0xff] %v858_v11  ;;  %v441_v11 = vld [vmem:[#allocation6 + $0x16] ss:$8 sm:$0x3]  ;;  %v459_v24 = vpop.permute.xlu2 %458 }
 0x127   :  { %864 = vst [vmem:[#allocation1 + $0x1] ss:$9 sm:$0xff] %v859_v12  ;;  %v437_v12 = vpop.permute.xlu1 %436  ;;  %v443_v13 = vperm.slane %v441_v11, 0  ;;  %v444_v14 = vperm.slane %v441_v11, 1  ;;  %v462_v57 = vsel %vm237_vm7, %v459_v24, %v461_v27  ;;  %v463_v31 = vsel %vm237_vm7, %v461_v27, %v459_v24 }
 0x128   :  { %v438_v15 = vsel %vm212_vm6, %v435_v8, %v437_v12  ;;  %v439_v16 = vsel %vm212_vm6, %v437_v12, %v435_v8  ;;  %v472_v34 = vmul.f32 %v468_v56, %v463_v31  ;;  %v1073_v11 = vperm.slane %v1070_v1, 1 }
 0x129   :  { %v447_v20 = vmul.f32 %v443_v13, %v438_v15  ;;  %v448_v23 = vmul.f32 %v444_v14, %v439_v16 }
 0x12b   :  { %v449_v48 = vadd.f32 %v447_v20, %v425_v9  ;;  %v450_v49 = vadd.f32 %v448_v23, %v426_v10  ;;  %v1074_v20 = vrot.slane %v1073_v11, 7 }
 0x12c   :  { %v539_v4 = vpop.permute.xlu0 %538 }
 0x12d   :  { %v474_v38 = vadd.f32 %v472_v34, %v450_v49 }
 0x12e   :  { %v2440_v36 = vld [vmem:[#allocation1] sm:$0xff]  ;;  %v2442_v37 = vld [vmem:[#allocation1 + $0x9] sm:$0xff]  ;;  %v485_v39 = vpop.permute.xlu2 %484 }
 0x12f   :  { %871 = vst [vmem:[#allocation1] ss:$9 sm:$0xff] %v2392_v26  ;;  %v483_v41 = vpop.permute.xlu1 %482 }
 0x130   :  { %873 = vst [vmem:[#allocation1 + $0x1] ss:$9 sm:$0xff] %v2398_v30  ;;  %v486_v44 = vsel %vm262_vm8, %v483_v41, %v485_v39  ;;  %v487_v45 = vsel %vm262_vm8, %v485_v39, %v483_v41 }
 0x131   :  { %v495_v51 = vmul.f32 %v491_v42, %v486_v44  ;;  %v496_v52 = vmul.f32 %v492_v43, %v487_v45  ;;  %v591_v42 = vld [vmem:[#allocation6 + $0x24] ss:$8 sm:$0x3]  ;;  %v615_v45 = vld [vmem:[#allocation6 + $0x25] ss:$8 sm:$0x3] }
 0x133   :  { %v498_v58 = vadd.f32 %v496_v52, %v474_v38 }
 0x136   :  { %v537_v0 = vpop.permute.xlu2 %536 }
 0x137   :  { %v875_v53 = vld [vmem:[#allocation1 + $0x9] sm:$0xff]  ;;  %v874_v54 = vld [vmem:[#allocation1] sm:$0xff]  ;;  %v509_v63 = vpop.permute.xlu1 %508  ;;  %v540_v7 = vsel %vm87_vm2, %v537_v0, %v539_v4  ;;  %v541_v8 = vsel %vm87_vm2, %v539_v4, %v537_v0 }
 0x138   :  { %880 = vrot.lane.b32.xlu0 %v875_v53, %s2207_s10  ;;  %895 = vst [vmem:[#allocation1] ss:$9 sm:$0xff] %v2392_v26  ;;  %878 = vrot.lane.b32.xlu2 %v874_v54, %s2207_s10  ;;  %v513_v53 = vld [vmem:[#allocation6 + $0x21] ss:$8 sm:$0x3] }
 0x139   :  { %897 = vst [vmem:[#allocation1 + $0x1] ss:$9 sm:$0xff] %v2398_v30  ;;  %v543_v54 = vld [vmem:[#allocation6 + $0x22] ss:$8 sm:$0x3]  ;;  %v515_v59 = vperm.slane %v513_v53, 0 }
 0x13a   :  { %v516_v60 = vperm.slane %v513_v53, 1  ;;  %v545_v61 = vperm.slane %v543_v54, 0  ;;  %v546_v62 = vperm.slane %v543_v54, 1  ;;  %v617_v53 = vperm.slane %v615_v45, 0 }
 0x13b   :  { %v618_v54 = vperm.slane %v615_v45, 1 }
 0x13c   :  { %v549_v9 = vmul.f32 %v545_v61, %v541_v8  ;;  %v550_v10 = vmul.f32 %v546_v62, %v540_v7  ;;  %v663_v8 = vld [vmem:[#allocation6 + $0x27] ss:$8 sm:$0x3] }
 0x13d   :  { %v666_v11 = vperm.slane %v663_v8, 1 }
 0x13e   :  { %v563_v23 = vpop.permute.xlu2 %562  ;;  %v585_v56 = vpop.permute.xlu0 %584 }
 0x13f   :  { %v561_v49 = vpop.permute.xlu1 %560 }
 0x140   :  { %v898_v2 = vld [vmem:[#allocation1] sm:$0xff]  ;;  %v899_v3 = vld [vmem:[#allocation1 + $0x9] sm:$0xff]  ;;  %v564_v27 = vsel %vm111_vm3, %v561_v49, %v563_v23 }
 0x141   :  { %902 = vrot.lane.b32.xlu1 %v898_v2, %s2208_s11  ;;  %919 = vst [vmem:[#allocation1] ss:$9 sm:$0xff] %v2392_v26  ;;  %904 = vrot.lane.b32.xlu2 %v899_v3, %s2208_s11  ;;  %v510_v2 = vsel %vm287_vm9, %v507_v46, %v509_v63  ;;  %v511_v3 = vsel %vm287_vm9, %v509_v63, %v507_v46  ;;  %v593_v46 = vperm.slane %v591_v42, 0 }
 0x142   :  { %921 = vst [vmem:[#allocation1 + $0x1] ss:$9 sm:$0xff] %v2398_v30  ;;  %v519_v5 = vmul.f32 %v515_v59, %v510_v2  ;;  %v520_v6 = vmul.f32 %v516_v60, %v511_v3 }
 0x144   :  { %v522_v15 = vadd.f32 %v520_v6, %v498_v58 }
 0x146   :  { %v609_v44 = vpop.permute.xlu2 %608 }
 0x147   :  { %v587_v43 = vpop.permute.xlu1 %586  ;;  %v611_v52 = vpop.permute.xlu0 %610 }
 0x148   :  { %v613_v58 = vsel %vm161_vm5, %v611_v52, %v609_v44 }
 0x149   :  { %v922_v17 = vld [vmem:[#allocation1] sm:$0xff]  ;;  %v923_v19 = vld [vmem:[#allocation1 + $0x9] sm:$0xff]  ;;  %v621_v63 = vmul.f32 %v617_v53, %v613_v58 }
 0x14a   :  { %926 = vrot.lane.b32.xlu0 %v922_v17, %s2209_s12  ;;  %928 = vrot.lane.b32.xlu1 %v923_v19, %s2209_s12  ;;  %943 = vst [vmem:[#allocation1] ss:$9 sm:$0xff] %v2392_v26  ;;  %v552_v17 = vadd.f32 %v550_v10, %v522_v15  ;;  %v1072_v19 = vperm.slane %v1070_v1, 0  ;;  %v665_v10 = vperm.slane %v663_v8, 0 }
 0x14b   :  { %945 = vst [vmem:[#allocation1 + $0x1] ss:$9 sm:$0xff] %v2398_v30  ;;  %v471_v30 = vmul.f32 %v467_v29, %v462_v57  ;;  %v565_v29 = vsel %vm111_vm3, %v563_v23, %v561_v49  ;;  %v711_v49 = vld [vmem:[#allocation6 + $0x31] ss:$8 sm:$0x3] }
 0x14c   :  { %v1076_v57 = vsel %vm183_vm0, %v1072_v19, %v1074_v20  ;;  %v1075_v39 = vsel %vm181_vm1, %v1072_v19, %v1074_v20  ;;  %v687_v20 = vld [vmem:[#allocation6 + $0x30] ss:$8 sm:$0x3] }
 0x14d   :  { %v473_v35 = vadd.f32 %v471_v30, %v449_v48  ;;  %v567_v48 = vld [vmem:[#allocation6 + $0x23] ss:$8 sm:$0x3]  ;;  %v1077_v34 = vrot.slane %v1076_v57, 1  ;;  %v1080_v40 = vmul.f32 %v1075_v39, %v2472_v28  ;;  %v713_v57 = vperm.slane %v711_v49, 0 }
 0x14e   :  { %v569_v24 = vperm.slane %v567_v48, 0  ;;  %v570_v25 = vperm.slane %v567_v48, 1  ;;  %v659_v7 = vpop.permute.xlu2 %658 }
 0x14f   :  { %v497_v55 = vadd.f32 %v495_v51, %v473_v35  ;;  %v1081_v41 = vmul.f32 %v1077_v34, %v2478_v32  ;;  %v589_v51 = vsel %vm136_vm4, %v587_v43, %v585_v56 }
 0x150   :  { %v574_v30 = vmul.f32 %v570_v25, %v564_v27  ;;  %v597_v61 = vmul.f32 %v593_v46, %v589_v51  ;;  %v690_v25 = vperm.slane %v687_v20, 1  ;;  %v735_v46 = vld [vmem:[#allocation6 + $0x32] ss:$8 sm:$0x3] }
 0x151   :  { %v521_v14 = vadd.f32 %v519_v5, %v497_v55  ;;  %v612_v55 = vsel %vm161_vm5, %v609_v44, %v611_v52  ;;  %v738_v51 = vperm.slane %v735_v46, 1 }
 0x152   :  { %v947_v26 = vld [vmem:[#allocation1 + $0x9] sm:$0xff]  ;;  %v946_v33 = vld [vmem:[#allocation1] sm:$0xff]  ;;  %v576_v38 = vadd.f32 %v574_v30, %v552_v17  ;;  %v622_v0 = vmul.f32 %v618_v54, %v612_v55 }
 0x153   :  { %952 = vrot.lane.b32.xlu0 %v947_v26, %s2210_s13  ;;  %973 = vst [vmem:[#allocation1] ss:$9 sm:$0xff] %v2472_v28  ;;  %950 = vrot.lane.b32.xlu2 %v946_v33, %s2210_s13  ;;  %v551_v16 = vadd.f32 %v549_v9, %v521_v14  ;;  %v573_v33 = vmul.f32 %v569_v24, %v565_v29  ;;  %v689_v24 = vperm.slane %v687_v20, 0 }
 0x154   :  { %975 = vst [vmem:[#allocation1 + $0x1] ss:$9 sm:$0xff] %v2478_v32 }
 0x155   :  { %v575_v35 = vadd.f32 %v573_v33, %v551_v16 }
 0x156   :  { %v705_v48 = vpop.permute.xlu2 %704 }
 0x157   :  { %v599_v1 = vadd.f32 %v597_v61, %v575_v35 }
 0x159   :  { %v623_v3 = vadd.f32 %v621_v63, %v599_v1  ;;  %v657_v9 = vpop.permute.xlu1 %656  ;;  %v765_v63 = vld [vmem:[#allocation6 + $0x33] ss:$8 sm:$0x3] }
 0x15b   :  { %v976_v47 = vld [vmem:[#allocation1] sm:$0xff]  ;;  %v977_v50 = vld [vmem:[#allocation1 + $0x9] sm:$0xff]  ;;  %v647_v5 = vadd.f32 %v2346_v21, %v623_v3  ;;  %v767_v3 = vperm.slane %v765_v63, 0 }
 0x15c   :  { %980 = vrot.lane.b32.xlu1 %v976_v47, %s2204_s0  ;;  %997 = vst [vmem:[#allocation1] ss:$9 sm:$0xff] %v2472_v28  ;;  %982 = vrot.lane.b32.xlu2 %v977_v50, %s2204_s0  ;;  %v594_v47 = vperm.slane %v591_v42, 1  ;;  %v588_v50 = vsel %vm136_vm4, %v585_v56, %v587_v43 }
 0x15d   :  { %999 = vst [vmem:[#allocation1 + $0x1] ss:$9 sm:$0xff] %v2478_v32 }
 0x15e   :  { %v598_v62 = vmul.f32 %v594_v47, %v588_v50  ;;  %v731_v45 = vpop.permute.xlu2 %730  ;;  %v737_v50 = vperm.slane %v735_v46, 0 }
 0x160   :  { %v600_v2 = vadd.f32 %v598_v62, %v576_v38 }
 0x162   :  { %v624_v4 = vadd.f32 %v622_v0, %v600_v2  ;;  %v681_v14 = vpop.permute.xlu0 %680  ;;  %v683_v23 = vpop.permute.xlu1 %682  ;;  %v789_v2 = vld [vmem:[#allocation6 + $0x34] ss:$8 sm:$0x3] }
 0x163   :  { %v684_v27 = vsel %vm237_vm7, %v681_v14, %v683_v23  ;;  %v685_v29 = vsel %vm237_vm7, %v683_v23, %v681_v14  ;;  %v791_v8 = vperm.slane %v789_v2, 0 }
 0x164   :  { %v1000_v12 = vld [vmem:[#allocation1] sm:$0xff]  ;;  %v1001_v13 = vld [vmem:[#allocation1 + $0x9] sm:$0xff]  ;;  %v648_v6 = vadd.f32 %v2348_v22, %v624_v4  ;;  %v693_v30 = vmul.f32 %v689_v24, %v684_v27  ;;  %v694_v34 = vmul.f32 %v690_v25, %v685_v29  ;;  %v768_v4 = vperm.slane %v765_v63, 1 }
 0x165   :  { %1004 = vrot.lane.b32.xlu0 %v1000_v12, %s2201_s27  ;;  %1006 = vrot.lane.b32.xlu1 %v1001_v13, %s2201_s27  ;;  %1021 = vst [vmem:[#allocation1] ss:$9 sm:$0xff] %v2472_v28  ;;  %v660_v12 = vsel %vm212_vm6, %v657_v9, %v659_v7  ;;  %v661_v13 = vsel %vm212_vm6, %v659_v7, %v657_v9  ;;  %v792_v9 = vperm.slane %v789_v2, 1  ;;  %v813_v24 = vld [vmem:[#allocation6 + $0x35] ss:$8 sm:$0x3] }
 0x166   :  { %1023 = vst [vmem:[#allocation1 + $0x1] ss:$9 sm:$0xff] %v2478_v32  ;;  %v669_v17 = vmul.f32 %v665_v10, %v660_v12  ;;  %v670_v21 = vmul.f32 %v666_v11, %v661_v13  ;;  %v2570_v27 = vld [vmem:[#allocation3 + $0x5] ss:$8 sm:$0x3]  ;;  %v815_v29 = vperm.slane %v813_v24, 0 }
 0x168   :  { %v671_v22 = vadd.f32 %v669_v17, %v647_v5  ;;  %v672_v19 = vadd.f32 %v670_v21, %v648_v6 }
 0x16a   :  { %v696_v42 = vadd.f32 %v694_v34, %v672_v19 }
 0x16b   :  { %v707_v56 = vpop.permute.xlu0 %706 }
 0x16c   :  { %v709_v33 = vsel %vm262_vm8, %v707_v56, %v705_v48 }
 0x16d   :  { %v1025_v31 = vld [vmem:[#allocation1 + $0x9] sm:$0xff]  ;;  %v1024_v26 = vld [vmem:[#allocation1] sm:$0xff] }
 0x16e   :  { %1030 = vrot.lane.b32.xlu0 %v1025_v31, %s2205_s3  ;;  %1045 = vst [vmem:[#allocation1] ss:$9 sm:$0xff] %v2472_v28  ;;  %1028 = vrot.lane.b32.xlu2 %v1024_v26, %s2205_s3  ;;  %v714_v31 = vperm.slane %v711_v49, 1  ;;  %v708_v26 = vsel %vm262_vm8, %v705_v48, %v707_v56  ;;  %v783_v1 = vpop.permute.xlu2 %782  ;;  %v816_v56 = vperm.slane %v813_v24, 1 }
 0x16f   :  { %1047 = vst [vmem:[#allocation1 + $0x1] ss:$9 sm:$0xff] %v2478_v32  ;;  %v717_v39 = vmul.f32 %v713_v57, %v708_v26  ;;  %v2576_v26 = vld [vmem:[#allocation3 + $0x15] ss:$8 sm:$0x3] }
 0x174   :  { %v729_v47 = vpop.permute.xlu1 %728 }
 0x175   :  { %v732_v52 = vsel %vm287_vm9, %v729_v47, %v731_v45  ;;  %v733_v54 = vsel %vm287_vm9, %v731_v45, %v729_v47 }
 0x176   :  { %v1048_v59 = vld [vmem:[#allocation1] sm:$0xff]  ;;  %v1049_v60 = vld [vmem:[#allocation1 + $0x9] sm:$0xff] }
 0x177   :  { %1052 = vrot.lane.b32.xlu1 %v1048_v59, %s2206_s9  ;;  %1084 = vst [vmem:[#allocation1] ss:$9 sm:$0xff] %v1080_v40  ;;  %1054 = vrot.lane.b32.xlu2 %v1049_v60, %s2206_s9  ;;  %v718_v40 = vmul.f32 %v714_v31, %v709_v33  ;;  %v741_v59 = vmul.f32 %v737_v50, %v732_v52  ;;  %v809_v49 = vpop.permute.xlu2 %808 }
 0x178   :  { %1086 = vst [vmem:[#allocation1 + $0x1] ss:$9 sm:$0xff] %v1081_v41  ;;  %v695_v41 = vadd.f32 %v693_v30, %v671_v22  ;;  %v742_v60 = vmul.f32 %v738_v51, %v733_v54 }
 0x179   :  { %v720_v44 = vadd.f32 %v718_v40, %v696_v42  ;;  %v885_v42 = vld [vmem:[#allocation6 + $0x40] ss:$8 sm:$0x3] }
 0x17a   :  { %v719_v43 = vadd.f32 %v717_v39, %v695_v41  ;;  %v837_v39 = vld [vmem:[#allocation6 + $0x36] ss:$8 sm:$0x3]  ;;  %v887_v50 = vperm.slane %v885_v42, 0  ;;  %v888_v51 = vperm.slane %v885_v42, 1 }
 0x17b   :  { %v744_v62 = vadd.f32 %v742_v60, %v720_v44  ;;  %v840_v44 = vperm.slane %v837_v39, 1 }
 0x17c   :  { %v743_v61 = vadd.f32 %v741_v59, %v719_v43  ;;  %v839_v43 = vperm.slane %v837_v39, 0 }
 0x17d   :  { %v759_v53 = vpop.permute.xlu0 %758  ;;  %v761_v0 = vpop.permute.xlu1 %760 }
 0x17e   :  { %v762_v5 = vsel %vm87_vm2, %v759_v53, %v761_v0  ;;  %v763_v6 = vsel %vm87_vm2, %v761_v0, %v759_v53  ;;  %v909_v0 = vld [vmem:[#allocation6 + $0x41] ss:$8 sm:$0x3] }
 0x17f   :  { %v2532_v15 = vld [vmem:[#allocation1] sm:$0xff]  ;;  %v2534_v16 = vld [vmem:[#allocation1 + $0x9] sm:$0xff]  ;;  %v771_v14 = vmul.f32 %v767_v3, %v763_v6  ;;  %v772_v17 = vmul.f32 %v768_v4, %v762_v5  ;;  %v911_v3 = vperm.slane %v909_v0, 0  ;;  %v912_v4 = vperm.slane %v909_v0, 1 }
 0x180   :  { %1093 = vst [vmem:[#allocation1] ss:$9 sm:$0xff] %v2472_v28 }
 0x181   :  { %1095 = vst [vmem:[#allocation1 + $0x1] ss:$9 sm:$0xff] %v2478_v32  ;;  %v773_v19 = vadd.f32 %v771_v14, %v743_v61  ;;  %v774_v20 = vadd.f32 %v772_v17, %v744_v62 }
 0x186   :  { %v785_v7 = vpop.permute.xlu0 %784 }
 0x187   :  { %v786_v10 = vsel %vm111_vm3, %v783_v1, %v785_v7  ;;  %v787_v11 = vsel %vm111_vm3, %v785_v7, %v783_v1  ;;  %v1292_v7 = vld [vmem:[#allocation6 + $0x61] ss:$8 sm:$0x3] }
 0x188   :  { %v1097_v35 = vld [vmem:[#allocation1 + $0x9] sm:$0xff]  ;;  %v1096_v38 = vld [vmem:[#allocation1] sm:$0xff]  ;;  %v795_v21 = vmul.f32 %v791_v8, %v787_v11  ;;  %v796_v22 = vmul.f32 %v792_v9, %v786_v10 }
 0x189   :  { %1102 = vrot.lane.b32.xlu1 %v1097_v35, %s2207_s10  ;;  %1100 = vrot.lane.b32.xlu0 %v1096_v38, %s2207_s10  ;;  %1117 = vst [vmem:[#allocation1] ss:$9 sm:$0xff] %v2472_v28 }
 0x18a   :  { %1119 = vst [vmem:[#allocation1 + $0x1] ss:$9 sm:$0xff] %v2478_v32  ;;  %v797_v23 = vadd.f32 %v795_v21, %v773_v19  ;;  %v798_v48 = vadd.f32 %v796_v22, %v774_v20  ;;  %v1294_v22 = vperm.slane %v1292_v7, 0  ;;  %v933_v20 = vld [vmem:[#allocation6 + $0x42] ss:$8 sm:$0x3] }
 0x18f   :  { %v807_v25 = vpop.permute.xlu1 %806 }
 0x190   :  { %v811_v57 = vsel %vm136_vm4, %v809_v49, %v807_v25 }
 0x191   :  { %v1121_v55 = vld [vmem:[#allocation1 + $0x9] sm:$0xff]  ;;  %v1120_v58 = vld [vmem:[#allocation1] sm:$0xff]  ;;  %v819_v30 = vmul.f32 %v815_v29, %v811_v57 }
 0x192   :  { %1126 = vrot.lane.b32.xlu0 %v1121_v55, %s2208_s11  ;;  %1141 = vst [vmem:[#allocation1] ss:$9 sm:$0xff] %v2472_v28  ;;  %1124 = vrot.lane.b32.xlu2 %v1120_v58, %s2208_s11  ;;  %v879_v41 = vpop.permute.xlu2 %878 }
 0x193   :  { %1143 = vst [vmem:[#allocation1 + $0x1] ss:$9 sm:$0xff] %v2478_v32  ;;  %v821_v35 = vadd.f32 %v819_v30, %v797_v23 }
 0x198   :  { %v831_v31 = vpop.permute.xlu0 %830  ;;  %v833_v40 = vpop.permute.xlu1 %832 }
 0x199   :  { %v834_v45 = vsel %vm161_vm5, %v831_v31, %v833_v40  ;;  %v835_v46 = vsel %vm161_vm5, %v833_v40, %v831_v31 }
 0x19a   :  { %v1144_v12 = vld [vmem:[#allocation1] sm:$0xff]  ;;  %v1145_v13 = vld [vmem:[#allocation1 + $0x9] sm:$0xff]  ;;  %v843_v58 = vmul.f32 %v839_v43, %v835_v46  ;;  %v844_v59 = vmul.f32 %v840_v44, %v834_v45 }
 0x19b   :  { %1148 = vrot.lane.b32.xlu1 %v1144_v12, %s2209_s12  ;;  %1165 = vst [vmem:[#allocation1] ss:$9 sm:$0xff] %v2472_v28  ;;  %1150 = vrot.lane.b32.xlu2 %v1145_v13, %s2209_s12  ;;  %v810_v28 = vsel %vm136_vm4, %v807_v25, %v809_v49  ;;  %v905_v8 = vpop.permute.xlu2 %904  ;;  %v936_v49 = vperm.slane %v933_v20, 1 }
 0x19c   :  { %1167 = vst [vmem:[#allocation1 + $0x1] ss:$9 sm:$0xff] %v2478_v32  ;;  %v820_v34 = vmul.f32 %v816_v56, %v810_v28  ;;  %v845_v60 = vadd.f32 %v843_v58, %v821_v35 }
 0x19e   :  { %v822_v38 = vadd.f32 %v820_v34, %v798_v48  ;;  %v869_v1 = vadd.f32 %v2440_v36, %v845_v60  ;;  %v1295_v36 = vperm.slane %v1292_v7, 1  ;;  %v935_v48 = vperm.slane %v933_v20, 0  ;;  %v957_v34 = vld [vmem:[#allocation6 + $0x43] ss:$8 sm:$0x3] }
 0x19f   :  { %v959_v39 = vperm.slane %v957_v34, 0  ;;  %v960_v40 = vperm.slane %v957_v34, 1 }
 0x1a0   :  { %v846_v61 = vadd.f32 %v844_v59, %v822_v38  ;;  %v1296_v19 = vrot.slane %v1295_v36, 7 }
 0x1a2   :  { %v870_v2 = vadd.f32 %v2442_v37, %v846_v61  ;;  %v1298_v56 = vsel %vm183_vm0, %v1294_v22, %v1296_v19  ;;  %v1297_v35 = vsel %vm181_vm1, %v1294_v22, %v1296_v19  ;;  %v1035_v22 = vld [vmem:[#allocation6 + $0x46] ss:$8 sm:$0x3] }
 0x1a3   :  { %v1169_v32 = vld [vmem:[#allocation1 + $0x9] sm:$0xff]  ;;  %v1168_v33 = vld [vmem:[#allocation1] sm:$0xff]  ;;  %v1299_v38 = vrot.slane %v1298_v56, 1  ;;  %v1037_v20 = vperm.slane %v1035_v22, 0 }
 0x1a4   :  { %1174 = vrot.lane.b32.xlu1 %v1169_v32, %s2210_s13  ;;  %1172 = vrot.lane.b32.xlu0 %v1168_v33, %s2210_s13  ;;  %1195 = vst [vmem:[#allocation1] ss:$9 sm:$0xff] %v2570_v27 }
 0x1a5   :  { %1197 = vst [vmem:[#allocation1 + $0x1] ss:$9 sm:$0xff] %v2576_v26  ;;  %v1303_v43 = vmul.f32 %v1299_v38, %v2576_v26 }
 0x1aa   :  { %v881_v47 = vpop.permute.xlu0 %880 }
 0x1ab   :  { %v882_v52 = vsel %vm212_vm6, %v879_v41, %v881_v47  ;;  %v883_v53 = vsel %vm212_vm6, %v881_v47, %v879_v41  ;;  %v1302_v41 = vmul.f32 %v1297_v35, %v2570_v27 }
 0x1ac   :  { %v1199_v54 = vld [vmem:[#allocation1 + $0x9] sm:$0xff]  ;;  %v1198_v55 = vld [vmem:[#allocation1] sm:$0xff]  ;;  %v891_v62 = vmul.f32 %v887_v50, %v882_v52  ;;  %v892_v63 = vmul.f32 %v888_v51, %v883_v53 }
 0x1ad   :  { %1204 = vrot.lane.b32.xlu0 %v1199_v54, %s2204_s0  ;;  %1219 = vst [vmem:[#allocation1] ss:$9 sm:$0xff] %v2570_v27  ;;  %1202 = vrot.lane.b32.xlu2 %v1198_v55, %s2204_s0  ;;  %v951_v42 = vpop.permute.xlu2 %950  ;;  %v987_v55 = vld [vmem:[#allocation6 + $0x44] ss:$8 sm:$0x3] }
 0x1ae   :  { %1221 = vst [vmem:[#allocation1 + $0x1] ss:$9 sm:$0xff] %v2576_v26  ;;  %v893_v5 = vadd.f32 %v891_v62, %v869_v1  ;;  %v894_v6 = vadd.f32 %v892_v63, %v870_v2  ;;  %v989_v58 = vperm.slane %v987_v55, 0  ;;  %v990_v59 = vperm.slane %v987_v55, 1 }
 0x1b3   :  { %v903_v9 = vpop.permute.xlu1 %902 }
 0x1b4   :  { %v906_v10 = vsel %vm237_vm7, %v903_v9, %v905_v8  ;;  %v907_v11 = vsel %vm237_vm7, %v905_v8, %v903_v9 }
 0x1b5   :  { %v1222_v12 = vld [vmem:[#allocation1] sm:$0xff]  ;;  %v1223_v13 = vld [vmem:[#allocation1 + $0x9] sm:$0xff]  ;;  %v915_v14 = vmul.f32 %v911_v3, %v906_v10  ;;  %v916_v17 = vmul.f32 %v912_v4, %v907_v11 }
 0x1b6   :  { %1226 = vrot.lane.b32.xlu1 %v1222_v12, %s2201_s27  ;;  %1243 = vst [vmem:[#allocation1] ss:$9 sm:$0xff] %v2570_v27  ;;  %1228 = vrot.lane.b32.xlu2 %v1223_v13, %s2201_s27  ;;  %v983_v60 = vpop.permute.xlu2 %982 }
 0x1b7   :  { %1245 = vst [vmem:[#allocation1 + $0x1] ss:$9 sm:$0xff] %v2576_v26  ;;  %v917_v37 = vadd.f32 %v915_v14, %v893_v5  ;;  %v918_v21 = vadd.f32 %v916_v17, %v894_v6  ;;  %v1011_v6 = vld [vmem:[#allocation6 + $0x45] ss:$8 sm:$0x3] }
 0x1b8   :  { %v1013_v7 = vperm.slane %v1011_v6, 0  ;;  %v1014_v8 = vperm.slane %v1011_v6, 1 }
 0x1bc   :  { %v927_v23 = vpop.permute.xlu0 %926  ;;  %v929_v24 = vpop.permute.xlu1 %928 }
 0x1bd   :  { %v930_v25 = vsel %vm262_vm8, %v927_v23, %v929_v24  ;;  %v931_v29 = vsel %vm262_vm8, %v929_v24, %v927_v23  ;;  %v1038_v23 = vperm.slane %v1035_v22, 1 }
 0x1be   :  { %v1247_v28 = vld [vmem:[#allocation1 + $0x9] sm:$0xff]  ;;  %v1246_v57 = vld [vmem:[#allocation1] sm:$0xff]  ;;  %v939_v31 = vmul.f32 %v935_v48, %v930_v25  ;;  %v940_v32 = vmul.f32 %v936_v49, %v931_v29 }
 0x1bf   :  { %1252 = vrot.lane.b32.xlu1 %v1247_v28, %s2205_s3  ;;  %1250 = vrot.lane.b32.xlu0 %v1246_v57, %s2205_s3  ;;  %1267 = vst [vmem:[#allocation1] ss:$9 sm:$0xff] %v2570_v27 }
 0x1c0   :  { %1269 = vst [vmem:[#allocation1 + $0x1] ss:$9 sm:$0xff] %v2576_v26  ;;  %v941_v33 = vadd.f32 %v939_v31, %v917_v37  ;;  %v942_v30 = vadd.f32 %v940_v32, %v918_v21  ;;  %v1059_v32 = vld [vmem:[#allocation6 + $0x47] ss:$8 sm:$0x3] }
 0x1c1   :  { %v1062_v34 = vperm.slane %v1059_v32, 1 }
 0x1c5   :  { %v953_v44 = vpop.permute.xlu0 %952 }
 0x1c6   :  { %v954_v45 = vsel %vm287_vm9, %v951_v42, %v953_v44  ;;  %v955_v46 = vsel %vm287_vm9, %v953_v44, %v951_v42 }
 0x1c7   :  { %v1271_v47 = vld [vmem:[#allocation1 + $0x9] sm:$0xff]  ;;  %v1270_v50 = vld [vmem:[#allocation1] sm:$0xff]  ;;  %v963_v51 = vmul.f32 %v959_v39, %v954_v45  ;;  %v964_v52 = vmul.f32 %v960_v40, %v955_v46 }
 0x1c8   :  { %1276 = vrot.lane.b32.xlu0 %v1271_v47, %s2206_s9  ;;  %1306 = vst [vmem:[#allocation1] ss:$9 sm:$0xff] %v1302_v41  ;;  %1274 = vrot.lane.b32.xlu2 %v1270_v50, %s2206_s9  ;;  %v1029_v19 = vpop.permute.xlu2 %1028  ;;  %v2656_v46 = vld [vmem:[#allocation3 + $0x6] ss:$8 sm:$0x3] }
 0x1c9   :  { %1308 = vst [vmem:[#allocation1 + $0x1] ss:$9 sm:$0xff] %v1303_v43  ;;  %v965_v53 = vadd.f32 %v963_v51, %v941_v33  ;;  %v966_v54 = vadd.f32 %v964_v52, %v942_v30  ;;  %v1061_v30 = vperm.slane %v1059_v32, 0  ;;  %v2658_v47 = vld [vmem:[#allocation3 + $0x16] ss:$8 sm:$0x3] }
 0x1ce   :  { %v981_v61 = vpop.permute.xlu1 %980 }
 0x1cf   :  { %v984_v62 = vsel %vm87_vm2, %v981_v61, %v983_v60  ;;  %v985_v63 = vsel %vm87_vm2, %v983_v60, %v981_v61 }
 0x1d0   :  { %v2626_v0 = vld [vmem:[#allocation1] sm:$0xff]  ;;  %v2628_v1 = vld [vmem:[#allocation1 + $0x9] sm:$0xff]  ;;  %v993_v2 = vmul.f32 %v989_v58, %v985_v63  ;;  %v994_v3 = vmul.f32 %v990_v59, %v984_v62 }
 0x1d1   :  { %1315 = vst [vmem:[#allocation1] ss:$9 sm:$0xff] %v2570_v27  ;;  %v1055_v33 = vpop.permute.xlu2 %1054 }
 0x1d2   :  { %1317 = vst [vmem:[#allocation1 + $0x1] ss:$9 sm:$0xff] %v2576_v26  ;;  %v995_v4 = vadd.f32 %v993_v2, %v965_v53  ;;  %v996_v5 = vadd.f32 %v994_v3, %v966_v54 }
 0x1d7   :  { %v1005_v9 = vpop.permute.xlu0 %1004  ;;  %v1007_v10 = vpop.permute.xlu1 %1006 }
 0x1d8   :  { %v1008_v11 = vsel %vm111_vm3, %v1005_v9, %v1007_v10  ;;  %v1009_v12 = vsel %vm111_vm3, %v1007_v10, %v1005_v9  ;;  %v1514_v9 = vld [vmem:[#allocation6 + $0x72] ss:$8 sm:$0x3] }
 0x1d9   :  { %v1318_v13 = vld [vmem:[#allocation1] sm:$0xff]  ;;  %v1319_v14 = vld [vmem:[#allocation1 + $0x9] sm:$0xff]  ;;  %v1017_v17 = vmul.f32 %v1013_v7, %v1009_v12  ;;  %v1018_v36 = vmul.f32 %v1014_v8, %v1008_v11  ;;  %v1516_v22 = vperm.slane %v1514_v9, 0 }
 0x1da   :  { %1322 = vrot.lane.b32.xlu1 %v1318_v13, %s2207_s10  ;;  %1339 = vst [vmem:[#allocation1] ss:$9 sm:$0xff] %v2570_v27  ;;  %1324 = vrot.lane.b32.xlu2 %v1319_v14, %s2207_s10 }
 0x1db   :  { %1341 = vst [vmem:[#allocation1 + $0x1] ss:$9 sm:$0xff] %v2576_v26  ;;  %v1019_v37 = vadd.f32 %v1017_v17, %v995_v4  ;;  %v1020_v21 = vadd.f32 %v1018_v36, %v996_v5  ;;  %v1131_v5 = vld [vmem:[#allocation6 + $0x52] ss:$8 sm:$0x3]  ;;  %v1517_v17 = vperm.slane %v1514_v9, 1 }
 0x1dc   :  { %v1133_v7 = vperm.slane %v1131_v5, 0  ;;  %v1134_v8 = vperm.slane %v1131_v5, 1 }
 0x1e0   :  { %v1031_v48 = vpop.permute.xlu0 %1030 }
 0x1e1   :  { %v1032_v49 = vsel %vm136_vm4, %v1029_v19, %v1031_v48  ;;  %v1033_v24 = vsel %vm136_vm4, %v1031_v48, %v1029_v19  ;;  %v1518_v19 = vrot.slane %v1517_v17, 7 }
 0x1e2   :  { %v1343_v25 = vld [vmem:[#allocation1 + $0x9] sm:$0xff]  ;;  %v1342_v29 = vld [vmem:[#allocation1] sm:$0xff]  ;;  %v1041_v56 = vmul.f32 %v1037_v20, %v1033_v24  ;;  %v1042_v28 = vmul.f32 %v1038_v23, %v1032_v49 }
 0x1e3   :  { %1348 = vrot.lane.b32.xlu1 %v1343_v25, %s2208_s11  ;;  %1346 = vrot.lane.b32.xlu0 %v1342_v29, %s2208_s11  ;;  %1363 = vst [vmem:[#allocation1] ss:$9 sm:$0xff] %v2570_v27  ;;  %v1520_v29 = vsel %vm183_vm0, %v1516_v22, %v1518_v19 }
 0x1e4   :  { %1365 = vst [vmem:[#allocation1 + $0x1] ss:$9 sm:$0xff] %v2576_v26  ;;  %v1043_v57 = vadd.f32 %v1041_v56, %v1019_v37  ;;  %v1044_v31 = vadd.f32 %v1042_v28, %v1020_v21  ;;  %v1155_v21 = vld [vmem:[#allocation6 + $0x53] ss:$8 sm:$0x3] }
 0x1e5   :  { %v1157_v23 = vperm.slane %v1155_v21, 0  ;;  %v1158_v48 = vperm.slane %v1155_v21, 1  ;;  %v1257_v21 = vld [vmem:[#allocation6 + $0x57] ss:$8 sm:$0x3] }
 0x1e9   :  { %v1053_v35 = vpop.permute.xlu1 %1052 }
 0x1ea   :  { %v1056_v38 = vsel %vm161_vm5, %v1053_v35, %v1055_v33  ;;  %v1057_v39 = vsel %vm161_vm5, %v1055_v33, %v1053_v35  ;;  %v1521_v35 = vrot.slane %v1520_v29, 1 }
 0x1eb   :  { %v1367_v40 = vld [vmem:[#allocation1 + $0x9] sm:$0xff]  ;;  %v1366_v41 = vld [vmem:[#allocation1] sm:$0xff]  ;;  %v1065_v42 = vmul.f32 %v1061_v30, %v1057_v39  ;;  %v1066_v43 = vmul.f32 %v1062_v34, %v1056_v38  ;;  %v1519_v34 = vsel %vm181_vm1, %v1516_v22, %v1518_v19  ;;  %v1259_v22 = vperm.slane %v1257_v21, 0 }
 0x1ec   :  { %1372 = vrot.lane.b32.xlu0 %v1367_v40, %s2209_s12  ;;  %1387 = vst [vmem:[#allocation1] ss:$9 sm:$0xff] %v2570_v27  ;;  %1370 = vrot.lane.b32.xlu2 %v1366_v41, %s2209_s12  ;;  %v1107_v27 = vld [vmem:[#allocation6 + $0x51] ss:$8 sm:$0x3]  ;;  %v1125_v6 = vpop.permute.xlu2 %1124  ;;  %v1524_v40 = vmul.f32 %v1519_v34, %v2656_v46  ;;  %v1525_v41 = vmul.f32 %v1521_v35, %v2658_v47  ;;  %v1260_v19 = vperm.slane %v1257_v21, 1 }
 0x1ed   :  { %1389 = vst [vmem:[#allocation1 + $0x1] ss:$9 sm:$0xff] %v2576_v26  ;;  %v1067_v44 = vadd.f32 %v1065_v42, %v1043_v57  ;;  %v1068_v45 = vadd.f32 %v1066_v43, %v1044_v31  ;;  %v1109_v52 = vperm.slane %v1107_v27, 0  ;;  %v1110_v53 = vperm.slane %v1107_v27, 1 }
 0x1ee   :  { %v1179_v30 = vld [vmem:[#allocation6 + $0x54] ss:$8 sm:$0x3] }
 0x1ef   :  { %v1092_v61 = vadd.f32 %v2534_v16, %v1068_v45  ;;  %v1091_v62 = vadd.f32 %v2532_v15, %v1067_v44  ;;  %v1181_v38 = vperm.slane %v1179_v30, 0  ;;  %v1182_v39 = vperm.slane %v1179_v30, 1  ;;  %v1636_v30 = vld [vmem:[#allocation3 + $0x17] ss:$8 sm:$0x3] }
 0x1f4   :  { %v1390_v50 = vld [vmem:[#allocation1] sm:$0xff]  ;;  %v1391_v51 = vld [vmem:[#allocation1 + $0x9] sm:$0xff] }
 0x1f5   :  { %1394 = vrot.lane.b32.xlu1 %v1390_v50, %s2210_s13  ;;  %1417 = vst [vmem:[#allocation1] ss:$9 sm:$0xff] %v2656_v46  ;;  %1396 = vrot.lane.b32.xlu2 %v1391_v51, %s2210_s13  ;;  %v1151_v20 = vpop.permute.xlu2 %1150 }
 0x1f6   :  { %1419 = vst [vmem:[#allocation1 + $0x1] ss:$9 sm:$0xff] %v2658_v47 }
 0x1fb   :  { %v1103_v26 = vpop.permute.xlu1 %1102  ;;  %v1101_v54 = vpop.permute.xlu0 %1100 }
 0x1fc   :  { %v1104_v55 = vsel %vm212_vm6, %v1101_v54, %v1103_v26  ;;  %v1105_v58 = vsel %vm212_vm6, %v1103_v26, %v1101_v54  ;;  %v1209_v54 = vld [vmem:[#allocation6 + $0x55] ss:$8 sm:$0x3] }
 0x1fd   :  { %v1421_v59 = vld [vmem:[#allocation1 + $0x9] sm:$0xff]  ;;  %v1420_v60 = vld [vmem:[#allocation1] sm:$0xff]  ;;  %v1113_v63 = vmul.f32 %v1109_v52, %v1104_v55  ;;  %v1114_v2 = vmul.f32 %v1110_v53, %v1105_v58  ;;  %v1211_v58 = vperm.slane %v1209_v54, 0 }
 0x1fe   :  { %1426 = vrot.lane.b32.xlu1 %v1421_v59, %s2204_s0  ;;  %1424 = vrot.lane.b32.xlu0 %v1420_v60, %s2204_s0  ;;  %1441 = vst [vmem:[#allocation1] ss:$9 sm:$0xff] %v2656_v46  ;;  %v1212_v59 = vperm.slane %v1209_v54, 1 }
 0x1ff   :  { %1443 = vst [vmem:[#allocation1 + $0x1] ss:$9 sm:$0xff] %v2658_v47  ;;  %v1115_v3 = vadd.f32 %v1113_v63, %v1091_v62  ;;  %v1116_v4 = vadd.f32 %v1114_v2, %v1092_v61 }
 0x204   :  { %v1127_v16 = vpop.permute.xlu0 %1126 }
 0x205   :  { %v1128_v15 = vsel %vm237_vm7, %v1125_v6, %v1127_v16  ;;  %v1129_v10 = vsel %vm237_vm7, %v1127_v16, %v1125_v6 }
 0x206   :  { %v1445_v11 = vld [vmem:[#allocation1 + $0x9] sm:$0xff]  ;;  %v1444_v12 = vld [vmem:[#allocation1] sm:$0xff]  ;;  %v1137_v13 = vmul.f32 %v1133_v7, %v1128_v15  ;;  %v1138_v14 = vmul.f32 %v1134_v8, %v1129_v10 }
 0x207   :  { %1450 = vrot.lane.b32.xlu0 %v1445_v11, %s2201_s27  ;;  %1465 = vst [vmem:[#allocation1] ss:$9 sm:$0xff] %v2656_v46  ;;  %1448 = vrot.lane.b32.xlu2 %v1444_v12, %s2201_s27  ;;  %v1203_v55 = vpop.permute.xlu2 %1202  ;;  %v1233_v7 = vld [vmem:[#allocation6 + $0x56] ss:$8 sm:$0x3] }
 0x208   :  { %1467 = vst [vmem:[#allocation1 + $0x1] ss:$9 sm:$0xff] %v2658_v47  ;;  %v1139_v36 = vadd.f32 %v1137_v13, %v1115_v3  ;;  %v1140_v37 = vadd.f32 %v1138_v14, %v1116_v4  ;;  %v1235_v9 = vperm.slane %v1233_v7, 0  ;;  %v1236_v16 = vperm.slane %v1233_v7, 1 }
 0x20d   :  { %v1149_v49 = vpop.permute.xlu1 %1148 }
 0x20e   :  { %v1152_v24 = vsel %vm262_vm8, %v1149_v49, %v1151_v20  ;;  %v1153_v25 = vsel %vm262_vm8, %v1151_v20, %v1149_v49 }
 0x20f   :  { %v1468_v56 = vld [vmem:[#allocation1] sm:$0xff]  ;;  %v1469_v28 = vld [vmem:[#allocation1 + $0x9] sm:$0xff]  ;;  %v1161_v57 = vmul.f32 %v1157_v23, %v1152_v24  ;;  %v1162_v31 = vmul.f32 %v1158_v48, %v1153_v25 }
 0x210   :  { %1472 = vrot.lane.b32.xlu1 %v1468_v56, %s2205_s3  ;;  %1489 = vst [vmem:[#allocation1] ss:$9 sm:$0xff] %v2656_v46  ;;  %1474 = vrot.lane.b32.xlu2 %v1469_v28, %s2205_s3  ;;  %v1229_v8 = vpop.permute.xlu2 %1228 }
 0x211   :  { %1491 = vst [vmem:[#allocation1 + $0x1] ss:$9 sm:$0xff] %v2658_v47  ;;  %v1163_v32 = vadd.f32 %v1161_v57, %v1139_v36  ;;  %v1164_v33 = vadd.f32 %v1162_v31, %v1140_v37 }
 0x216   :  { %v1175_v42 = vpop.permute.xlu1 %1174  ;;  %v1173_v43 = vpop.permute.xlu0 %1172 }
 0x217   :  { %v1176_v44 = vsel %vm287_vm9, %v1173_v43, %v1175_v42  ;;  %v1177_v45 = vsel %vm287_vm9, %v1175_v42, %v1173_v43 }
 0x218   :  { %v1493_v50 = vld [vmem:[#allocation1 + $0x9] sm:$0xff]  ;;  %v1492_v51 = vld [vmem:[#allocation1] sm:$0xff]  ;;  %v1185_v27 = vmul.f32 %v1181_v38, %v1176_v44  ;;  %v1186_v52 = vmul.f32 %v1182_v39, %v1177_v45 }
 0x219   :  { %1498 = vrot.lane.b32.xlu1 %v1493_v50, %s2206_s9  ;;  %1528 = vst [vmem:[#allocation1] ss:$9 sm:$0xff] %v1524_v40  ;;  %1496 = vrot.lane.b32.xlu0 %v1492_v51, %s2206_s9 }
 0x21a   :  { %1530 = vst [vmem:[#allocation1 + $0x1] ss:$9 sm:$0xff] %v1525_v41  ;;  %v1187_v53 = vadd.f32 %v1185_v27, %v1163_v32  ;;  %v1188_v26 = vadd.f32 %v1186_v52, %v1164_v33  ;;  %v1634_v33 = vld [vmem:[#allocation3 + $0x7] ss:$8 sm:$0x3] }
 0x21f   :  { %v1205_v60 = vpop.permute.xlu0 %1204 }
 0x220   :  { %v1206_v61 = vsel %vm87_vm2, %v1203_v55, %v1205_v60  ;;  %v1207_v62 = vsel %vm87_vm2, %v1205_v60, %v1203_v55 }
 0x221   :  { %v2704_v63 = vld [vmem:[#allocation1] sm:$0xff]  ;;  %v2706_v2 = vld [vmem:[#allocation1 + $0x9] sm:$0xff]  ;;  %v1215_v3 = vmul.f32 %v1211_v58, %v1207_v62  ;;  %v1216_v4 = vmul.f32 %v1212_v59, %v1206_v61 }
 0x222   :  { %1537 = vst [vmem:[#allocation1] ss:$9 sm:$0xff] %v2656_v46 }
 0x223   :  { %1539 = vst [vmem:[#allocation1 + $0x1] ss:$9 sm:$0xff] %v2658_v47  ;;  %v1217_v5 = vadd.f32 %v1215_v3, %v1187_v53  ;;  %v1218_v6 = vadd.f32 %v1216_v4, %v1188_v26  ;;  %v1275_v3 = vpop.permute.xlu2 %1274 }
 0x228   :  { %v1227_v15 = vpop.permute.xlu1 %1226 }
 0x229   :  { %v1230_v10 = vsel %vm111_vm3, %v1227_v15, %v1229_v8  ;;  %v1231_v11 = vsel %vm111_vm3, %v1229_v8, %v1227_v15 }
 0x22a   :  { %v1541_v12 = vld [vmem:[#allocation1 + $0x9] sm:$0xff]  ;;  %v1540_v13 = vld [vmem:[#allocation1] sm:$0xff]  ;;  %v1239_v14 = vmul.f32 %v1235_v9, %v1231_v11  ;;  %v1240_v17 = vmul.f32 %v1236_v16, %v1230_v10 }
 0x22b   :  { %1546 = vrot.lane.b32.xlu0 %v1541_v12, %s2207_s10  ;;  %1561 = vst [vmem:[#allocation1] ss:$9 sm:$0xff] %v2656_v46  ;;  %1544 = vrot.lane.b32.xlu2 %v1540_v13, %s2207_s10 }
 0x22c   :  { %1563 = vst [vmem:[#allocation1 + $0x1] ss:$9 sm:$0xff] %v2658_v47  ;;  %v1241_v36 = vadd.f32 %v1239_v14, %v1217_v5  ;;  %v1242_v37 = vadd.f32 %v1240_v17, %v1218_v6 }
 0x231   :  { %v1253_v20 = vpop.permute.xlu1 %1252  ;;  %v1251_v23 = vpop.permute.xlu0 %1250 }
 0x232   :  { %v1254_v48 = vsel %vm136_vm4, %v1251_v23, %v1253_v20  ;;  %v1255_v49 = vsel %vm136_vm4, %v1253_v20, %v1251_v23 }
 0x233   :  { %v1564_v24 = vld [vmem:[#allocation1] sm:$0xff]  ;;  %v1565_v25 = vld [vmem:[#allocation1 + $0x9] sm:$0xff]  ;;  %v1263_v29 = vmul.f32 %v1259_v22, %v1255_v49  ;;  %v1264_v56 = vmul.f32 %v1260_v19, %v1254_v48 }
 0x234   :  { %1568 = vrot.lane.b32.xlu1 %v1564_v24, %s2208_s11  ;;  %1585 = vst [vmem:[#allocation1] ss:$9 sm:$0xff] %v2656_v46  ;;  %1570 = vrot.lane.b32.xlu2 %v1565_v25, %s2208_s11  ;;  %v1325_v7 = vpop.permute.xlu2 %1324  ;;  %v1281_v24 = vld [vmem:[#allocation6 + $0x60] ss:$8 sm:$0x3] }
 0x235   :  { %1587 = vst [vmem:[#allocation1 + $0x1] ss:$9 sm:$0xff] %v2658_v47  ;;  %v2726_v28 = vadd.f32 %v1263_v29, %v1241_v36  ;;  %v2728_v57 = vadd.f32 %v1264_v56, %v1242_v37  ;;  %v1283_v56 = vperm.slane %v1281_v24, 0 }
 0x23a   :  { %v1277_v6 = vpop.permute.xlu0 %1276 }
 0x23c   :  { %v1589_v31 = vld [vmem:[#allocation1 + $0x9] sm:$0xff]  ;;  %v1588_v32 = vld [vmem:[#allocation1] sm:$0xff] }
 0x23d   :  { %1594 = vrot.lane.b32.xlu1 %v1589_v31, %s2209_s12  ;;  %1592 = vrot.lane.b32.xlu0 %v1588_v32, %s2209_s12  ;;  %1609 = vst [vmem:[#allocation1] ss:$9 sm:$0xff] %v2656_v46  ;;  %v1736_v46 = vld [vmem:[#allocation6 + $0x83] ss:$8 sm:$0x3]  ;;  %v1284_v31 = vperm.slane %v1281_v24, 1  ;;  %v1279_v32 = vsel %vm161_vm5, %v1277_v6, %v1275_v3 }
 0x23e   :  { %1611 = vst [vmem:[#allocation1 + $0x1] ss:$9 sm:$0xff] %v2658_v47  ;;  %v1739_v41 = vperm.slane %v1736_v46, 1  ;;  %v1738_v42 = vperm.slane %v1736_v46, 0 }
 0x23f   :  { %v2798_v46 = vld [vmem:[#allocation6 + $0x64] ss:$8 sm:$0x3] }
 0x240   :  { %v1740_v43 = vrot.slane %v1739_v41, 7  ;;  %v1892_v41 = vld [vmem:[#allocation8 + $0xf8] sm:$0xff]  ;;  %v1380_v24 = vperm.slane %v2798_v46, 1 }
 0x241   :  { %1971 = vmatpush.msra.mxu2 %v1892_v41 }
 0x242   :  { %v1742_v44 = vsel %vm183_vm0, %v1738_v42, %v1740_v43  ;;  %v1741_v51 = vsel %vm181_vm1, %v1738_v42, %v1740_v43  ;;  %vm2052_vm1 = vcmask 1041408  }
 0x243   :  { %v1743_v27 = vrot.slane %v1742_v44, 1  ;;  %v1746_v52 = vmul.f32 %v1741_v51, %v1634_v33  ;;  %v1924_v44 = vld [vmem:[#allocation8 + $0x1f8] sm:$0xff] }
 0x244   :  { %1991 = vmatpush.msra.mxu3 %v1924_v44  ;;  %v1915_v44 = vld [vmem:[#allocation8 + $0x1b0] sm:$0xff] }
 0x245   :  { %v1613_v34 = vld [vmem:[#allocation1 + $0x9] sm:$0xff]  ;;  %v1612_v35 = vld [vmem:[#allocation1] sm:$0xff]  ;;  %v1747_v53 = vmul.f32 %v1743_v27, %v1636_v30 }
 0x246   :  { %1618 = vrot.lane.b32.xlu0 %v1613_v34, %s2210_s13  ;;  %1639 = vst [vmem:[#allocation1] ss:$9 sm:$0xff] %v1634_v33  ;;  %1616 = vrot.lane.b32.xlu2 %v1612_v35, %s2210_s13  ;;  %v2760_v10 = vpop.permute.xlu2 %1370  ;;  %v1287_v34 = vmul.f32 %v1283_v56, %v1279_v32  ;;  %v1353_v35 = vld [vmem:[#allocation6 + $0x63] ss:$8 sm:$0x3] }
 0x247   :  { %1641 = vst [vmem:[#allocation1 + $0x1] ss:$9 sm:$0xff] %v1636_v30 }
 0x24c   :  { %v1323_v8 = vpop.permute.xlu1 %1322 }
 0x24d   :  { %v1326_v27 = vsel %vm212_vm6, %v1323_v8, %v1325_v7 }
 0x24e   :  { %v1642_v38 = vld [vmem:[#allocation1] sm:$0xff]  ;;  %v1643_v39 = vld [vmem:[#allocation1 + $0x9] sm:$0xff] }
 0x24f   :  { %1646 = vrot.lane.b32.xlu1 %v1642_v38, %s2204_s0  ;;  %1663 = vst [vmem:[#allocation1] ss:$9 sm:$0xff] %v1634_v33  ;;  %1648 = vrot.lane.b32.xlu2 %v1643_v39, %s2204_s0  ;;  %v2764_v13 = vpop.permute.xlu2 %1396 }
 0x250   :  { %1665 = vst [vmem:[#allocation1 + $0x1] ss:$9 sm:$0xff] %v1636_v30 }
 0x255   :  { %v2758_v15 = vpop.permute.xlu0 %1346  ;;  %v1349_v11 = vpop.permute.xlu1 %1348 }
 0x257   :  { %v1667_v47 = vld [vmem:[#allocation1 + $0x9] sm:$0xff]  ;;  %v1666_v40 = vld [vmem:[#allocation1] sm:$0xff] }
 0x258   :  { %1672 = vrot.lane.b32.xlu1 %v1667_v47, %s2201_s27  ;;  %1670 = vrot.lane.b32.xlu0 %v1666_v40, %s2201_s27  ;;  %1687 = vst [vmem:[#allocation1] ss:$9 sm:$0xff] %v1634_v33  ;;  %v1891_v47 = vld [vmem:[#allocation8 + $0xf0] sm:$0xff] }
 0x259   :  { %1689 = vst [vmem:[#allocation1 + $0x1] ss:$9 sm:$0xff] %v1636_v30  ;;  %v1923_v40 = vld [vmem:[#allocation8 + $0x1f0] sm:$0xff]  ;;  %1931 = vmatpush.msra.mxu0 %v1891_v47 }
 0x25a   :  { %1951 = vmatpush.msra.mxu1 %v1923_v40  ;;  %v1918_v40 = vld [vmem:[#allocation8 + $0x1c8] sm:$0xff] }
 0x25e   :  { %v2762_v12 = vpop.permute.xlu0 %1372 }
 0x25f   :  { %v1374_v56 = vsel %vm262_vm8, %v2760_v10, %v2762_v12 }
 0x260   :  { %v1691_v45 = vld [vmem:[#allocation1 + $0x9] sm:$0xff]  ;;  %v1690_v50 = vld [vmem:[#allocation1] sm:$0xff] }
 0x261   :  { %1696 = vrot.lane.b32.xlu0 %v1691_v45, %s2205_s3  ;;  %1711 = vst [vmem:[#allocation1] ss:$9 sm:$0xff] %v1634_v33  ;;  %1694 = vrot.lane.b32.xlu2 %v1690_v50, %s2205_s3  ;;  %v2770_v36 = vpop.permute.xlu2 %1448  ;;  %v1889_v45 = vld [vmem:[#allocation8 + $0xe0] sm:$0xff] }
 0x262   :  { %1713 = vst [vmem:[#allocation1 + $0x1] ss:$9 sm:$0xff] %v1636_v30  ;;  %v1921_v50 = vld [vmem:[#allocation8 + $0x1e0] sm:$0xff]  ;;  %1932 = vmatpush.msra.mxu0 %v1889_v45  ;;  %v1884_v45 = vld [vmem:[#allocation8 + $0xb8] sm:$0xff] }
 0x263   :  { %1952 = vmatpush.msra.mxu1 %v1921_v50 }
 0x267   :  { %v2766_v14 = vpop.permute.xlu1 %1394 }
 0x268   :  { %v1398_v47 = vsel %vm287_vm9, %v2766_v14, %v2764_v13 }
 0x269   :  { %v1715_v26 = vld [vmem:[#allocation1 + $0x9] sm:$0xff]  ;;  %v1714_v54 = vld [vmem:[#allocation1] sm:$0xff] }
 0x26a   :  { %1718 = vrot.lane.b32.xlu1 %v1714_v54, %s2206_s9  ;;  %1750 = vst [vmem:[#allocation1] ss:$9 sm:$0xff] %v1746_v52  ;;  %1720 = vrot.lane.b32.xlu2 %v1715_v26, %s2206_s9  ;;  %v2776_v22 = vpop.permute.xlu2 %1474  ;;  %v1890_v52 = vld [vmem:[#allocation8 + $0xe8] sm:$0xff]  ;;  %v1887_v26 = vld [vmem:[#allocation8 + $0xd0] sm:$0xff]  ;;  %v1289_v54 = vadd.f32 %v1287_v34, %v2726_v28  ;;  %v1917_v34 = vld [vmem:[#allocation8 + $0x1c0] sm:$0xff] }
 0x26b   :  { %1752 = vst [vmem:[#allocation1 + $0x1] ss:$9 sm:$0xff] %v1747_v53  ;;  %v1922_v53 = vld [vmem:[#allocation8 + $0x1e8] sm:$0xff]  ;;  %1972 = vmatpush.msra.mxu2 %v1890_v52  ;;  %1933 = vmatpush.msra.mxu0 %v1887_v26  ;;  %v1916_v26 = vld [vmem:[#allocation8 + $0x1b8] sm:$0xff] }
 0x26c   :  { %1992 = vmatpush.msra.mxu3 %v1922_v53  ;;  %v1313_v32 = vadd.f32 %v2626_v0, %v1289_v54  ;;  %v2837_v0 = vld [vmem:[#allocation6 + $0x67] ss:$8 sm:$0x3]  ;;  %v2847_v53 = vld [vmem:[#allocation6 + $0x70] ss:$8 sm:$0x3] }
 0x26d   :  { %v1881_v54 = vld [vmem:[#allocation8 + $0xa0] sm:$0xff] }
 0x270   :  { %v2768_v17 = vpop.permute.xlu0 %1424  ;;  %v2772_v37 = vpop.permute.xlu1 %1426 }
 0x272   :  { %v2746_v55 = vld [vmem:[#allocation1] sm:$0xff]  ;;  %v2748_v58 = vld [vmem:[#allocation1 + $0x9] sm:$0xff] }
 0x273   :  { %1759 = vst [vmem:[#allocation1] ss:$9 sm:$0xff] %v1634_v33 }
 0x274   :  { %1761 = vst [vmem:[#allocation1 + $0x1] ss:$9 sm:$0xff] %v1636_v30 }
 0x279   :  { %v2774_v21 = vpop.permute.xlu0 %1450 }
 0x27b   :  { %v1763_v59 = vld [vmem:[#allocation1 + $0x9] sm:$0xff]  ;;  %v1762_v60 = vld [vmem:[#allocation1] sm:$0xff] }
 0x27c   :  { %1768 = vrot.lane.b32.xlu1 %v1763_v59, %s2207_s10  ;;  %1766 = vrot.lane.b32.xlu0 %v1762_v60, %s2207_s10  ;;  %1783 = vst [vmem:[#allocation1] ss:$9 sm:$0xff] %v1634_v33  ;;  %v1327_v59 = vsel %vm212_vm6, %v1325_v7, %v1323_v8  ;;  %v1355_v60 = vperm.slane %v1353_v35, 0  ;;  %v1351_v7 = vsel %vm237_vm7, %v1349_v11, %v2758_v15  ;;  %v1379_v8 = vperm.slane %v2798_v46, 0 }
 0x27d   :  { %1785 = vst [vmem:[#allocation1 + $0x1] ss:$9 sm:$0xff] %v1636_v30 }
 0x282   :  { %v2778_v19 = vpop.permute.xlu1 %1472 }
 0x284   :  { %v1787_v61 = vld [vmem:[#allocation1 + $0x9] sm:$0xff]  ;;  %v1786_v62 = vld [vmem:[#allocation1] sm:$0xff] }
 0x285   :  { %1792 = vrot.lane.b32.xlu0 %v1787_v61, %s2208_s11  ;;  %1807 = vst [vmem:[#allocation1] ss:$9 sm:$0xff] %v1634_v33  ;;  %1790 = vrot.lane.b32.xlu2 %v1786_v62, %s2208_s11  ;;  %v2782_v23 = vpop.permute.xlu2 %1544  ;;  %v1919_v61 = vld [vmem:[#allocation8 + $0x1d0] sm:$0xff]  ;;  %v1888_v62 = vld [vmem:[#allocation8 + $0xd8] sm:$0xff] }
 0x286   :  { %1809 = vst [vmem:[#allocation1 + $0x1] ss:$9 sm:$0xff] %v1636_v30  ;;  %1953 = vmatpush.msra.mxu1 %v1919_v61  ;;  %1973 = vmatpush.msra.mxu2 %v1888_v62 }
 0x288   :  { %1954 = vmatpush.msra.mxu1 %v1917_v34 }
 0x28a   :  { %1955 = vmatpush.msra.mxu1 %v1915_v44 }
 0x28b   :  { %v2780_v20 = vpop.permute.xlu0 %1496  ;;  %v2784_v48 = vpop.permute.xlu1 %1498 }
 0x28d   :  { %v1810_v4 = vld [vmem:[#allocation1] sm:$0xff]  ;;  %v1811_v5 = vld [vmem:[#allocation1 + $0x9] sm:$0xff] }
 0x28e   :  { %1814 = vrot.lane.b32.xlu1 %v1810_v4, %s2209_s12  ;;  %1831 = vst [vmem:[#allocation1] ss:$9 sm:$0xff] %v1634_v33  ;;  %1816 = vrot.lane.b32.xlu2 %v1811_v5, %s2209_s12  ;;  %v2788_v25 = vpop.permute.xlu2 %1570  ;;  %v1278_v33 = vsel %vm161_vm5, %v1275_v3, %v1277_v6  ;;  %v1920_v3 = vld [vmem:[#allocation8 + $0x1d8] sm:$0xff]  ;;  %v1356_v5 = vperm.slane %v1353_v35, 1  ;;  %v1350_v6 = vsel %vm237_vm7, %v2758_v15, %v1349_v11  ;;  %v1886_v35 = vld [vmem:[#allocation8 + $0xc8] sm:$0xff] }
 0x28f   :  { %1833 = vst [vmem:[#allocation1 + $0x1] ss:$9 sm:$0xff] %v1636_v30  ;;  %v1329_v30 = vld [vmem:[#allocation6 + $0x62] ss:$8 sm:$0x3]  ;;  %v1288_v39 = vmul.f32 %v1284_v31, %v1278_v33  ;;  %1993 = vmatpush.msra.mxu3 %v1920_v3  ;;  %v1359_v33 = vmul.f32 %v1355_v60, %v1350_v6  ;;  %v1375_v15 = vsel %vm262_vm8, %v2762_v12, %v2760_v10 }
 0x290   :  { %v1331_v42 = vperm.slane %v1329_v30, 0  ;;  %v1332_v51 = vperm.slane %v1329_v30, 1  ;;  %v2824_v31 = vld [vmem:[#allocation6 + $0x66] ss:$8 sm:$0x3]  ;;  %v1885_v30 = vld [vmem:[#allocation8 + $0xc0] sm:$0xff]  ;;  %v1360_v46 = vmul.f32 %v1356_v5, %v1351_v7  ;;  %v1383_v10 = vmul.f32 %v1379_v8, %v1374_v56  ;;  %1974 = vmatpush.msra.mxu2 %v1886_v35 }
 0x291   :  { %v1290_v4 = vadd.f32 %v1288_v39, %v2728_v57  ;;  %1934 = vmatpush.msra.mxu0 %v1885_v30  ;;  %1994 = vmatpush.msra.mxu3 %v1918_v40  ;;  %v1433_v52 = vperm.slane %v2824_v31, 0  ;;  %v1434_v62 = vperm.slane %v2824_v31, 1  ;;  %v1429_v3 = vsel %vm87_vm2, %v2772_v37, %v2768_v17  ;;  %v1879_v5 = vld [vmem:[#allocation8 + $0x90] sm:$0xff] }
 0x292   :  { %v1335_v28 = vmul.f32 %v1331_v42, %v1326_v27  ;;  %v1336_v57 = vmul.f32 %v1332_v51, %v1327_v59  ;;  %v1384_v51 = vmul.f32 %v1380_v24, %v1375_v15  ;;  %v1399_v27 = vsel %vm287_vm9, %v2764_v13, %v2766_v14  ;;  %v1913_v59 = vld [vmem:[#allocation8 + $0x1a0] sm:$0xff]  ;;  %1975 = vmatpush.msra.mxu2 %v1884_v45  ;;  %v1882_v13 = vld [vmem:[#allocation8 + $0xa8] sm:$0xff]  ;;  %v1911_v8 = vld [vmem:[#allocation8 + $0x190] sm:$0xff] }
 0x293   :  { %v1314_v39 = vadd.f32 %v2628_v1, %v1290_v4  ;;  %v1883_v1 = vld [vmem:[#allocation8 + $0xb0] sm:$0xff]  ;;  %1995 = vmatpush.msra.mxu3 %v1916_v26  ;;  %v1914_v14 = vld [vmem:[#allocation8 + $0x1a8] sm:$0xff]  ;;  %1956 = vmatpush.msra.mxu1 %v1913_v59  ;;  %v1912_v24 = vld [vmem:[#allocation8 + $0x198] sm:$0xff]  ;;  %v1452_v15 = vsel %vm111_vm3, %v2770_v36, %v2774_v21  ;;  %v1481_v35 = vperm.slane %v2847_v53, 0 }
 0x294   :  { %v1337_v41 = vadd.f32 %v1335_v28, %v1313_v32  ;;  %1935 = vmatpush.msra.mxu0 %v1883_v1  ;;  %v1457_v28 = vperm.slane %v2837_v0, 0  ;;  %v1458_v32 = vperm.slane %v2837_v0, 1  ;;  %1976 = vmatpush.msra.mxu2 %v1882_v13  ;;  %v1878_v0 = vld [vmem:[#allocation8 + $0x88] sm:$0xff]  ;;  %v1908_v26 = vld [vmem:[#allocation8 + $0x178] sm:$0xff]  ;;  %v1905_v59 = vld [vmem:[#allocation8 + $0x160] sm:$0xff] }
 0x295   :  { %v1338_v50 = vadd.f32 %v1336_v57, %v1314_v39  ;;  %v1880_v57 = vld [vmem:[#allocation8 + $0x98] sm:$0xff]  ;;  %1996 = vmatpush.msra.mxu3 %v1914_v14  ;;  %1957 = vmatpush.msra.mxu1 %v1911_v8  ;;  %v1482_v39 = vperm.slane %v2847_v53, 1  ;;  %v2882_v45 = vld [vmem:[#allocation6 + $0x73] ss:$8 sm:$0x3] }
 0x296   :  { %v1835_v9 = vld [vmem:[#allocation1 + $0x9] sm:$0xff]  ;;  %v1834_v16 = vld [vmem:[#allocation1] sm:$0xff]  ;;  %v1361_v60 = vadd.f32 %v1359_v33, %v1337_v41  ;;  %1936 = vmatpush.msra.mxu0 %v1881_v54  ;;  %v1453_v33 = vsel %vm111_vm3, %v2774_v21, %v2770_v36  ;;  %1977 = vmatpush.msra.mxu2 %v1880_v57  ;;  %v1476_v36 = vsel %vm136_vm4, %v2778_v19, %v2776_v22  ;;  %v1873_v54 = vld [vmem:[#allocation8 + $0x60] sm:$0xff] }
 0x297   :  { %1840 = vrot.lane.b32.xlu1 %v1835_v9, %s2210_s13  ;;  %1838 = vrot.lane.b32.xlu0 %v1834_v16, %s2210_s13  ;;  %v2811_v9 = vld [vmem:[#allocation6 + $0x65] ss:$8 sm:$0x3]  ;;  %v1362_v6 = vadd.f32 %v1360_v46, %v1338_v50  ;;  %v1877_v46 = vld [vmem:[#allocation8 + $0x80] sm:$0xff]  ;;  %v1461_v40 = vmul.f32 %v1457_v28, %v1453_v33  ;;  %v1477_v21 = vsel %vm136_vm4, %v2776_v22, %v2778_v19  ;;  %v1910_v41 = vld [vmem:[#allocation8 + $0x188] sm:$0xff] }
 0x298   :  { %v1403_v11 = vperm.slane %v2811_v9, 0  ;;  %v1404_v12 = vperm.slane %v2811_v9, 1  ;;  %v1428_v9 = vsel %vm87_vm2, %v2768_v17, %v2772_v37  ;;  %v1385_v56 = vadd.f32 %v1383_v10, %v1361_v60  ;;  %1937 = vmatpush.msra.mxu0 %v1879_v5  ;;  %1997 = vmatpush.msra.mxu3 %v1912_v24  ;;  %v1874_v13 = vld [vmem:[#allocation8 + $0x68] sm:$0xff]  ;;  %v1871_v5 = vld [vmem:[#allocation8 + $0x50] sm:$0xff] }
 0x299   :  { %v1386_v17 = vadd.f32 %v1384_v51, %v1362_v6  ;;  %v1437_v37 = vmul.f32 %v1433_v52, %v1429_v3  ;;  %v1438_v34 = vmul.f32 %v1434_v62, %v1428_v9  ;;  %1978 = vmatpush.msra.mxu2 %v1878_v0  ;;  %v1875_v51 = vld [vmem:[#allocation8 + $0x70] sm:$0xff]  ;;  %v1876_v52 = vld [vmem:[#allocation8 + $0x78] sm:$0xff]  ;;  %v1500_v22 = vsel %vm161_vm5, %v2780_v20, %v2784_v48  ;;  %v1906_v14 = vld [vmem:[#allocation8 + $0x168] sm:$0xff] }
 0x29a   :  { %v1407_v61 = vmul.f32 %v1403_v11, %v1398_v47  ;;  %v1408_v31 = vmul.f32 %v1404_v12, %v1399_v27  ;;  %v1503_v11 = vld [vmem:[#allocation6 + $0x71] ss:$8 sm:$0x3]  ;;  %1938 = vmatpush.msra.mxu0 %v1877_v46  ;;  %v1462_v12 = vmul.f32 %v1458_v32, %v1452_v15  ;;  %1998 = vmatpush.msra.mxu3 %v1910_v41  ;;  %v1907_v27 = vld [vmem:[#allocation8 + $0x170] sm:$0xff]  ;;  %v1553_v24 = vperm.slane %v2882_v45, 0 }
 0x29b   :  { %v1909_v47 = vld [vmem:[#allocation8 + $0x180] sm:$0xff]  ;;  %v1505_v1 = vperm.slane %v1503_v11, 0  ;;  %v1506_v44 = vperm.slane %v1503_v11, 1  ;;  %v1501_v19 = vsel %vm161_vm5, %v2784_v48, %v2780_v20  ;;  %v1486_v62 = vmul.f32 %v1482_v39, %v1476_v36  ;;  %1979 = vmatpush.msra.mxu2 %v1876_v52  ;;  %v1903_v9 = vld [vmem:[#allocation8 + $0x150] sm:$0xff]  ;;  %v1872_v20 = vld [vmem:[#allocation8 + $0x58] sm:$0xff] }
 0x29c   :  { %v1409_v30 = vadd.f32 %v1407_v61, %v1385_v56  ;;  %1958 = vmatpush.msra.mxu1 %v1909_v47  ;;  %v1410_v10 = vadd.f32 %v1408_v31, %v1386_v17  ;;  %1939 = vmatpush.msra.mxu0 %v1875_v51  ;;  %v1485_v61 = vmul.f32 %v1481_v35, %v1477_v21  ;;  %v1904_v48 = vld [vmem:[#allocation8 + $0x158] sm:$0xff]  ;;  %v1575_v56 = vld [vmem:[#allocation6 + $0x74] ss:$8 sm:$0x3]  ;;  %v1554_v17 = vperm.slane %v2882_v45, 1  ;;  %v1899_v36 = vld [vmem:[#allocation8 + $0x130] sm:$0xff] }
 0x29d   :  { %v2786_v49 = vpop.permute.xlu0 %1546  ;;  %1999 = vmatpush.msra.mxu3 %v1908_v26  ;;  %v1509_v8 = vmul.f32 %v1505_v1, %v1501_v19  ;;  %v1510_v57 = vmul.f32 %v1506_v44, %v1500_v22  ;;  %1980 = vmatpush.msra.mxu2 %v1874_v13  ;;  %v1869_v15 = vld [vmem:[#allocation8 + $0x40] sm:$0xff]  ;;  %v1902_v39 = vld [vmem:[#allocation8 + $0x148] sm:$0xff]  ;;  %v1868_v21 = vld [vmem:[#allocation8 + $0x38] sm:$0xff] }
 0x29e   :  { %v1439_v53 = vadd.f32 %v1437_v37, %v1409_v30  ;;  %1959 = vmatpush.msra.mxu1 %v1907_v27  ;;  %v1440_v60 = vadd.f32 %v1438_v34, %v1410_v10  ;;  %1940 = vmatpush.msra.mxu0 %v1873_v54  ;;  %v1548_v37 = vsel %vm212_vm6, %v2782_v23, %v2786_v49  ;;  %v1901_v11 = vld [vmem:[#allocation8 + $0x140] sm:$0xff]  ;;  %v1870_v30 = vld [vmem:[#allocation8 + $0x48] sm:$0xff]  ;;  %v1577_v10 = vperm.slane %v1575_v56, 0  ;;  %v1900_v1 = vld [vmem:[#allocation8 + $0x138] sm:$0xff] }
 0x29f   :  { %2000 = vmatpush.msra.mxu3 %v1906_v14  ;;  %1981 = vmatpush.msra.mxu2 %v1872_v20  ;;  %v1549_v34 = vsel %vm212_vm6, %v2786_v49, %v2782_v23  ;;  %v1599_v35 = vld [vmem:[#allocation6 + $0x75] ss:$8 sm:$0x3]  ;;  %v2908_v0 = vld [vmem:[#allocation6 + $0x76] ss:$8 sm:$0x3]  ;;  %v1557_v41 = vmul.f32 %v1553_v24, %v1548_v37 }
 0x2a0   :  { %v2800_v43 = vpop.permute.xlu2 %1616  ;;  %v1463_v6 = vadd.f32 %v1461_v40, %v1439_v53  ;;  %1960 = vmatpush.msra.mxu1 %v1905_v59  ;;  %v1464_v28 = vadd.f32 %v1462_v12, %v1440_v60  ;;  %1941 = vmatpush.msra.mxu0 %v1871_v5  ;;  %v1867_v40 = vld [vmem:[#allocation8 + $0x30] sm:$0xff]  ;;  %v1578_v12 = vperm.slane %v1575_v56, 1  ;;  %v1865_v23 = vld [vmem:[#allocation8 + $0x20] sm:$0xff]  ;;  %v1558_v44 = vmul.f32 %v1554_v17, %v1549_v34  ;;  %v1866_v53 = vld [vmem:[#allocation8 + $0x28] sm:$0xff] }
 0x2a1   :  { %2001 = vmatpush.msra.mxu3 %v1904_v48  ;;  %1982 = vmatpush.msra.mxu2 %v1870_v30  ;;  %v1897_v49 = vld [vmem:[#allocation8 + $0x120] sm:$0xff]  ;;  %v1601_v27 = vperm.slane %v1599_v35, 0  ;;  %v1898_v22 = vld [vmem:[#allocation8 + $0x128] sm:$0xff]  ;;  %v1863_v19 = vld [vmem:[#allocation8 + $0x10] sm:$0xff]  ;;  %v1602_v26 = vperm.slane %v1599_v35, 1  ;;  %v1625_v20 = vperm.slane %v2908_v0, 0 }
 0x2a2   :  { %1961 = vmatpush.msra.mxu1 %v1903_v9  ;;  %v1487_v32 = vadd.f32 %v1485_v61, %v1463_v6  ;;  %v1488_v33 = vadd.f32 %v1486_v62, %v1464_v28  ;;  %1942 = vmatpush.msra.mxu0 %v1869_v15  ;;  %v1895_v59 = vld [vmem:[#allocation8 + $0x110] sm:$0xff]  ;;  %v1864_v60 = vld [vmem:[#allocation8 + $0x18] sm:$0xff]  ;;  %v1861_v14 = vld [vmem:[#allocation8] sm:$0xff] }
 0x2a3   :  { %2002 = vmatpush.msra.mxu3 %v1902_v39  ;;  %1983 = vmatpush.msra.mxu2 %v1868_v21  ;;  %v1896_v61 = vld [vmem:[#allocation8 + $0x118] sm:$0xff]  ;;  %v1893_v5 = vld [vmem:[#allocation8 + $0x100] sm:$0xff] }
 0x2a4   :  { %1962 = vmatpush.msra.mxu1 %v1901_v11  ;;  %v1511_v46 = vadd.f32 %v1509_v8, %v1487_v32  ;;  %v1512_v47 = vadd.f32 %v1510_v57, %v1488_v33  ;;  %1943 = vmatpush.msra.mxu0 %v1867_v40  ;;  %v1653_v48 = vld [vmem:[#allocation6 + $0x77] ss:$8 sm:$0x3]  ;;  %v1677_v33 = vld [vmem:[#allocation6 + $0x80] ss:$8 sm:$0x3] }
 0x2a5   :  { %2003 = vmatpush.msra.mxu3 %v1900_v1  ;;  %1984 = vmatpush.msra.mxu2 %v1866_v53  ;;  %v1655_v17 = vperm.slane %v1653_v48, 0  ;;  %v1656_v37 = vperm.slane %v1653_v48, 1  ;;  %v1679_v39 = vperm.slane %v1677_v33, 0 }
 0x2a6   :  { %v2790_v29 = vpop.permute.xlu1 %1568  ;;  %1963 = vmatpush.msra.mxu1 %v1899_v36  ;;  %1944 = vmatpush.msra.mxu0 %v1865_v23 }
 0x2a7   :  { %v1572_v45 = vsel %vm237_vm7, %v2790_v29, %v2788_v25  ;;  %v1573_v51 = vsel %vm237_vm7, %v2788_v25, %v2790_v29  ;;  %v1536_v25 = vadd.f32 %v2706_v2, %v1512_v47  ;;  %v1535_v29 = vadd.f32 %v2704_v63, %v1511_v46  ;;  %2004 = vmatpush.msra.mxu3 %v1898_v22  ;;  %v1862_v2 = vld [vmem:[#allocation8 + $0x8] sm:$0xff]  ;;  %v1725_v47 = vld [vmem:[#allocation6 + $0x82] ss:$8 sm:$0x3] }
 0x2a8   :  { %1964 = vmatpush.msra.mxu1 %v1897_v49  ;;  %v1581_v6 = vmul.f32 %v1577_v10, %v1572_v45  ;;  %v1582_v9 = vmul.f32 %v1578_v12, %v1573_v51  ;;  %1945 = vmatpush.msra.mxu0 %v1863_v19  ;;  %v1894_v63 = vld [vmem:[#allocation8 + $0x108] sm:$0xff]  ;;  %v1680_v46 = vperm.slane %v1677_v33, 1  ;;  %v1728_v45 = vperm.slane %v1725_v47, 1 }
 0x2a9   :  { %v2854_v4 = vpop.permute.xlu2 %1648  ;;  %v1559_v8 = vadd.f32 %v1557_v41, %v1535_v29  ;;  %v1560_v57 = vadd.f32 %v1558_v44, %v1536_v25  ;;  %1985 = vmatpush.msra.mxu2 %v1864_v60  ;;  %2005 = vmatpush.msra.mxu3 %v1896_v61  ;;  %v1727_v44 = vperm.slane %v1725_v47, 0  ;;  %v1773_v61 = vld [vmem:[#allocation6 + $0x84] ss:$8 sm:$0x3] }
 0x2aa   :  { %1965 = vmatpush.msra.mxu1 %v1895_v59  ;;  %1946 = vmatpush.msra.mxu0 %v1861_v14 }
 0x2ab   :  { %1986 = vmatpush.msra.mxu2 %v1862_v2  ;;  %2006 = vmatpush.msra.mxu3 %v1894_v63  ;;  %v1583_v15 = vadd.f32 %v1581_v6, %v1559_v8  ;;  %v1584_v11 = vadd.f32 %v1582_v9, %v1560_v57  ;;  %v1775_v6 = vperm.slane %v1773_v61, 0  ;;  %v1776_v9 = vperm.slane %v1773_v61, 1 }
 0x2ac   :  { %1966 = vmatpush.msra.mxu1 %v1893_v5 }
 0x2af   :  { %v2796_v38 = vpop.permute.xlu0 %1592  ;;  %v2813_v16 = vpop.permute.xlu1 %1594 }
 0x2b0   :  { %v1596_v54 = vsel %vm262_vm8, %v2796_v38, %v2813_v16  ;;  %v1597_v62 = vsel %vm262_vm8, %v2813_v16, %v2796_v38  ;;  %v1626_v38 = vperm.slane %v2908_v0, 1 }
 0x2b1   :  { %v1605_v24 = vmul.f32 %v1601_v27, %v1596_v54  ;;  %v1606_v16 = vmul.f32 %v1602_v26, %v1597_v62  ;;  %v1797_v62 = vld [vmem:[#allocation6 + $0x85] ss:$8 sm:$0x3] }
 0x2b2   :  { %v1799_v57 = vperm.slane %v1797_v62, 0 }
 0x2b3   :  { %v1607_v40 = vadd.f32 %v1605_v24, %v1583_v15  ;;  %v1608_v36 = vadd.f32 %v1606_v16, %v1584_v11  ;;  %v1800_v24 = vperm.slane %v1797_v62, 1  ;;  %v1845_v15 = vld [vmem:[#allocation6 + $0x87] ss:$8 sm:$0x3] }
 0x2b8   :  { %v2840_v42 = vpop.permute.xlu0 %1618 }
 0x2b9   :  { %v1620_v56 = vsel %vm287_vm9, %v2800_v43, %v2840_v42  ;;  %v1621_v32 = vsel %vm287_vm9, %v2840_v42, %v2800_v43  ;;  %v1701_v43 = vld [vmem:[#allocation6 + $0x81] ss:$8 sm:$0x3] }
 0x2ba   :  { %v1629_v42 = vmul.f32 %v1625_v20, %v1620_v56  ;;  %v1630_v35 = vmul.f32 %v1626_v38, %v1621_v32  ;;  %v1703_v10 = vperm.slane %v1701_v43, 0  ;;  %v1704_v12 = vperm.slane %v1701_v43, 1 }
 0x2bb   :  { %v2894_v3 = vpop.permute.xlu2 %1694 }
 0x2bc   :  { %v1631_v27 = vadd.f32 %v1629_v42, %v1607_v40 }
 0x2c1   :  { %v2861_v7 = vpop.permute.xlu1 %1646 }
 0x2c2   :  { %v1650_v30 = vsel %vm87_vm2, %v2861_v7, %v2854_v4  ;;  %v1651_v34 = vsel %vm87_vm2, %v2854_v4, %v2861_v7 }
 0x2c3   :  { %v1659_v4 = vmul.f32 %v1655_v17, %v1651_v34  ;;  %v1660_v7 = vmul.f32 %v1656_v37, %v1650_v30 }
 0x2c4   :  { %v1721_v13 = vpop.permute.xlu2 %1720 }
 0x2c5   :  { %v1661_v26 = vadd.f32 %v1659_v4, %v1631_v27 }
 0x2ca   :  { %v2884_v50 = vpop.permute.xlu0 %1670  ;;  %v2897_v31 = vpop.permute.xlu1 %1672 }
 0x2cb   :  { %v1674_v21 = vsel %vm111_vm3, %v2884_v50, %v2897_v31  ;;  %v1675_v41 = vsel %vm111_vm3, %v2897_v31, %v2884_v50  ;;  %v1632_v50 = vadd.f32 %v1630_v35, %v1608_v36 }
 0x2cc   :  { %v1683_v31 = vmul.f32 %v1679_v39, %v1675_v41  ;;  %v1684_v53 = vmul.f32 %v1680_v46, %v1674_v21  ;;  %v1847_v39 = vperm.slane %v1845_v15, 0  ;;  %v1848_v46 = vperm.slane %v1845_v15, 1 }
 0x2cd   :  { %v1662_v54 = vadd.f32 %v1660_v7, %v1632_v50 }
 0x2ce   :  { %v1685_v25 = vadd.f32 %v1683_v31, %v1661_v26 }
 0x2d3   :  { %v2918_v52 = vpop.permute.xlu0 %1696 }
 0x2d4   :  { %v1698_v23 = vsel %vm136_vm4, %v2894_v3, %v2918_v52  ;;  %v1699_v49 = vsel %vm136_vm4, %v2918_v52, %v2894_v3  ;;  %v1686_v3 = vadd.f32 %v1684_v53, %v1662_v54  ;;  %v1927_v53 = vperm.slane %v1925_v18, 0 }
 0x2d5   :  { %v1707_v59 = vmul.f32 %v1703_v10, %v1699_v49  ;;  %v1708_v60 = vmul.f32 %v1704_v12, %v1698_v23  ;;  %v1856_v49 = vstv %s3003_s2  ;;  %s2211_s2 = smov [#allocation9]  }
 0x2d6   :  { %s2061_s4 = sshll.u32 %s2211_s2, 4  ;;  %s2062_s4 = int_to_ptr.vmem [resolvable:$true] %s2061_s4 }
 0x2d7   :  { %v1709_v14 = vadd.f32 %v1707_v59, %v1685_v25  ;;  %v1710_v5 = vadd.f32 %v1708_v60, %v1686_v3  ;;  %v1928_v59 = vperm.slane %v1925_v18, 1 }
 0x2dc   :  { %v1719_v28 = vpop.permute.xlu1 %1718 }
 0x2dd   :  { %v1722_v22 = vsel %vm161_vm5, %v1719_v28, %v1721_v13  ;;  %v1723_v19 = vsel %vm161_vm5, %v1721_v13, %v1719_v28  ;;  %v1821_v28 = vld [vmem:[#allocation6 + $0x86] ss:$8 sm:$0x3] }
 0x2de   :  { %v1731_v52 = vmul.f32 %v1727_v44, %v1723_v19  ;;  %v1732_v29 = vmul.f32 %v1728_v45, %v1722_v22  ;;  %v1823_v17 = vperm.slane %v1821_v28, 0  ;;  %v1824_v37 = vperm.slane %v1821_v28, 1 }
 0x2df   :  { %v1791_v1 = vpop.permute.xlu2 %1790 }
 0x2e0   :  { %v1733_v63 = vadd.f32 %v1731_v52, %v1709_v14  ;;  %v1734_v8 = vadd.f32 %v1732_v29, %v1710_v5 }
 0x2e2   :  { %v1758_v34 = vadd.f32 %v2748_v58, %v1734_v8  ;;  %v1757_v43 = vadd.f32 %v2746_v55, %v1733_v63 }
 0x2e8   :  { %v1817_v38 = vpop.permute.xlu2 %1816 }
 0x2ee   :  { %v1767_v0 = vpop.permute.xlu0 %1766  ;;  %v1769_v51 = vpop.permute.xlu1 %1768 }
 0x2ef   :  { %v1770_v48 = vsel %vm212_vm6, %v1767_v0, %v1769_v51  ;;  %v1771_v13 = vsel %vm212_vm6, %v1769_v51, %v1767_v0 }
 0x2f0   :  { %v1779_v32 = vmul.f32 %v1775_v6, %v1770_v48  ;;  %v1780_v33 = vmul.f32 %v1776_v9, %v1771_v13 }
 0x2f2   :  { %v1781_v47 = vadd.f32 %v1779_v32, %v1757_v43  ;;  %v1782_v0 = vadd.f32 %v1780_v33, %v1758_v34 }
 0x2f7   :  { %v1793_v20 = vpop.permute.xlu0 %1792 }
 0x2f8   :  { %v1794_v16 = vsel %vm237_vm7, %v1791_v1, %v1793_v20  ;;  %v1795_v56 = vsel %vm237_vm7, %v1793_v20, %v1791_v1 }
 0x2f9   :  { %v1803_v42 = vmul.f32 %v1799_v57, %v1794_v16  ;;  %v1804_v35 = vmul.f32 %v1800_v24, %v1795_v56 }
 0x2fb   :  { %v1805_v21 = vadd.f32 %v1803_v42, %v1781_v47  ;;  %v1806_v41 = vadd.f32 %v1804_v35, %v1782_v0 }
 0x300   :  { %v1815_v2 = vpop.permute.xlu1 %1814 }
 0x301   :  { %v1818_v11 = vsel %vm262_vm8, %v1815_v2, %v1817_v38  ;;  %v1819_v30 = vsel %vm262_vm8, %v1817_v38, %v1815_v2 }
 0x302   :  { %v1827_v40 = vmul.f32 %v1823_v17, %v1818_v11  ;;  %v1828_v36 = vmul.f32 %v1824_v37, %v1819_v30 }
 0x304   :  { %v1829_v12 = vadd.f32 %v1827_v40, %v1805_v21  ;;  %v1830_v55 = vadd.f32 %v1828_v36, %v1806_v41 }
 0x309   :  { %v1841_v4 = vpop.permute.xlu1 %1840  ;;  %v1839_v7 = vpop.permute.xlu0 %1838 }
 0x30a   :  { %v1842_v10 = vsel %vm287_vm9, %v1839_v7, %v1841_v4  ;;  %v1843_v58 = vsel %vm287_vm9, %v1841_v4, %v1839_v7 }
 0x30b   :  { %v1851_v1 = vmul.f32 %v1847_v39, %v1842_v10  ;;  %v1852_v23 = vmul.f32 %v1848_v46, %v1843_v58 }
 0x30d   :  { %v1853_v44 = vadd.f32 %v1851_v1, %v1829_v12  ;;  %v1854_v45 = vadd.f32 %v1852_v23, %v1830_v55 }
 0x30f   :  { %v1857_v51 = vadd.f32 %v1856_v49, %v1853_v44  ;;  %v1858_v27 = vadd.f32 %v1856_v49, %v1854_v45 }
 0x311   :  { %v1859_v50 = vmax.f32 %v1857_v51, 0.0  ;;  %v1860_v31 = vmax.f32 %v1858_v27, 0.0 }
 0x313   :  { %1947 = vmatmul.f32.vlgmr.msra.gmra.mxu0 %v1859_v50  ;;  %1967 = vmatmul.f32.vlgmr.msra.gmra.mxu1 %v1860_v31 }
 0x314   :  { %1987 = vmatmul.f32.vlgmr.msra.gmra.mxu2 %v1859_v50  ;;  %2007 = vmatmul.f32.vlgmr.msra.gmra.mxu3 %v1860_v31 }
 0x390   :  { %v1948_v22 = vpop.f32.mrf.mxu0  ;;  %v1968_v26 = vpop.f32.mrf.mxu1 }
 0x391   :  { %v1949_v19 = vadd.f32 %v1948_v22, %v1927_v53 }
 0x393   :  { %v1969_v54 = vadd.f32 %v1968_v26, %v1949_v19 }
 0x395   :  { %v2074_v60 = vmul.f32 -1.442695, %v1969_v54 }
 0x397   :  { %2089 = vpow2.f32 %v2074_v60  ;;  %v1988_v61 = vpop.f32.mrf.mxu2  ;;  %v2008_v3 = vpop.f32.mrf.mxu3 }
 0x398   :  { %v1989_v25 = vadd.f32 %v1988_v61, %v1928_v59 }
 0x39a   :  { %v2009_v52 = vadd.f32 %v2008_v3, %v1989_v25 }
 0x39c   :  { %v2075_v29 = vmul.f32 -1.442695, %v2009_v52 }
 0x39d   :  { %v2090_v62 = vpop.eup %2089 }
 0x39e   :  { %v2017_v14 = vadd.f32 1.0, %v2090_v62  ;;  %2091 = vpow2.f32 %v2075_v29 }
 0x3a0   :  { %2093 = vrcp.f32 %v2017_v14  ;;  %vm2024_vm12 = vweird.f32 %v2017_v14  ;;  %v2030_v16 = vand.u32 2147483648, %v2017_v14  ;;  %v2028_v32 = vand.u32 2147483647, %v2017_v14 }
 0x3a2   :  { %v2031_v11 = vor.u32 1.1754944e-38, %v2030_v16  ;;  %vm2029_vm2 = vcmp.eq.f32.partialorder %v2028_v32, 8.507059e+37 }
 0x3a4   :  { %v2092_v5 = vpop.eup %2091 }
 0x3a5   :  { %v2018_v6 = vadd.f32 1.0, %v2092_v5 }
 0x3a6   :  { %v2094_v9 = vpop.eup %2093 }
 0x3a7   :  { %v2020_v20 = vmul.f32 %v2094_v9, %v2017_v14  ;;  %2095 = vrcp.f32 %v2018_v6  ;;  %vm2025_vm10 = vweird.f32 %v2094_v9  ;;  %v2045_v8 = vand.u32 2147483648, %v2018_v6 }
 0x3a8   :  { %v2043_v38 = vand.u32 2147483647, %v2018_v6  ;;  %vm2992_vm13 = vmor %vm2024_vm12, %vm2025_vm10  ;;  %vm2039_vm14 = vweird.f32 %v2018_v6 }
 0x3a9   :  { %v2021_v48 = vsub.f32 1.0, %v2020_v20  ;;  %v2046_v17 = vor.u32 1.1754944e-38, %v2045_v8 }
 0x3aa   :  { %vm2044_vm0 = vcmp.eq.f32.partialorder %v2043_v38, 8.507059e+37 }
 0x3ab   :  { %v2022_v2 = vmul.f32 %v2094_v9, %v2021_v48 }
 0x3ad   :  { %v2096_v13 = vpop.eup %2095  ;;  %v2023_v57 = vadd.f32 %v2094_v9, %v2022_v2 }
 0x3ae   :  { %v2035_v28 = vmul.f32 %v2096_v13, %v2018_v6  ;;  %vm2040_vm11 = vweird.f32 %v2096_v13 }
 0x3af   :  { %vm2041_vm15 = vmor %vm2039_vm14, %vm2040_vm11  ;;  %v2027_v37 = vsel %vm2992_vm13, %v2094_v9, %v2023_v57 }
 0x3b0   :  { %v2036_v63 = vsub.f32 1.0, %v2035_v28  ;;  %v2032_v43 = vsel %vm2029_vm2, %v2031_v11, %v2027_v37 }
 0x3b2   :  { %v2037_v24 = vmul.f32 %v2096_v13, %v2036_v63 }
 0x3b4   :  { %v2038_v33 = vadd.f32 %v2096_v13, %v2037_v24 }
 0x3b6   :  { %v2042_v15 = vsel %vm2041_vm15, %v2096_v13, %v2038_v33 }
 0x3b7   :  { %v2047_v30 = vsel %vm2044_vm0, %v2046_v17, %v2042_v15 }
 0x3b8   :  { %v2051_v34 = vrot.slane %v2047_v30, 6 }
 0x3ba   :  { %v2053_v42 = vsel %vm2052_vm1, %v2032_v43, %v2051_v34 }
 0x3bb   :  { %2055 = vst [vmem:[#allocation9] sm:$0xf] %v2053_v42 }
 0x3bc   :  { %2066 = dma.vmem_to_hbm [thread:$0]  %s2062_s4, 64, %s2064_s20, [#allocation5]  }
 0x3bd   :  { %2197 = dma.done.wait [#allocation5], 64  }
 0x3be   :  { %2198 = vsyncadd [#allocation5], 4294967232 }
 0x3bf   :  { %2071 = vsyncpa [#allocation4], 1 }
 0x3c0   :  { %2072 = vsyncpa [#allocation7], 1 }
 0x3c1   :  { %2073 = vsyncpa [#allocation5], 1 }

</bundles_post_ra>
